<compile_context>
chip_gen: v5e
topology: v5e:2x2
jax: 0.10.0
libtpu: 0.0.40
codegen_flags: <defaults>
</compile_context>

<pallas_src>
import jax
import jax.numpy as jnp
from jax import lax
from jax.experimental import pallas as pl
from jax.experimental.pallas import tpu as pltpu


def _round_up(x, m):
    return (x + m - 1) // m * m


# ---------------------------------------------------------------------------
# Fused InvertedResidual forward
# ---------------------------------------------------------------------------

def inverted_residual(x_nchw, params, *, stride, expand_ratio):
    """Forward pass of InvertedResidual. Input/output layout: NCHW (PyTorch)."""
    assert stride in (1, 2)
    N, cin, H, W = x_nchw.shape
    has_expand = expand_ratio != 1
    ch = params["pw_proj_w"].shape[0]          # hidden dim
    cout = params["pw_proj_w"].shape[1]
    use_res = (stride == 1) and (cin == cout)

    x = jnp.transpose(x_nchw, (0, 2, 3, 1))    # NCHW -> NHWC (f32)
    f32, bf16 = jnp.float32, jnp.bfloat16

    Ho = H if stride == 1 else (H - 1) // 2 + 1
    Wo = W if stride == 1 else (W - 1) // 2 + 1
    n_bands = pl.cdiv(Ho, 16)                  # cap: 16 output rows per band
    TR = pl.cdiv(Ho, n_bands)
    n_bands = pl.cdiv(Ho, TR)
    Hr = n_bands * TR                          # banded (row-padded) output rows
    Wq = _round_up(Wo, 8)                      # sublane-aligned compute width

    ch_p = _round_up(ch, 128) if has_expand else ch
    cout_p = _round_up(cout, 128)              # lane-dense stores + full MXU N tile
    CH = ch_p

    # ---- folded-BN weights: bf16 matmul operands, f32 scale/bias, 128-padded ----
    wd9 = jnp.zeros((9, ch_p), f32).at[:, :ch].set(params["dw_w"].reshape(9, ch))
    s2 = jnp.zeros((1, ch_p), f32).at[:, :ch].set(params["dw_scale"].reshape(1, ch))
    b2 = jnp.zeros((1, ch_p), f32).at[:, :ch].set(params["dw_bias"].reshape(1, ch))
    w2 = (jnp.zeros((ch_p, cout_p), f32)
          .at[:ch, :cout].set(params["pw_proj_w"]).astype(bf16))
    s3 = jnp.zeros((1, cout_p), f32).at[:, :cout].set(
        params["pw_proj_scale"].reshape(1, cout))
    b3 = jnp.zeros((1, cout_p), f32).at[:, :cout].set(
        params["pw_proj_bias"].reshape(1, cout))

    w_args, w_specs = [], []
    if has_expand:
        # Fold the expand bias into an extra "indicator" input channel (1 inside the
        # image, 0 in padding): h = relu6(s1 * (x.w1 + ind*(b1/s1))) is exactly 0 at
        # padded positions -> no zero-padding mask on the expanded hidden tensor.
        s1 = params["pw_exp_scale"].reshape(1, ch)
        b1 = params["pw_exp_bias"].reshape(1, ch)
        w1a = jnp.zeros((cin + 1, ch_p), f32)
        w1a = w1a.at[:cin, :ch].set(params["pw_exp_w"])
        w1a = w1a.at[cin, :ch].set((b1 / s1)[0])
        w1a = w1a.astype(bf16)
        s1p = jnp.ones((1, ch_p), f32).at[:, :ch].set(s1)
        w_args += [w1a, s1p]
        w_specs += [pl.BlockSpec((cin + 1, ch_p), lambda n, b: (0, 0)),
                    pl.BlockSpec((1, ch_p), lambda n, b: (0, 0))]
        x_aug = jnp.concatenate([x, jnp.ones((N, H, W, 1), f32)], axis=-1)
    else:
        x_aug = x
    cin_in = x_aug.shape[-1]
    x_aug = x_aug.astype(bf16)                 # bf16 storage: halves input DMA bytes

    w_args += [wd9, s2, b2, w2, s3, b3]
    w_specs += [pl.BlockSpec((9, ch_p), lambda n, b: (0, 0)),
                pl.BlockSpec((1, ch_p), lambda n, b: (0, 0)),
                pl.BlockSpec((1, ch_p), lambda n, b: (0, 0)),
                pl.BlockSpec((ch_p, cout_p), lambda n, b: (0, 0)),
                pl.BlockSpec((1, cout_p), lambda n, b: (0, 0)),
                pl.BlockSpec((1, cout_p), lambda n, b: (0, 0))]

    if stride == 1:
        # Padded image: 1-row/col halo on the (small) input; rows cover all bands.
        Wp = Wq + 8
        R = Hr + 2
        xin = jnp.pad(x_aug, ((0, 0), (1, R - H - 1), (1, Wp - W - 1), (0, 0)))
        x_spec = pl.BlockSpec((None, R, Wp, cin_in), lambda n, b: (n, 0, 0, 0))
    else:
        # 2x2 parity decomposition of the padded image:
        #   plane[2*pr+pc][a, b] == xpad[2a+pr, 2b+pc]
        # so every stride-2 depthwise tap is a contiguous slice and only strided
        # output positions are ever computed / stored.
        A = Hr + 1
        Bq = Wq + 8
        xp2 = jnp.pad(x_aug, ((0, 0), (1, 2 * A - H - 1), (1, 2 * Bq - W - 1), (0, 0)))
        xin = (xp2.reshape(N, A, 2, Bq, 2, cin_in)
                  .transpose(0, 2, 4, 1, 3, 5)
                  .reshape(N, 4, A, Bq, cin_in))
        x_spec = pl.BlockSpec((None, 4, A, Bq, cin_in), lambda n, b: (n, 0, 0, 0, 0))

    in_specs = [x_spec] + w_specs
    args = [xin] + w_args
    if use_res:
        # Residual from a dedicated, band-blocked, aligned f32 input (exact add).
        # TODO(synk): channel pad to cout_p inflates residual DMA; an in-kernel lane
        # concat would avoid it.
        xres = jnp.pad(x, ((0, 0), (0, Hr - H), (0, Wq - W), (0, cout_p - cin)))
        in_specs.append(pl.BlockSpec((None, TR, Wq, cout_p), lambda n, b: (n, b, 0, 0)))
        args.append(xres)

    def kernel(x_ref, *refs):
        pos = 0
        if has_expand:
            w1_ref, s1_ref = refs[0], refs[1]
            pos = 2
        wd_ref, s2_ref, b2_ref, w2_ref, s3_ref, b3_ref = refs[pos:pos + 6]
        pos += 6
        res_ref = refs[pos] if use_res else None
        o_ref = refs[-1]

        row0 = pl.multiple_of(pl.program_id(1) * TR, TR)   # first output row of band

        def expand(xb):                        # (..., cin_in) bf16 -> (..., CH) f32
            if has_expand:
                h = jnp.dot(xb.reshape(-1, cin_in), w1_ref[...],
                            preferred_element_type=jnp.float32)
                h = jnp.clip(h * s1_ref[...], 0.0, 6.0)    # bias via indicator channel
                return h.reshape(xb.shape[:-1] + (CH,))
            return xb.astype(jnp.float32)      # expand_ratio == 1: hidden == input

        acc = jnp.zeros((TR, Wq, CH), jnp.float32)
        if stride == 1:
            h = expand(x_ref[pl.ds(row0, TR + 2), :, :])       # (TR+2, Wp, CH)
            hs = [h[:, dj:dj + Wq, :] for dj in range(3)]      # 3 width shifts, hoisted
            for di in range(3):
                for dj in range(3):
                    acc = acc + hs[dj][di:di + TR] * wd_ref[di * 3 + dj, :]
        else:
            # One stacked expand matmul over all 4 parity planes.
            h = expand(x_ref[:, pl.ds(row0, TR + 1), :, :])    # (4, TR+1, Bq, CH)
            PAR, OFF = (0, 1, 0), (0, 0, 1)
            cols = {}
            for pr in (0, 1):
                for pc, oc in ((0, 0), (1, 0), (0, 1)):        # only needed (pc, col-off)
                    cols[(pr, pc, oc)] = h[2 * pr + pc, :, oc:oc + Wq, :]
            for di in range(3):
                for dj in range(3):
                    tap = cols[(PAR[di], PAR[dj], OFF[dj])][OFF[di]:OFF[di] + TR]
                    acc = acc + tap * wd_ref[di * 3 + dj, :]

        y = jnp.clip(acc * s2_ref[...] + b2_ref[...], 0.0, 6.0)          # BN2 + ReLU6
        y2 = jnp.dot(y.reshape(TR * Wq, CH).astype(jnp.bfloat16), w2_ref[...],
                     preferred_element_type=jnp.float32)
        y2 = y2 * s3_ref[...] + b3_ref[...]                              # BN3
        out = y2.reshape(TR, Wq, cout_p)
        if use_res:
            out = out + res_ref[...]
        o_ref[...] = out.astype(o_ref.dtype)   # lane/sublane-dense (Wq x cout_p) store

    y = pl.pallas_call(
        kernel,
        grid=(N, n_bands),
        in_specs=in_specs,
        out_specs=pl.BlockSpec((None, TR, Wq, cout_p), lambda n, b: (n, b, 0, 0)),
        out_shape=jax.ShapeDtypeStruct((N, Hr, Wq, cout_p), x.dtype),
        compiler_params=pltpu.CompilerParams(
            dimension_semantics=("parallel", "parallel"),   # megacore / v7x 2-TC split
            # Explicit scoped-VMEM budget; raise (<= physical: 64 MiB on v7x) for
            # larger images / bigger TR.
            vmem_limit_bytes=32 * 1024 * 1024),
    )(*args)

    y = y[:, :Ho, :Wo, :cout]                  # crop padded width / channels
    return jnp.transpose(y, (0, 3, 1, 2))      # NHWC -> NCHW
    # TODO(synk): on v6e/v7x the depthwise taps could run in bf16 (halves vreg
    # pressure); kept f32 for v5e compatibility (no bf16 VALU) and tighter parity.


# ---------------------------------------------------------------------------
# Deterministic parameter init (covers both expand_ratio branches)
# ---------------------------------------------------------------------------

def init_params(key, inp, oup, expand_ratio):
    hidden = int(round(inp * expand_ratio))
    ks = jax.random.split(key, 6)

    def bn_params(k, c):
        k1, k2, k3, k4 = jax.random.split(k, 4)
        gamma = 1.0 + 0.1 * jax.random.normal(k1, (c,), jnp.float32)
        beta = 0.1 * jax.random.normal(k2, (c,), jnp.float32)
        mean = 0.1 * jax.random.normal(k3, (c,), jnp.float32)
        var = 1.0 + 0.1 * jnp.abs(jax.random.normal(k4, (c,), jnp.float32))
        return gamma, beta, mean, var

    # PyTorch conv weight layouts (OIHW / depthwise O,1,kh,kw) for the reference.
    w1 = 0.1 * jax.random.normal(ks[0], (hidden, inp, 1, 1), jnp.float32)
    wd = 0.1 * jax.random.normal(ks[1], (hidden, 1, 3, 3), jnp.float32)
    w2 = 0.1 * jax.random.normal(ks[2], (oup, hidden, 1, 1), jnp.float32)
    bn1 = bn_params(ks[3], hidden)
    bn2 = bn_params(ks[4], hidden)
    bn3 = bn_params(ks[5], oup)

    torch_params = {"w1": w1, "wd": wd, "w2": w2, "bn1": bn1, "bn2": bn2, "bn3": bn3}

    def fold(bn, eps=1e-5):
        g, b, m, v = bn
        s = g / jnp.sqrt(v + eps)
        return s, b - m * s

    s1, b1 = fold(bn1)
    s2, b2 = fold(bn2)
    s3, b3 = fold(bn3)
    kernel_params = {
        "pw_exp_w": jnp.transpose(w1[:, :, 0, 0], (1, 0)),   # (inp, hidden)
        "pw_exp_scale": s1, "pw_exp_bias": b1,
        "dw_w": jnp.transpose(wd[:, 0, :, :], (1, 2, 0)),    # (3, 3, hidden)
        "dw_scale": s2, "dw_bias": b2,
        "pw_proj_w": jnp.transpose(w2[:, :, 0, 0], (1, 0)),  # (hidden, oup)
        "pw_proj_scale": s3, "pw_proj_bias": b3,
    }
    return torch_params, kernel_params


# ---------------------------------------------------------------------------
# Pure-JAX reference mirroring the PyTorch module (NCHW).  With match_bf16=True
# the conv/matmul operands are rounded to bf16 exactly where the kernel does
# (standard TPU mixed precision), so a tight parity check is possible.
# ---------------------------------------------------------------------------

def torch_reference(x, tp, stride, expand_ratio, eps=1e-5, match_bf16=True):
    f32 = jnp.float32
    q = (lambda a: a.astype(jnp.bfloat16).astype(f32)) if match_bf16 else (lambda a: a)

    def bn(y, g, b, m, v):
        g = g.reshape(1, -1, 1, 1)
        b = b.reshape(1, -1, 1, 1)
        m = m.reshape(1, -1, 1, 1)
        v = v.reshape(1, -1, 1, 1)
        return (y - m) / jnp.sqrt(v + eps) * g + b

    def conv(y, w, stride=1, groups=1, pad=0):
        return lax.conv_general_dilated(
            y, w, (stride, stride), [(pad, pad), (pad, pad)],
            feature_group_count=groups,
            dimension_numbers=("NCHW", "OIHW", "NCHW"),
            precision=lax.Precision.HIGHEST)

    relu6 = lambda y: jnp.clip(y, 0.0, 6.0)

    h = q(x)                                   # conv-path input (kernel stores bf16)
    if expand_ratio != 1:
        h = relu6(bn(conv(h, q(tp["w1"])), *tp["bn1"]))
    h = relu6(bn(conv(h, tp["wd"], stride=stride, groups=tp["wd"].shape[0], pad=1),
                 *tp["bn2"]))
    h = bn(conv(q(h), q(tp["w2"])), *tp["bn3"])
    if stride == 1 and x.shape[1] == h.shape[1]:
        h = x + h                              # residual stays f32 (matches kernel)
    return h


# ---------------------------------------------------------------------------

if __name__ == "__main__":
    key = jax.random.PRNGKey(0)

    # (inp, oup, stride, expand_ratio): residual path, stride-2 path, expand==1 path.
    configs = [
        (8, 8, 1, 6),
        (8, 16, 2, 6),
        (16, 16, 1, 1),
    ]
    N, H, W = 2, 16, 16

    for idx, (inp, oup, stride, er) in enumerate(configs):
        kx, kp, key = jax.random.split(key, 3)
        x = jax.random.normal(kx, (N, inp, H, W), jnp.float32)
        torch_params, kernel_params = init_params(kp, inp, oup, er)

        y = inverted_residual(x, kernel_params, stride=stride, expand_ratio=er)
        y = jax.block_until_ready(y)

        y_ref = torch_reference(x, torch_params, stride, er, match_bf16=True)
        if y.shape != y_ref.shape:
            raise SystemExit(f"config {idx}: shape mismatch {y.shape} vs {y_ref.shape}")
        if not jnp.allclose(y, y_ref, atol=1e-2, rtol=1e-2):
            err = float(jnp.max(jnp.abs(y - y_ref)))
            raise SystemExit(f"config {idx}: mismatch vs reference (max abs err {err})")

    print("KERNEL_OK")
</pallas_src>

<mosaic_0001>
module attributes {stable_mosaic.version = 11 : i64} {
  func.func @kernel(%arg0: i32, %arg1: i32, %arg2: memref<1x18x24x9xbf16, #tpu.memory_space<vmem>>, %arg3: memref<9x128xbf16, #tpu.memory_space<vmem>>, %arg4: memref<1x128xf32, #tpu.memory_space<vmem>>, %arg5: memref<9x128xf32, #tpu.memory_space<vmem>>, %arg6: memref<1x128xf32, #tpu.memory_space<vmem>>, %arg7: memref<1x128xf32, #tpu.memory_space<vmem>>, %arg8: memref<128x128xbf16, #tpu.memory_space<vmem>>, %arg9: memref<1x128xf32, #tpu.memory_space<vmem>>, %arg10: memref<1x128xf32, #tpu.memory_space<vmem>>, %arg11: memref<1x16x16x128xf32, #tpu.memory_space<vmem>>, %arg12: memref<1x16x16x128xf32, #tpu.memory_space<vmem>>) attributes {dimension_semantics = [#tpu.dimension_semantics<parallel>, #tpu.dimension_semantics<parallel>], iteration_bounds = array<i64: 2, 1>, scalar_prefetch = 0 : i64, scratch_operands = 0 : i64, tpu.core_type = #tpu.core_type<tc>, window_params = [{transform_indices = @transform_0, window_bounds = array<i64: 1, 18, 24, 9>}, {pipeline_mode = #tpu.pipeline_mode<synchronous>, transform_indices = @transform_1, window_bounds = array<i64: 9, 128>}, {pipeline_mode = #tpu.pipeline_mode<synchronous>, transform_indices = @transform_2, window_bounds = array<i64: 1, 128>}, {pipeline_mode = #tpu.pipeline_mode<synchronous>, transform_indices = @transform_3, window_bounds = array<i64: 9, 128>}, {pipeline_mode = #tpu.pipeline_mode<synchronous>, transform_indices = @transform_4, window_bounds = array<i64: 1, 128>}, {pipeline_mode = #tpu.pipeline_mode<synchronous>, transform_indices = @transform_5, window_bounds = array<i64: 1, 128>}, {pipeline_mode = #tpu.pipeline_mode<synchronous>, transform_indices = @transform_6, window_bounds = array<i64: 128, 128>}, {pipeline_mode = #tpu.pipeline_mode<synchronous>, transform_indices = @transform_7, window_bounds = array<i64: 1, 128>}, {pipeline_mode = #tpu.pipeline_mode<synchronous>, transform_indices = @transform_8, window_bounds = array<i64: 1, 128>}, {transform_indices = @transform_9, window_bounds = array<i64: 1, 16, 16, 128>}, {transform_indices = @transform_10, window_bounds = array<i64: 1, 16, 16, 128>}]} {
    %c16_i32 = arith.constant 16 : i32
    %0 = arith.muli %arg1, %c16_i32 : i32
    %1 = tpu.assume_multiple %0, 16 : i32
    %cst = arith.constant 0.000000e+00 : f32
    %2 = vector.broadcast %cst : f32 to vector<16x16x128xf32>
    %c0 = arith.constant 0 : index
    %3 = arith.index_cast %1 : i32 to index
    %c0_0 = arith.constant 0 : index
    %c0_1 = arith.constant 0 : index
    %4 = vector.load %arg2[%c0, %3, %c0_0, %c0_1] : memref<1x18x24x9xbf16, #tpu.memory_space<vmem>>, vector<1x18x24x9xbf16>
    %5 = vector.shape_cast %4 : vector<1x18x24x9xbf16> to vector<18x24x9xbf16>
    %6 = vector.shape_cast %5 : vector<18x24x9xbf16> to vector<432x9xbf16>
    %c0_2 = arith.constant 0 : index
    %c0_3 = arith.constant 0 : index
    %7 = vector.load %arg3[%c0_2, %c0_3] : memref<9x128xbf16, #tpu.memory_space<vmem>>, vector<9x128xbf16>
    %cst_4 = arith.constant dense<0.000000e+00> : vector<432x128xf32>
    %8 = tpu.matmul %6, %7, %cst_4 {dimension_numbers = #tpu.dot_dimension_numbers<[1], [0], [0], [1], [0, 0, 1, 1], [], []>} : vector<432x9xbf16>, vector<9x128xbf16>, vector<432x128xf32> -> vector<432x128xf32>
    %c0_5 = arith.constant 0 : index
    %c0_6 = arith.constant 0 : index
    %9 = vector.load %arg4[%c0_5, %c0_6] : memref<1x128xf32, #tpu.memory_space<vmem>>, vector<1x128xf32>
    %10 = vector.broadcast %9 : vector<1x128xf32> to vector<432x128xf32>
    %11 = arith.mulf %8, %10 : vector<432x128xf32>
    %cst_7 = arith.constant 0.000000e+00 : f32
    %cst_8 = arith.constant 6.000000e+00 : f32
    %12 = vector.broadcast %cst_7 : f32 to vector<432x128xf32>
    %13 = arith.maximumf %12, %11 : vector<432x128xf32>
    %14 = vector.broadcast %cst_8 : f32 to vector<432x128xf32>
    %15 = arith.minimumf %14, %13 : vector<432x128xf32>
    %16 = vector.shape_cast %15 : vector<432x128xf32> to vector<18x24x128xf32>
    %17 = vector.extract_strided_slice %16 {offsets = [0, 0, 0], sizes = [18, 16, 128], strides = [1, 1, 1]} : vector<18x24x128xf32> to vector<18x16x128xf32>
    %18 = vector.extract_strided_slice %16 {offsets = [0, 1, 0], sizes = [18, 16, 128], strides = [1, 1, 1]} : vector<18x24x128xf32> to vector<18x16x128xf32>
    %19 = vector.extract_strided_slice %16 {offsets = [0, 2, 0], sizes = [18, 16, 128], strides = [1, 1, 1]} : vector<18x24x128xf32> to vector<18x16x128xf32>
    %20 = vector.extract_strided_slice %17 {offsets = [0, 0, 0], sizes = [16, 16, 128], strides = [1, 1, 1]} : vector<18x16x128xf32> to vector<16x16x128xf32>
    %c0_9 = arith.constant 0 : index
    %c0_10 = arith.constant 0 : index
    %21 = vector.load %arg5[%c0_9, %c0_10] : memref<9x128xf32, #tpu.memory_space<vmem>>, vector<1x128xf32>
    %22 = vector.shape_cast %21 : vector<1x128xf32> to vector<128xf32>
    %23 = vector.shape_cast %22 : vector<128xf32> to vector<1x1x128xf32>
    %24 = vector.broadcast %23 : vector<1x1x128xf32> to vector<16x16x128xf32>
    %25 = arith.mulf %20, %24 : vector<16x16x128xf32>
    %26 = arith.addf %2, %25 : vector<16x16x128xf32>
    %27 = vector.extract_strided_slice %18 {offsets = [0, 0, 0], sizes = [16, 16, 128], strides = [1, 1, 1]} : vector<18x16x128xf32> to vector<16x16x128xf32>
    %c1 = arith.constant 1 : index
    %c0_11 = arith.constant 0 : index
    %28 = vector.load %arg5[%c1, %c0_11] : memref<9x128xf32, #tpu.memory_space<vmem>>, vector<1x128xf32>
    %29 = vector.shape_cast %28 : vector<1x128xf32> to vector<128xf32>
    %30 = vector.shape_cast %29 : vector<128xf32> to vector<1x1x128xf32>
    %31 = vector.broadcast %30 : vector<1x1x128xf32> to vector<16x16x128xf32>
    %32 = arith.mulf %27, %31 : vector<16x16x128xf32>
    %33 = arith.addf %26, %32 : vector<16x16x128xf32>
    %34 = vector.extract_strided_slice %19 {offsets = [0, 0, 0], sizes = [16, 16, 128], strides = [1, 1, 1]} : vector<18x16x128xf32> to vector<16x16x128xf32>
    %c2 = arith.constant 2 : index
    %c0_12 = arith.constant 0 : index
    %35 = vector.load %arg5[%c2, %c0_12] : memref<9x128xf32, #tpu.memory_space<vmem>>, vector<1x128xf32>
    %36 = vector.shape_cast %35 : vector<1x128xf32> to vector<128xf32>
    %37 = vector.shape_cast %36 : vector<128xf32> to vector<1x1x128xf32>
    %38 = vector.broadcast %37 : vector<1x1x128xf32> to vector<16x16x128xf32>
    %39 = arith.mulf %34, %38 : vector<16x16x128xf32>
    %40 = arith.addf %33, %39 : vector<16x16x128xf32>
    %41 = vector.extract_strided_slice %17 {offsets = [1, 0, 0], sizes = [16, 16, 128], strides = [1, 1, 1]} : vector<18x16x128xf32> to vector<16x16x128xf32>
    %c3 = arith.constant 3 : index
    %c0_13 = arith.constant 0 : index
    %42 = vector.load %arg5[%c3, %c0_13] : memref<9x128xf32, #tpu.memory_space<vmem>>, vector<1x128xf32>
    %43 = vector.shape_cast %42 : vector<1x128xf32> to vector<128xf32>
    %44 = vector.shape_cast %43 : vector<128xf32> to vector<1x1x128xf32>
    %45 = vector.broadcast %44 : vector<1x1x128xf32> to vector<16x16x128xf32>
    %46 = arith.mulf %41, %45 : vector<16x16x128xf32>
    %47 = arith.addf %40, %46 : vector<16x16x128xf32>
    %48 = vector.extract_strided_slice %18 {offsets = [1, 0, 0], sizes = [16, 16, 128], strides = [1, 1, 1]} : vector<18x16x128xf32> to vector<16x16x128xf32>
    %c4 = arith.constant 4 : index
    %c0_14 = arith.constant 0 : index
    %49 = vector.load %arg5[%c4, %c0_14] : memref<9x128xf32, #tpu.memory_space<vmem>>, vector<1x128xf32>
    %50 = vector.shape_cast %49 : vector<1x128xf32> to vector<128xf32>
    %51 = vector.shape_cast %50 : vector<128xf32> to vector<1x1x128xf32>
    %52 = vector.broadcast %51 : vector<1x1x128xf32> to vector<16x16x128xf32>
    %53 = arith.mulf %48, %52 : vector<16x16x128xf32>
    %54 = arith.addf %47, %53 : vector<16x16x128xf32>
    %55 = vector.extract_strided_slice %19 {offsets = [1, 0, 0], sizes = [16, 16, 128], strides = [1, 1, 1]} : vector<18x16x128xf32> to vector<16x16x128xf32>
    %c5 = arith.constant 5 : index
    %c0_15 = arith.constant 0 : index
    %56 = vector.load %arg5[%c5, %c0_15] : memref<9x128xf32, #tpu.memory_space<vmem>>, vector<1x128xf32>
    %57 = vector.shape_cast %56 : vector<1x128xf32> to vector<128xf32>
    %58 = vector.shape_cast %57 : vector<128xf32> to vector<1x1x128xf32>
    %59 = vector.broadcast %58 : vector<1x1x128xf32> to vector<16x16x128xf32>
    %60 = arith.mulf %55, %59 : vector<16x16x128xf32>
    %61 = arith.addf %54, %60 : vector<16x16x128xf32>
    %62 = vector.extract_strided_slice %17 {offsets = [2, 0, 0], sizes = [16, 16, 128], strides = [1, 1, 1]} : vector<18x16x128xf32> to vector<16x16x128xf32>
    %c6 = arith.constant 6 : index
    %c0_16 = arith.constant 0 : index
    %63 = vector.load %arg5[%c6, %c0_16] : memref<9x128xf32, #tpu.memory_space<vmem>>, vector<1x128xf32>
    %64 = vector.shape_cast %63 : vector<1x128xf32> to vector<128xf32>
    %65 = vector.shape_cast %64 : vector<128xf32> to vector<1x1x128xf32>
    %66 = vector.broadcast %65 : vector<1x1x128xf32> to vector<16x16x128xf32>
    %67 = arith.mulf %62, %66 : vector<16x16x128xf32>
    %68 = arith.addf %61, %67 : vector<16x16x128xf32>
    %69 = vector.extract_strided_slice %18 {offsets = [2, 0, 0], sizes = [16, 16, 128], strides = [1, 1, 1]} : vector<18x16x128xf32> to vector<16x16x128xf32>
    %c7 = arith.constant 7 : index
    %c0_17 = arith.constant 0 : index
    %70 = vector.load %arg5[%c7, %c0_17] : memref<9x128xf32, #tpu.memory_space<vmem>>, vector<1x128xf32>
    %71 = vector.shape_cast %70 : vector<1x128xf32> to vector<128xf32>
    %72 = vector.shape_cast %71 : vector<128xf32> to vector<1x1x128xf32>
    %73 = vector.broadcast %72 : vector<1x1x128xf32> to vector<16x16x128xf32>
    %74 = arith.mulf %69, %73 : vector<16x16x128xf32>
    %75 = arith.addf %68, %74 : vector<16x16x128xf32>
    %76 = vector.extract_strided_slice %19 {offsets = [2, 0, 0], sizes = [16, 16, 128], strides = [1, 1, 1]} : vector<18x16x128xf32> to vector<16x16x128xf32>
    %c8 = arith.constant 8 : index
    %c0_18 = arith.constant 0 : index
    %77 = vector.load %arg5[%c8, %c0_18] : memref<9x128xf32, #tpu.memory_space<vmem>>, vector<1x128xf32>
    %78 = vector.shape_cast %77 : vector<1x128xf32> to vector<128xf32>
    %79 = vector.shape_cast %78 : vector<128xf32> to vector<1x1x128xf32>
    %80 = vector.broadcast %79 : vector<1x1x128xf32> to vector<16x16x128xf32>
    %81 = arith.mulf %76, %80 : vector<16x16x128xf32>
    %82 = arith.addf %75, %81 : vector<16x16x128xf32>
    %c0_19 = arith.constant 0 : index
    %c0_20 = arith.constant 0 : index
    %83 = vector.load %arg6[%c0_19, %c0_20] : memref<1x128xf32, #tpu.memory_space<vmem>>, vector<1x128xf32>
    %84 = vector.shape_cast %83 : vector<1x128xf32> to vector<1x1x128xf32>
    %85 = vector.broadcast %84 : vector<1x1x128xf32> to vector<16x16x128xf32>
    %86 = arith.mulf %82, %85 : vector<16x16x128xf32>
    %c0_21 = arith.constant 0 : index
    %c0_22 = arith.constant 0 : index
    %87 = vector.load %arg7[%c0_21, %c0_22] : memref<1x128xf32, #tpu.memory_space<vmem>>, vector<1x128xf32>
    %88 = vector.shape_cast %87 : vector<1x128xf32> to vector<1x1x128xf32>
    %89 = vector.broadcast %88 : vector<1x1x128xf32> to vector<16x16x128xf32>
    %90 = arith.addf %86, %89 : vector<16x16x128xf32>
    %cst_23 = arith.constant 0.000000e+00 : f32
    %cst_24 = arith.constant 6.000000e+00 : f32
    %91 = vector.broadcast %cst_23 : f32 to vector<16x16x128xf32>
    %92 = arith.maximumf %91, %90 : vector<16x16x128xf32>
    %93 = vector.broadcast %cst_24 : f32 to vector<16x16x128xf32>
    %94 = arith.minimumf %93, %92 : vector<16x16x128xf32>
    %95 = vector.shape_cast %94 : vector<16x16x128xf32> to vector<256x128xf32>
    %96 = arith.truncf %95 : vector<256x128xf32> to vector<256x128xbf16>
    %c0_25 = arith.constant 0 : index
    %c0_26 = arith.constant 0 : index
    %97 = vector.load %arg8[%c0_25, %c0_26] : memref<128x128xbf16, #tpu.memory_space<vmem>>, vector<128x128xbf16>
    %cst_27 = arith.constant dense<0.000000e+00> : vector<256x128xf32>
    %98 = tpu.matmul %96, %97, %cst_27 {dimension_numbers = #tpu.dot_dimension_numbers<[1], [0], [0], [1], [0, 0, 1, 1], [], []>} : vector<256x128xbf16>, vector<128x128xbf16>, vector<256x128xf32> -> vector<256x128xf32>
    %c0_28 = arith.constant 0 : index
    %c0_29 = arith.constant 0 : index
    %99 = vector.load %arg9[%c0_28, %c0_29] : memref<1x128xf32, #tpu.memory_space<vmem>>, vector<1x128xf32>
    %100 = vector.broadcast %99 : vector<1x128xf32> to vector<256x128xf32>
    %101 = arith.mulf %98, %100 : vector<256x128xf32>
    %c0_30 = arith.constant 0 : index
    %c0_31 = arith.constant 0 : index
    %102 = vector.load %arg10[%c0_30, %c0_31] : memref<1x128xf32, #tpu.memory_space<vmem>>, vector<1x128xf32>
    %103 = vector.broadcast %102 : vector<1x128xf32> to vector<256x128xf32>
    %104 = arith.addf %101, %103 : vector<256x128xf32>
    %105 = vector.shape_cast %104 : vector<256x128xf32> to vector<16x16x128xf32>
    %c0_32 = arith.constant 0 : index
    %c0_33 = arith.constant 0 : index
    %c0_34 = arith.constant 0 : index
    %c0_35 = arith.constant 0 : index
    %106 = vector.load %arg11[%c0_32, %c0_33, %c0_34, %c0_35] : memref<1x16x16x128xf32, #tpu.memory_space<vmem>>, vector<1x16x16x128xf32>
    %107 = vector.shape_cast %106 : vector<1x16x16x128xf32> to vector<16x16x128xf32>
    %108 = arith.addf %105, %107 : vector<16x16x128xf32>
    %c0_36 = arith.constant 0 : index
    %c0_37 = arith.constant 0 : index
    %c0_38 = arith.constant 0 : index
    %c0_39 = arith.constant 0 : index
    %109 = vector.load %arg12[%c0_36, %c0_37, %c0_38, %c0_39] : memref<1x16x16x128xf32, #tpu.memory_space<vmem>>, vector<1x16x16x128xf32>
    %110 = vector.shape_cast %109 : vector<1x16x16x128xf32> to vector<16x16x128xf32>
    %111 = vector.shape_cast %108 : vector<16x16x128xf32> to vector<1x16x16x128xf32>
    tpu.vector_store %arg12[%c0_36, %c0_37, %c0_38, %c0_39], %111 {strides = array<i32>} : memref<1x16x16x128xf32, #tpu.memory_space<vmem>>, vector<1x16x16x128xf32>,
    return
  }
  func.func @transform_0(%arg0: i32, %arg1: i32) -> (i32, i32, i32, i32) {
    %c0_i32 = arith.constant 0 : i32
    %c0_i32_0 = arith.constant 0 : i32
    %c0_i32_1 = arith.constant 0 : i32
    %c0_i32_2 = arith.constant 0 : i32
    return %arg0, %c0_i32, %c0_i32_0, %c0_i32_1 : i32, i32, i32, i32
  }
  func.func @transform_1(%arg0: i32, %arg1: i32) -> (i32, i32) {
    %c0_i32 = arith.constant 0 : i32
    %c0_i32_0 = arith.constant 0 : i32
    %c0_i32_1 = arith.constant 0 : i32
    return %c0_i32, %c0_i32_0 : i32, i32
  }
  func.func @transform_2(%arg0: i32, %arg1: i32) -> (i32, i32) {
    %c0_i32 = arith.constant 0 : i32
    %c0_i32_0 = arith.constant 0 : i32
    %c0_i32_1 = arith.constant 0 : i32
    return %c0_i32, %c0_i32_0 : i32, i32
  }
  func.func @transform_3(%arg0: i32, %arg1: i32) -> (i32, i32) {
    %c0_i32 = arith.constant 0 : i32
    %c0_i32_0 = arith.constant 0 : i32
    %c0_i32_1 = arith.constant 0 : i32
    return %c0_i32, %c0_i32_0 : i32, i32
  }
  func.func @transform_4(%arg0: i32, %arg1: i32) -> (i32, i32) {
    %c0_i32 = arith.constant 0 : i32
    %c0_i32_0 = arith.constant 0 : i32
    %c0_i32_1 = arith.constant 0 : i32
    return %c0_i32, %c0_i32_0 : i32, i32
  }
  func.func @transform_5(%arg0: i32, %arg1: i32) -> (i32, i32) {
    %c0_i32 = arith.constant 0 : i32
    %c0_i32_0 = arith.constant 0 : i32
    %c0_i32_1 = arith.constant 0 : i32
    return %c0_i32, %c0_i32_0 : i32, i32
  }
  func.func @transform_6(%arg0: i32, %arg1: i32) -> (i32, i32) {
    %c0_i32 = arith.constant 0 : i32
    %c0_i32_0 = arith.constant 0 : i32
    %c0_i32_1 = arith.constant 0 : i32
    return %c0_i32, %c0_i32_0 : i32, i32
  }
  func.func @transform_7(%arg0: i32, %arg1: i32) -> (i32, i32) {
    %c0_i32 = arith.constant 0 : i32
    %c0_i32_0 = arith.constant 0 : i32
    %c0_i32_1 = arith.constant 0 : i32
    return %c0_i32, %c0_i32_0 : i32, i32
  }
  func.func @transform_8(%arg0: i32, %arg1: i32) -> (i32, i32) {
    %c0_i32 = arith.constant 0 : i32
    %c0_i32_0 = arith.constant 0 : i32
    %c0_i32_1 = arith.constant 0 : i32
    return %c0_i32, %c0_i32_0 : i32, i32
  }
  func.func @transform_9(%arg0: i32, %arg1: i32) -> (i32, i32, i32, i32) {
    %c0_i32 = arith.constant 0 : i32
    %c0_i32_0 = arith.constant 0 : i32
    %c0_i32_1 = arith.constant 0 : i32
    return %arg0, %arg1, %c0_i32, %c0_i32_0 : i32, i32, i32, i32
  }
  func.func @transform_10(%arg0: i32, %arg1: i32) -> (i32, i32, i32, i32) {
    %c0_i32 = arith.constant 0 : i32
    %c0_i32_0 = arith.constant 0 : i32
    %c0_i32_1 = arith.constant 0 : i32
    return %arg0, %arg1, %c0_i32, %c0_i32_0 : i32, i32, i32, i32
  }
}

</mosaic_0001>

<bundles_post_ra>
// kernel: tpu_custom_call.1
= control target key start
LH: loop header
LB: loop body
LE: loop exit
PB: predicated region body
PF: predicated region fallthrough
CT: control target
= control target key end

     0   :  { %s5920_s0 = inlined_call_operand.vmem [shape: bf16[2,18,24,9], index: 0, kind: input, shape index: {}]   ;;  %s5921_s1 = inlined_call_operand.vmem [shape: bf16[9,128], index: 1, kind: input, shape index: {}]   ;;  %s5922_s2 = inlined_call_operand.vmem [shape: f32[1,128], index: 2, kind: input, shape index: {}]   ;;  %s5923_s3 = inlined_call_operand.vmem [shape: f32[9,128], index: 3, kind: input, shape index: {}]   ;;  %s5924_s4 = inlined_call_operand.vmem [shape: f32[1,128], index: 4, kind: input, shape index: {}]   ;;  %s5925_s5 = inlined_call_operand.hbm [shape: f32[1,128], index: 5, kind: input, shape index: {}]   ;;  %s5926_s6 = inlined_call_operand.vmem [shape: bf16[128,128], index: 6, kind: input, shape index: {}]   ;;  %s5927_s7 = inlined_call_operand.hbm [shape: f32[1,128], index: 7, kind: input, shape index: {}]   ;;  %s5928_s8 = inlined_call_operand.hbm [shape: f32[1,128], index: 8, kind: input, shape index: {}]   ;;  %s5929_s9 = inlined_call_operand.vmem [shape: f32[2,16,16,128], index: 9, kind: input, shape index: {}]   ;;  %s5930_s10 = inlined_call_operand.hbm [shape: f32[2,16,16,128], index: 10, kind: output, shape index: {}]  }
   0x1   :  { %5996 = sst [smem:[#allocation69_spill]] %s5927_s7 }
   0x2   :  { %15 = vsyncpa [#allocation3], 0 }
   0x3   :  { %16 = vsyncpa [#allocation6], 0 }
   0x4   :  { %17 = vsyncpa [#allocation4], 0 }
   0x5   :  { %19 = vsyncpa [#allocation4 + $0x1], 0  ;;  %s3934_s13 = smov 0   ;;  %s3936_s14 = smov 0  }
   0x6   :  { %s3938_s15 = smov 0   ;;  %s3940_s16 = smov 0  }
   0x7   :  { %s3942_s17 = smov 0   ;;  %s3944_s18 = smov 0  }
   0x8 LB: > { %5997 = sst [smem:[#allocation12_spill]] %s3859_s15  ;;  %s3327_s19 = sadd.s32 4294967295, %s3871_s18   ;;  %s3871_s18 = sphi %s3944_s18, %s25_s18   ;;  %s3867_s17 = sphi %s3942_s17, %s6170_s17   ;;  %s3863_s16 = sphi %s3940_s16, %s6166_s16   ;;  %s3859_s15 = sphi %s3938_s15, %s6165_s15   ;;  %s3855_s14 = sphi %s3936_s14, %s6169_s14   ;;  %s3851_s13 = sphi %s3934_s13, %s6168_s13  }
   0x9   : > { %5998 = sst [smem:[#allocation13_spill]] %s3867_s17  ;;  %s3328_s20 = sadd.s32 4294967294, %s3871_s18  }
   0xa   : > { %s37_s21 = sadd.s32 1, %s3867_s17  ;;  %s268_s22 = sadd.s32 1, %s3859_s15 }
   0xb   : > { %p39_p0 = scmp.ge.s32.totalorder %s37_s21, 2  ;;  %p278_p1 = scmp.ne.s32.totalorder %s3859_s15, %s3855_s14 }
   0xc   : > { %p279_p2 = scmp.eq.s32.totalorder %s3327_s19, 1  ;;  %p284_p3 = scmp.ne.s32.totalorder %s3855_s14, %s3851_s13 }
   0xd   : > { %s6172_s21 = smov (%p39_p0, %s37_s21), 0  ;;  %p285_p5 = scmp.eq.s32.totalorder %s3328_s20, 1 }
   0xe   : > { %5999 = sst [smem:[#allocation14_spill]] %s6172_s21  ;;  %p3974_p4 = por %p279_p2, %p278_p1 }
   0xf   : > { %s263_s24 = ssub.s32 %s3867_s17, %s6172_s21  ;;  %p3329_p6 = scmp.ge.s32.totalorder %s3871_s18, 1 }
  0x10   : > { %p266_p7 = scmp.eq.s32.totalorder %s263_s24, 0  ;;  %p3981_p8 = por %p285_p5, %p284_p3 }
  0x11   : > { %p292_p9 = scmp.lt.s32.totalorder %s3871_s18, 3  ;;  %p3993_p11 = scmp.eq.s32.totalorder %s3327_s19, 0 }
  0x12   : > { %s3987_s26 = scalar_select %p266_p7, %s3859_s15, %s268_s22  }
  0x13   : > { %p3989_p10 = pnand %p3329_p6, %p292_p9  ;;  %s6005_s7 = sld [smem:[#allocation69_spill]] }
  0x14   : > { %6002 = sst [smem:[#allocation15_spill]] %s3987_s26  ;;  %s3873_s12 = smov [#allocation5]  }
  0x15   : > { %p3581_p12 = pneg %p3989_p10  ;;  %s333_s20 = sshll.u32 %s3873_s12, 4  ;;  %s334_s20 = int_to_ptr.vmem [resolvable:$true] %s333_s20 }
  0x16   : > { %s316_s29 = sshll.u32 %s5925_s5, 4  ;;  %s343_s12 = sshll.u32 %s5928_s8, 4  ;;  %s317_s29 = int_to_ptr.hbm [resolvable:$true] %s316_s29  ;;  %s344_s12 = int_to_ptr.hbm [resolvable:$true] %s343_s12 }
  0x17   : > { %p4004_p13 = pnand %p3993_p11, %p3581_p12  ;;  %s3874_s21 = smov [#allocation2]  }
  0x18   : > { %s318_s17 = sshll.u32 %s3874_s21, 4  ;;  %s3875_s26 = smov [#allocation7]   ;;  %s319_s17 = int_to_ptr.vmem [resolvable:$true] %s318_s17 }
  0x19   : > { %s331_s11 = sshll.u32 %s6005_s7, 4  ;;  %s345_s15 = sshll.u32 %s3875_s26, 4  ;;  %s332_s11 = int_to_ptr.hbm [resolvable:$true] %s331_s11  ;;  %s346_s15 = int_to_ptr.vmem [resolvable:$true] %s345_s15 }
  0x1a   : > { %3587 = dma.hbm_to_vmem [thread:$0]  (!%p4004_p13), %s332_s11, 16, %s334_s20, [#allocation6]  }
  0x1b   : > { %3584 = dma.hbm_to_vmem [thread:$0]  (!%p4004_p13), %s317_s29, 16, %s319_s17, [#allocation3]  }
  0x1c   : > { %3590 = dma.hbm_to_vmem [thread:$0]  (!%p4004_p13), %s344_s12, 16, %s346_s15, [#allocation6]  }
  0x1d   : > { %380 = sbr.rel (%p3989_p10) target bundleno = 720 (0x2d0), region = 60 }
  0x22   : > { %3838 = dma.done.wait (%p3993_p11), [#allocation3], 16  }
  0x23   : > { %3840 = vsyncadd (%p3993_p11), [#allocation3], 4294967280 }
  0x24   : > { %3842 = dma.done.wait (%p3993_p11), [#allocation6], 32  }
  0x25   : > { %3844 = vsyncadd (%p3993_p11), [#allocation6], 4294967264  ;;  %p439_p0 = scmp.lt.s32.totalorder %s3863_s16, 1  ;;  %vm739_vm0 = vcmask 1043456   ;;  %vm740_vm1 = vcmask 1044480   ;;  %v3876_v0 = vmov 65535  }
  0x26   : > { %v741_v1 = vsel %vm739_vm0, 4294967295, %v3876_v0  ;;  %v3452_v2 = vld [vmem:[%s5921_s1] sm:$0xf]  ;;  %v3546_v3 = vld [vmem:[%s5921_s1] sm:$0x10]  ;;  %vm657_vm2 = vcmask 72704  }
  0x27   : > { %s4032_s7 = scalar_select %p439_p0, %s3863_s16, 1  ;;  %v742_v4 = vsel %vm740_vm1, %v741_v1, 0  ;;  %v3453_v5 = vor.u32 %v3546_v3, %v3452_v2  ;;  %v4087_v29 = vld [vmem:[%s5922_s2] ss:$0 sm:$0xff]  ;;  %v4101_v44 = vld [vmem:[%s5923_s3 + $0x1] ss:$0 sm:$0xff] }
  0x28   : > { %v3554_v51 = vld [vmem:[%s5926_s6 + $0x38] sm:$0xff]  ;;  %v4113_v52 = vld [vmem:[%s5923_s3] ss:$0 sm:$0xff]  ;;  %v4118_v53 = vld [vmem:[%s5923_s3 + $0x2] ss:$0 sm:$0xff]  ;;  %vm1220_vm3 = vcmask 1046528  }
  0x29   : > { %s3566_s15 = smul.u32 216, %s4032_s7  ;;  %v744_v8 = vand.u32 %v3453_v5, %v742_v4  ;;  %2924 = vmatpush.bf16.msra.mxu1 %v3554_v51  ;;  %v3553_v3 = vld [vmem:[%s5926_s6 + $0x30] sm:$0xff]  ;;  %vm1463_vm4 = vcmask 1045504   ;;  %s3518_s12 = sshll.u32 %s4032_s7, 8 }
  0x2a   : > { %s436_s7 = sand.u32 1, %s3855_s14   ;;  %s5280_s21 = scalar_lea.vmem %s5929_s9, %s3518_s12 }
  0x2b   : > { %s4038_s26 = scalar_lea.vmem %s5920_s0, %s3566_s15  ;;  %753 = vmatpush.bf16.msra.mxu0 %v744_v8  ;;  %3556 = vmatpush.bf16.msra.mxu2 %v744_v8  ;;  %s3338_s27 = sshll.u32 %s436_s7, 8 }
  0x2c   : > { %v3519_v6 = vld [vmem:[%s4038_s26] sm:$0xff]  ;;  %3557 = vmatpush.bf16.msra.mxu3 %v744_v8  ;;  %v3520_v9 = vld [vmem:[%s4038_s26 + $0x8] sm:$0xff]  ;;  %v3521_v11 = vld [vmem:[%s4038_s26 + $0x10] sm:$0xff]  ;;  %s5324_s24 = scalar_lea.vmem [#allocation8], %s3338_s27  ;;  %s3555_s12 = sshll.u32 %s3863_s16, 8 }
  0x2d   : > { %v3531_v7 = vld [vmem:[%s4038_s26 + $0x60] sm:$0xff]  ;;  %v3532_v10 = vld [vmem:[%s4038_s26 + $0x68] sm:$0xff]  ;;  %v3533_v12 = vld [vmem:[%s4038_s26 + $0x70] sm:$0xff]  ;;  %2925 = vmatpush.bf16.msra.mxu1 %v3553_v3  ;;  %s3196_s27 = scalar_lea.hbm %s5930_s10, %s3555_s12  ;;  %s3197_s11 = sshll.u32 %s5324_s24, 4  ;;  %s3198_s11 = int_to_ptr.vmem [resolvable:$true] %s3197_s11 }
  0x2e   : > { %3454 = vmatmul.msk.bf16.vlgmr.msra.gmra.mxu0 %vm657_vm2, %v3519_v6  ;;  %3466 = vmatmul.msk.bf16.vlgmr.msra.gmra.mxu2 %vm657_vm2, %v3531_v7  ;;  %v3522_v13 = vld [vmem:[%s4038_s26 + $0x18] sm:$0xff]  ;;  %v3523_v15 = vld [vmem:[%s4038_s26 + $0x20] sm:$0xff]  ;;  %v3524_v17 = vld [vmem:[%s4038_s26 + $0x28] sm:$0xff]  ;;  %s3199_s28 = sshll.u32 %s3196_s27, 4  ;;  %s3182_s16 = scalar_lea.sflag [#allocation4], %s436_s7  ;;  %s3200_s28 = int_to_ptr.hbm [resolvable:$true] %s3199_s28 }
  0x2f   : > { %v3534_v14 = vld [vmem:[%s4038_s26 + $0x78] sm:$0xff]  ;;  %v3535_v16 = vld [vmem:[%s4038_s26 + $0x80] sm:$0xff]  ;;  %v3536_v18 = vld [vmem:[%s4038_s26 + $0x88] sm:$0xff]  ;;  %s3799_s20 = sshra.s32 %s3200_s28, 4  ;;  %s3805_s29 = scalar_lea.hbm %s5930_s10, 512  ;;  %s3800_s20 = int_to_ptr.hbm [resolvable:$true] %s3799_s20 }
  0x30   : > { %v3525_v19 = vld [vmem:[%s4038_s26 + $0x30] sm:$0xff]  ;;  %v3526_v21 = vld [vmem:[%s4038_s26 + $0x38] sm:$0xff]  ;;  %v3527_v23 = vld [vmem:[%s4038_s26 + $0x40] sm:$0xff]  ;;  %3558 = vmatpush.bf16.msrb.mxu3 %v3554_v51  ;;  %s3801_s22 = scalar_lea.hbm %s3800_s20, 256  ;;  %p3806_p5 = scmp.lt.s32.totalorder %s3800_s20, %s5930_s10 }
  0x31   : > { %v3537_v20 = vld [vmem:[%s4038_s26 + $0x90] sm:$0xff]  ;;  %v3538_v22 = vld [vmem:[%s4038_s26 + $0x98] sm:$0xff]  ;;  %v3539_v24 = vld [vmem:[%s4038_s26 + $0xa0] sm:$0xff]  ;;  %p3802_p1 = scmp.ne.s32.totalorder %s3800_s20, %s3801_s22  ;;  %p3807_p6 = scmp.lt.s32.totalorder %s3805_s29, %s3801_s22 }
  0x32   : > { %v3543_v25 = vld [vmem:[%s4038_s26 + $0xc0] sm:$0xff]  ;;  %v3528_v33 = vld [vmem:[%s4038_s26 + $0x48] sm:$0xff]  ;;  %v3529_v63 = vld [vmem:[%s4038_s26 + $0x50] sm:$0xff] }
  0x33   : > { %3478 = vmatmul.msk.bf16.vlgmr.msra.gmra.mxu3 %vm657_vm2, %v3543_v25  ;;  %v3540_v34 = vld [vmem:[%s4038_s26 + $0xa8] sm:$0xff]  ;;  %v3541_v1 = vld [vmem:[%s4038_s26 + $0xb0] sm:$0xff]  ;;  %p3803_p2 = pnand %p3802_p1, %p3974_p4  ;;  %p3808_p7 = por %p3807_p6, %p3806_p5 }
  0x34   : > { %v3544_v35 = vld [vmem:[%s4038_s26 + $0xc8] sm:$0xff]  ;;  %v3545_v2 = vld [vmem:[%s4038_s26 + $0xd0] sm:$0xff]  ;;  %3559 = vmatpush.bf16.msrb.mxu3 %v3553_v3 }
  0x35   : > { %p3804_p3 = pneg %p3803_p2 }
  0x37   : > { %p3809_p9 = pnand %p3808_p7, %p3804_p3 }
  0x3e   : > { %3455 = vmatmul.msk.bf16.gmra.mxu0 %vm657_vm2, %v3520_v9  ;;  %3467 = vmatmul.msk.bf16.gmra.mxu2 %vm657_vm2, %v3532_v10 }
  0x43   : > { %3479 = vmatmul.msk.bf16.gmra.mxu3 %vm657_vm2, %v3544_v35 }
  0x4e   : > { %3456 = vmatmul.msk.bf16.gmra.mxu0 %vm657_vm2, %v3521_v11  ;;  %3468 = vmatmul.msk.bf16.gmra.mxu2 %vm657_vm2, %v3533_v12 }
  0x53   : > { %3480 = vmatmul.msk.bf16.gmra.mxu3 %vm657_vm2, %v3545_v2 }
  0x5e   : > { %3457 = vmatmul.msk.bf16.gmra.mxu0 %vm657_vm2, %v3522_v13  ;;  %3469 = vmatmul.msk.bf16.gmra.mxu2 %vm657_vm2, %v3534_v14 }
  0x6e   : > { %3458 = vmatmul.msk.bf16.gmra.mxu0 %vm657_vm2, %v3523_v15  ;;  %3470 = vmatmul.msk.bf16.gmra.mxu2 %vm657_vm2, %v3535_v16 }
  0x7e   : > { %3459 = vmatmul.msk.bf16.gmra.mxu0 %vm657_vm2, %v3524_v17  ;;  %3471 = vmatmul.msk.bf16.gmra.mxu2 %vm657_vm2, %v3536_v18 }
  0x8e   : > { %3460 = vmatmul.msk.bf16.gmra.mxu0 %vm657_vm2, %v3525_v19  ;;  %3472 = vmatmul.msk.bf16.gmra.mxu2 %vm657_vm2, %v3537_v20  ;;  %v3552_v19 = vld [vmem:[%s5926_s6 + $0x28] sm:$0xff] }
  0x8f   : > { %2926 = vmatpush.bf16.msra.mxu1 %v3552_v19  ;;  %3560 = vmatpush.bf16.msrb.mxu3 %v3552_v19 }
  0x9e   : > { %3461 = vmatmul.msk.bf16.gmra.mxu0 %vm657_vm2, %v3526_v21  ;;  %3473 = vmatmul.msk.bf16.gmra.mxu2 %vm657_vm2, %v3538_v22  ;;  %v4148_v22 = vld [vmem:[%s5923_s3 + $0x4] ss:$0 sm:$0xff] }
  0xab   : > { %v755_v26 = vpop.f32.mrf.mxu0 }
  0xac   : > { %v894_v31 = vmul.f32 %v4087_v29, %v755_v26  ;;  %v4159_v26 = vld [vmem:[%s5923_s3 + $0x5] ss:$0 sm:$0xff] }
  0xae   : > { %3462 = vmatmul.msk.bf16.gmra.mxu0 %vm657_vm2, %v3527_v23  ;;  %3474 = vmatmul.msk.bf16.gmra.mxu2 %vm657_vm2, %v3539_v24  ;;  %v948_v39 = vmax.f32 %v894_v31, 0.0 }
  0xb0   : > { %v1002_v43 = vmin.f32 %v948_v39, 6.0  ;;  %v3551_v39 = vld [vmem:[%s5926_s6 + $0x20] sm:$0xff] }
  0xb1   : > { %v815_v27 = vpop.f32.mrf.mxu2  ;;  %2927 = vmatpush.bf16.msra.mxu1 %v3551_v39  ;;  %3561 = vmatpush.bf16.msrb.mxu3 %v3551_v39 }
  0xb2   : > { %v1124_v50 = vmul.f32 %v4101_v44, %v1002_v43  ;;  %v918_v56 = vmul.f32 %v4087_v29, %v815_v27  ;;  %v1058_v4 = vmul.f32 %v4113_v52, %v1002_v43  ;;  %v1367_v5 = vmul.f32 %v4118_v53, %v1002_v43 }
  0xb3   : > { %v757_v28 = vpop.f32.mrf.mxu0 }
  0xb4   : > { %v895_v30 = vmul.f32 %v4087_v29, %v757_v28  ;;  %v1221_v59 = vrot.slane %v1124_v50, 1  ;;  %v972_v9 = vmax.f32 %v918_v56, 0.0  ;;  %v1464_v20 = vrot.slane %v1367_v5, 2 }
  0xb6   : > { %v949_v36 = vmax.f32 %v895_v30, 0.0  ;;  %v4150_v24 = vmin.f32 %v972_v9, 6.0 }
  0xb8   : > { %v1003_v41 = vmin.f32 %v949_v36, 6.0  ;;  %6008 = vst [vmem:[#allocation17_spill] sm:$0xff] %v4150_v24 }
  0xb9   : > { %v817_v32 = vpop.f32.mrf.mxu2 }
  0xba   : > { %v1125_v46 = vmul.f32 %v4101_v44, %v1003_v41  ;;  %v1368_v60 = vmul.f32 %v4118_v53, %v1003_v41  ;;  %v919_v61 = vmul.f32 %v4087_v29, %v817_v32  ;;  %v1059_v13 = vmul.f32 %v4113_v52, %v1003_v41 }
  0xbb   : > { %v760_v37 = vpop.f32.mrf.mxu0 }
  0xbc   : > { %v896_v38 = vmul.f32 %v4087_v29, %v760_v37  ;;  %v1222_v54 = vrot.slane %v1125_v46, 1  ;;  %v1465_v14 = vrot.slane %v1368_v60, 2  ;;  %v973_v15 = vmax.f32 %v919_v61, 0.0  ;;  %v3550_v60 = vld [vmem:[%s5926_s6 + $0x18] sm:$0xff] }
  0xbd   : > { %2928 = vmatpush.bf16.msra.mxu1 %v3550_v60  ;;  %3562 = vmatpush.bf16.msrb.mxu3 %v3550_v60 }
  0xbe   : > { %v950_v40 = vmax.f32 %v896_v38, 0.0  ;;  %3463 = vmatmul.msk.bf16.gmra.mxu0 %vm657_vm2, %v3528_v33  ;;  %3475 = vmatmul.msk.bf16.gmra.mxu2 %vm657_vm2, %v3540_v34  ;;  %v1223_v6 = vsel %vm1220_vm3, %v1221_v59, %v1222_v54  ;;  %v1466_v28 = vsel %vm1463_vm4, %v1464_v20, %v1465_v14  ;;  %v4162_v30 = vmin.f32 %v973_v15, 6.0  ;;  %v4175_v33 = vld [vmem:[%s5923_s3 + $0x3] ss:$0 sm:$0xff]  ;;  %v3549_v15 = vld [vmem:[%s5926_s6 + $0x10] sm:$0xff] }
  0xbf   : > { %v1333_v16 = vadd.f32 %v1223_v6, %v1058_v4 }
  0xc0   : > { %v1004_v42 = vmin.f32 %v950_v40, 6.0  ;;  %6010 = vst [vmem:[#allocation19_spill] sm:$0xff] %v4162_v30 }
  0xc1   : > { %v820_v45 = vpop.f32.mrf.mxu2  ;;  %v1576_v35 = vadd.f32 %v1466_v28, %v1333_v16  ;;  %2929 = vmatpush.bf16.msra.mxu1 %v3549_v15  ;;  %3563 = vmatpush.bf16.msrb.mxu3 %v3549_v15 }
  0xc2   : > { %v1126_v48 = vmul.f32 %v4101_v44, %v1004_v42  ;;  %v920_v49 = vmul.f32 %v4087_v29, %v820_v45  ;;  %v1369_v0 = vmul.f32 %v4118_v53, %v1004_v42 }
  0xc3   : > { %v762_v47 = vpop.f32.mrf.mxu0 }
  0xc4   : > { %v897_v55 = vmul.f32 %v4087_v29, %v762_v47  ;;  %v1224_v57 = vrot.slane %v1126_v48, 1  ;;  %v974_v58 = vmax.f32 %v920_v49, 0.0  ;;  %v1467_v17 = vrot.slane %v1369_v0, 2 }
  0xc6   : > { %v951_v7 = vmax.f32 %v897_v55, 0.0  ;;  %v1225_v10 = vsel %vm1220_vm3, %v1222_v54, %v1224_v57  ;;  %v4135_v11 = vmin.f32 %v974_v58, 6.0  ;;  %v1468_v36 = vsel %vm1463_vm4, %v1465_v14, %v1467_v17  ;;  %v3530_v14 = vld [vmem:[%s4038_s26 + $0x58] sm:$0xff] }
  0xc7   : > { %v1334_v21 = vadd.f32 %v1225_v10, %v1059_v13 }
  0xc8   : > { %6007 = vst [vmem:[#allocation16_spill] sm:$0xff] %v4135_v11  ;;  %v1005_v23 = vmin.f32 %v951_v7, 6.0  ;;  %v4154_v25 = vmul.f32 %v4101_v44, %v4135_v11  ;;  %v4166_v31 = vmul.f32 %v4118_v53, %v4135_v11  ;;  %v4170_v32 = vmul.f32 %v4148_v22, %v4135_v11 }
  0xc9   : > { %v822_v62 = vpop.f32.mrf.mxu2  ;;  %v4180_v37 = vmul.f32 %v4159_v26, %v4135_v11  ;;  %v1577_v40 = vadd.f32 %v1468_v36, %v1334_v21 }
  0xca   : > { %6009 = vst [vmem:[#allocation18_spill] sm:$0xff] %v4154_v25  ;;  %v1127_v41 = vmul.f32 %v4101_v44, %v1005_v23  ;;  %v4188_v42 = vmul.f32 %v4087_v29, %v822_v62  ;;  %v4193_v47 = vmul.f32 %v4118_v53, %v1005_v23  ;;  %v1676_v48 = vmul.f32 %v4148_v22, %v1005_v23 }
  0xcb   : > { %v765_v8 = vpop.f32.mrf.mxu0  ;;  %6011 = vst [vmem:[#allocation20_spill] sm:$0xff] %v4166_v31  ;;  %v1610_v54 = vmul.f32 %v4175_v33, %v1005_v23  ;;  %v1060_v56 = vmul.f32 %v4113_v52, %v1005_v23  ;;  %v1918_v57 = vmul.f32 %v4159_v26, %v1005_v23  ;;  %v3542_v23 = vld [vmem:[%s4038_s26 + $0xb8] sm:$0xff] }
  0xcc   : > { %v898_v12 = vmul.f32 %v4087_v29, %v765_v8  ;;  %6012 = vst [vmem:[#allocation21_spill] sm:$0xff] %v4170_v32  ;;  %v1226_v61 = vrot.slane %v1127_v41, 1  ;;  %v975_v62 = vmax.f32 %v4188_v42, 0.0  ;;  %v1772_v2 = vrot.slane %v1676_v48, 1 }
  0xcd   : > { %6013 = vst [vmem:[#allocation22_spill] sm:$0xff] %v4180_v37  ;;  %v1642_v8 = vadd.f32 %v1610_v54, %v1576_v35  ;;  %v2014_v48 = vrot.slane %v1918_v57, 2 }
  0xce   : > { %v952_v18 = vmax.f32 %v898_v12, 0.0  ;;  %3464 = vmatmul.msk.bf16.gmra.mxu0 %vm657_vm2, %v3529_v63  ;;  %3476 = vmatmul.msk.bf16.gmra.mxu2 %vm657_vm2, %v3541_v1  ;;  %v1469_v1 = vrot.slane %v4193_v47, 2  ;;  %v3548_v47 = vld [vmem:[%s5926_s6 + $0x8] sm:$0xff]  ;;  %v4234_v60 = vmin.f32 %v975_v62, 6.0 }
  0xcf   : > { %2930 = vmatpush.bf16.msra.mxu1 %v3548_v47  ;;  %3564 = vmatpush.bf16.msrb.mxu3 %v3548_v47 }
  0xd0   : > { %v1006_v27 = vmin.f32 %v952_v18, 6.0  ;;  %6015 = vst [vmem:[#allocation24_spill] sm:$0xff] %v4234_v60 }
  0xd1   : > { %v825_v34 = vpop.f32.mrf.mxu2 }
  0xd2   : > { %v1128_v38 = vmul.f32 %v4101_v44, %v1006_v27  ;;  %v1677_v45 = vmul.f32 %v4148_v22, %v1006_v27  ;;  %v922_v63 = vmul.f32 %v4087_v29, %v825_v34  ;;  %v1371_v0 = vmul.f32 %v4118_v53, %v1006_v27 }
  0xd3   : > { %v767_v43 = vpop.f32.mrf.mxu0  ;;  %v1919_v4 = vmul.f32 %v4159_v26, %v1006_v27  ;;  %v1061_v5 = vmul.f32 %v4113_v52, %v1006_v27  ;;  %v1611_v6 = vmul.f32 %v4175_v33, %v1006_v27 }
  0xd4   : > { %v899_v49 = vmul.f32 %v4087_v29, %v767_v43  ;;  %v1227_v55 = vrot.slane %v1128_v38, 1  ;;  %v1773_v59 = vrot.slane %v1677_v45, 1  ;;  %v976_v17 = vmax.f32 %v922_v63, 0.0 }
  0xd5   : > { %v1470_v18 = vrot.slane %v1371_v0, 2  ;;  %v2015_v34 = vrot.slane %v1919_v4, 2  ;;  %v1643_v43 = vadd.f32 %v1611_v6, %v1577_v40  ;;  %v4256_v6 = vld [vmem:[%s5923_s3 + $0x6] ss:$0 sm:$0xff] }
  0xd6   : > { %v953_v58 = vmax.f32 %v899_v49, 0.0  ;;  %v1228_v9 = vsel %vm1220_vm3, %v1226_v61, %v1227_v55  ;;  %v1774_v16 = vsel %vm1220_vm3, %v1772_v2, %v1773_v59 }
  0xd7   : > { %v1335_v35 = vadd.f32 %v1228_v9, %v1060_v56  ;;  %v1884_v41 = vadd.f32 %v1774_v16, %v1642_v8  ;;  %v2016_v40 = vsel %vm1463_vm4, %v2014_v48, %v2015_v34 }
  0xd8   : > { %v1007_v3 = vmin.f32 %v953_v58, 6.0 }
  0xd9   : > { %v827_v7 = vpop.f32.mrf.mxu2  ;;  %v2126_v0 = vadd.f32 %v2016_v40, %v1884_v41 }
  0xda   : > { %v1129_v10 = vmul.f32 %v4101_v44, %v1007_v3  ;;  %v1372_v12 = vmul.f32 %v4118_v53, %v1007_v3  ;;  %v1678_v13 = vmul.f32 %v4148_v22, %v1007_v3  ;;  %v1920_v19 = vmul.f32 %v4159_v26, %v1007_v3 }
  0xdb   : > { %v923_v20 = vmul.f32 %v4087_v29, %v827_v7  ;;  %v770_v21 = vpop.f32.mrf.mxu0  ;;  %v4261_v7 = vld [vmem:[%s5923_s3 + $0x7] ss:$0 sm:$0xff] }
  0xdc   : > { %v1229_v27 = vrot.slane %v1129_v10, 1  ;;  %v1775_v28 = vrot.slane %v1678_v13, 1  ;;  %v1472_v36 = vrot.slane %v1372_v12, 2  ;;  %v900_v39 = vmul.f32 %v4087_v29, %v770_v21 }
  0xdd   : > { %v977_v38 = vmax.f32 %v923_v20, 0.0  ;;  %v2017_v54 = vrot.slane %v1920_v19, 2 }
  0xde   : > { %v1230_v42 = vsel %vm1220_vm3, %v1227_v55, %v1229_v27  ;;  %v1776_v45 = vsel %vm1220_vm3, %v1773_v59, %v1775_v28  ;;  %3465 = vmatmul.msk.bf16.gmra.mxu0 %vm657_vm2, %v3530_v14  ;;  %v954_v58 = vmax.f32 %v900_v39, 0.0  ;;  %3477 = vmatmul.msk.bf16.gmra.mxu2 %vm657_vm2, %v3542_v23  ;;  %v4236_v55 = vmin.f32 %v976_v17, 6.0  ;;  %v4275_v14 = vld [vmem:[%s5923_s3 + $0x8] ss:$0 sm:$0xff] }
  0xdf   : > { %v1336_v49 = vadd.f32 %v1230_v42, %v1061_v5  ;;  %v4231_v56 = vmin.f32 %v977_v38, 6.0  ;;  %v1471_v59 = vsel %vm1463_vm4, %v1469_v1, %v1470_v18  ;;  %v1473_v61 = vsel %vm1463_vm4, %v1470_v18, %v1472_v36  ;;  %v3547_v1 = vld [vmem:[%s5926_s6] sm:$0xff] }
  0xe0   : > { %6016 = vst [vmem:[#allocation25_spill] sm:$0xff] %v4236_v55  ;;  %v1885_v63 = vadd.f32 %v1776_v45, %v1643_v43  ;;  %v1578_v2 = vadd.f32 %v1471_v59, %v1335_v35  ;;  %v1008_v4 = vmin.f32 %v954_v58, 6.0  ;;  %v2018_v9 = vsel %vm1463_vm4, %v2015_v34, %v2017_v54  ;;  %2931 = vmatpush.bf16.msra.mxu1 %v3547_v1 }
  0xe1   : > { %6014 = vst [vmem:[#allocation23_spill] sm:$0xff] %v4231_v56  ;;  %v830_v57 = vpop.f32.mrf.mxu2  ;;  %v4243_v3 = vmul.f32 %v4101_v44, %v4231_v56  ;;  %v4247_v62 = vmul.f32 %v4118_v53, %v4231_v56  ;;  %v1579_v8 = vadd.f32 %v1473_v61, %v1336_v49  ;;  %v4266_v10 = vmul.f32 %v4148_v22, %v4231_v56 }
  0xe2   : > { %v924_v5 = vmul.f32 %v4087_v29, %v830_v57  ;;  %v4270_v12 = vmul.f32 %v4159_v26, %v4231_v56  ;;  %v2160_v17 = vmul.f32 %v4256_v6, %v1008_v4  ;;  %v2226_v18 = vmul.f32 %v4261_v7, %v1008_v4  ;;  %3565 = vmatpush.bf16.msrb.mxu3 %v3547_v1 }
  0xe3   : > { %6017 = vst [vmem:[#allocation26_spill] sm:$0xff] %v4243_v3  ;;  %v772_v13 = vpop.f32.mrf.mxu0  ;;  %v2468_v19 = vmul.f32 %v4275_v14, %v1008_v4  ;;  %v1612_v20 = vmul.f32 %v4175_v33, %v1008_v4  ;;  %v1679_v21 = vmul.f32 %v4148_v22, %v1008_v4  ;;  %v1921_v23 = vmul.f32 %v4159_v26, %v1008_v4 }
  0xe4   : > { %6018 = vst [vmem:[#allocation27_spill] sm:$0xff] %v4247_v62  ;;  %v978_v15 = vmax.f32 %v924_v5, 0.0  ;;  %v901_v16 = vmul.f32 %v4087_v29, %v772_v13  ;;  %v2127_v35 = vadd.f32 %v2018_v9, %v1885_v63  ;;  %v2192_v39 = vadd.f32 %v2160_v17, %v2126_v0 }
  0xe5   : > { %6019 = vst [vmem:[#allocation28_spill] sm:$0xff] %v4266_v10  ;;  %v2322_v41 = vrot.slane %v2226_v18, 1  ;;  %v2564_v43 = vrot.slane %v2468_v19, 2  ;;  %v1644_v45 = vadd.f32 %v1612_v20, %v1578_v2  ;;  %v1777_v47 = vrot.slane %v1679_v21, 1 }
  0xe6   : > { %6020 = vst [vmem:[#allocation29_spill] sm:$0xff] %v4270_v12  ;;  %v955_v34 = vmax.f32 %v901_v16, 0.0  ;;  %v4287_v38 = vmin.f32 %v978_v15, 6.0  ;;  %v2019_v49 = vrot.slane %v1921_v23, 2  ;;  %v4290_v54 = vmul.f32 %v4113_v52, %v1008_v4 }
  0xe7   : > { %v4293_v58 = vmul.f32 %v4101_v44, %v1008_v4  ;;  %v4296_v40 = vmul.f32 %v4118_v53, %v1008_v4 }
  0xe8   : > { %6021 = vst [vmem:[#allocation30_spill] sm:$0xff] %v4287_v38  ;;  %v1009_v42 = vmin.f32 %v955_v34, 6.0 }
  0xe9   : > { %v832_v48 = vpop.f32.mrf.mxu2 }
  0xea   : > { %v925_v59 = vmul.f32 %v4087_v29, %v832_v48  ;;  %v2161_v61 = vmul.f32 %v4256_v6, %v1009_v42  ;;  %v2227_v63 = vmul.f32 %v4261_v7, %v1009_v42  ;;  %v2469_v57 = vmul.f32 %v4275_v14, %v1009_v42 }
  0xeb   : > { %v775_v0 = vpop.f32.mrf.mxu0  ;;  %v1613_v2 = vmul.f32 %v4175_v33, %v1009_v42  ;;  %v1680_v5 = vmul.f32 %v4148_v22, %v1009_v42  ;;  %v1922_v1 = vmul.f32 %v4159_v26, %v1009_v42  ;;  %v4306_v9 = vmul.f32 %v4113_v52, %v1009_v42 }
  0xec   : > { %v979_v4 = vmax.f32 %v925_v59, 0.0  ;;  %v902_v13 = vmul.f32 %v4087_v29, %v775_v0  ;;  %v2193_v15 = vadd.f32 %v2161_v61, %v2127_v35  ;;  %v2323_v16 = vrot.slane %v2227_v63, 1 }
  0xed   : > { %v2565_v17 = vrot.slane %v2469_v57, 2  ;;  %v1645_v18 = vadd.f32 %v1613_v2, %v1579_v8  ;;  %v1778_v19 = vrot.slane %v1680_v5, 1  ;;  %v2020_v20 = vrot.slane %v1922_v1, 2 }
  0xee   : > { %v4309_v21 = vmin.f32 %v979_v4, 6.0  ;;  %v956_v23 = vmax.f32 %v902_v13, 0.0  ;;  %v2324_v34 = vsel %vm1220_vm3, %v2322_v41, %v2323_v16  ;;  %v4313_v48 = vmul.f32 %v4101_v44, %v1009_v42 }
  0xef   : > { %v2434_v28 = vadd.f32 %v2324_v34, %v2192_v39  ;;  %v2566_v27 = vsel %vm1463_vm4, %v2564_v43, %v2565_v17  ;;  %v1779_v59 = vsel %vm1220_vm3, %v1777_v47, %v1778_v19  ;;  %v2021_v35 = vsel %vm1463_vm4, %v2019_v49, %v2020_v20  ;;  %v4326_v39 = vld [vmem:[%s5924_s4] ss:$0 sm:$0xff] }
  0xf0   : > { %6022 = vst [vmem:[#allocation31_spill] sm:$0xff] %v4309_v21  ;;  %v1010_v61 = vmin.f32 %v956_v23, 6.0  ;;  %v4320_v8 = vmul.f32 %v4101_v44, %v4309_v21  ;;  %v1886_v63 = vadd.f32 %v1779_v59, %v1644_v45  ;;  %v1232_v43 = vrot.slane %v4313_v48, 1  ;;  %v4343_v23 = vld [vmem:[#allocation2] ss:$0 sm:$0xff] }
  0xf1   : > { %v835_v0 = vpop.f32.mrf.mxu2  ;;  %v2676_v41 = vadd.f32 %v2566_v27, %v2434_v28  ;;  %v4330_v47 = vmul.f32 %v4118_v53, %v1009_v42 }
  0xf2   : > { %v1132_v2 = vmul.f32 %v4101_v44, %v1010_v61  ;;  %v4335_v45 = vmul.f32 %v4118_v53, %v1010_v61  ;;  %v1681_v5 = vmul.f32 %v4148_v22, %v1010_v61  ;;  %v1923_v27 = vmul.f32 %v4159_v26, %v1010_v61 }
  0xf3   : > { %v926_v28 = vmul.f32 %v4087_v29, %v835_v0  ;;  %v777_v4 = vpop.f32.mrf.mxu0  ;;  %v2228_v13 = vmul.f32 %v4261_v7, %v1010_v61  ;;  %v2470_v42 = vmul.f32 %v4275_v14, %v1010_v61  ;;  %v2712_v0 = vmul.f32 %v4326_v39, %v2676_v41 }
  0xf4   : > { %v1234_v34 = vrot.slane %v1132_v2, 1  ;;  %v1780_v59 = vrot.slane %v1681_v5, 1  ;;  %v903_v36 = vmul.f32 %v4087_v29, %v777_v4  ;;  %v2022_v1 = vrot.slane %v1923_v27, 2 }
  0xf5   : > { %v980_v50 = vmax.f32 %v926_v28, 0.0  ;;  %v2325_v46 = vrot.slane %v2228_v13, 1  ;;  %v2567_v51 = vrot.slane %v2470_v42, 2  ;;  %v2128_v62 = vadd.f32 %v2021_v35, %v1886_v63 }
  0xf6   : > { %v957_v49 = vmax.f32 %v903_v36, 0.0  ;;  %v1781_v57 = vsel %vm1220_vm3, %v1778_v19, %v1780_v59  ;;  %v2748_v5 = vadd.f32 %v4343_v23, %v2712_v0  ;;  %v2023_v13 = vsel %vm1463_vm4, %v2020_v20, %v2022_v1 }
  0xf7   : > { %v4349_v3 = vmin.f32 %v980_v50, 6.0  ;;  %v2326_v61 = vsel %vm1220_vm3, %v2323_v16, %v2325_v46  ;;  %v2568_v2 = vsel %vm1463_vm4, %v2565_v17, %v2567_v51  ;;  %v1887_v4 = vadd.f32 %v1781_v57, %v1645_v18 }
  0xf8   : > { %v4354_v48 = vmin.f32 %v957_v49, 6.0  ;;  %v2435_v28 = vadd.f32 %v2326_v61, %v2193_v15  ;;  %v2780_v17 = vmax.f32 %v2748_v5, 0.0  ;;  %v6026_v59 = vrot.slane %v4320_v8, 1 }
  0xf9   : > { %6023 = vst [vmem:[#allocation32_spill] sm:$0xff] %v4349_v3  ;;  %v1156_v36 = vmul.f32 %v4101_v44, %v4349_v3  ;;  %v4361_v19 = vmul.f32 %v4118_v53, %v4349_v3  ;;  %v4365_v46 = vmul.f32 %v4148_v22, %v4349_v3  ;;  %v4369_v50 = vmul.f32 %v4159_v26, %v4349_v3  ;;  %v837_v51 = vpop.f32.mrf.mxu2 }
  0xfa   : > { %v927_v15 = vmul.f32 %v4087_v29, %v837_v51  ;;  %v2677_v16 = vadd.f32 %v2568_v2, %v2435_v28  ;;  %v2129_v18 = vadd.f32 %v2023_v13, %v1887_v4  ;;  %v2162_v41 = vmul.f32 %v4256_v6, %v4354_v48 }
  0xfb   : > { %6024 = vst [vmem:[#allocation33_spill] sm:$0xff] %v4365_v46  ;;  %v1274_v20 = vrot.slane %v1156_v36, 1  ;;  %v780_v57 = vpop.f32.mrf.mxu0  ;;  %v2812_v42 = vmin.f32 %v2780_v17, 6.0  ;;  %v2229_v2 = vmul.f32 %v4261_v7, %v4354_v48  ;;  %v2471_v5 = vmul.f32 %v4275_v14, %v4354_v48 }
  0xfc   : > { %6025 = vst [vmem:[#allocation34_spill] sm:$0xff] %v4369_v50  ;;  %v981_v49 = vmax.f32 %v927_v15, 0.0  ;;  %v904_v27 = vmul.f32 %v4087_v29, %v780_v57  ;;  %v2713_v1 = vmul.f32 %v4326_v39, %v2677_v16  ;;  %v2194_v61 = vadd.f32 %v2162_v41, %v2128_v62 }
  0xfd   : > { %v4381_v0 = vsel %vm1220_vm3, %v6026_v59, %v1274_v20  ;;  %v6028_v36 = vrot.slane %v4293_v58, 1  ;;  %v2327_v15 = vrot.slane %v2229_v2, 1  ;;  %v2569_v16 = vrot.slane %v2471_v5, 2 }
  0xfe   : > { %v4387_v28 = vmin.f32 %v981_v49, 6.0  ;;  %v958_v4 = vmax.f32 %v904_v27, 0.0  ;;  %v2749_v13 = vadd.f32 %v4343_v23, %v2713_v1  ;;  %v1235_v17 = vsel %vm1220_vm3, %v1232_v43, %v1234_v34 }
  0xff   : > { %v1233_v51 = vsel %vm1220_vm3, %v6028_v36, %v1232_v43  ;;  %v1338_v41 = vadd.f32 %v1235_v17, %v4306_v9  ;;  %v1475_v49 = vrot.slane %v4330_v47, 2  ;;  %v1614_v1 = vmul.f32 %v4175_v33, %v4354_v48 }
 0x100   : > { %6027 = vst [vmem:[#allocation35_spill] sm:$0xff] %v4387_v28  ;;  %v1337_v62 = vadd.f32 %v1233_v51, %v4290_v54  ;;  %v4395_v20 = vmin.f32 %v958_v4, 6.0  ;;  %v2781_v57 = vmax.f32 %v2749_v13, 0.0  ;;  %v1682_v58 = vmul.f32 %v4148_v22, %v4354_v48 }
 0x101   : > { %v840_v27 = vpop.f32.mrf.mxu2  ;;  %v4405_v59 = vmul.f32 %v4159_v26, %v4354_v48  ;;  %v4409_v54 = vmul.f32 %v4113_v52, %v4287_v38  ;;  %v6029_v4 = vrot.slane %v4296_v40, 2  ;;  %v6030_v36 = vrot.slane %v4335_v45, 2 }
 0x102   : > { %v928_v43 = vmul.f32 %v4087_v29, %v840_v27  ;;  %v2813_v9 = vmin.f32 %v2781_v57, 6.0  ;;  %v2163_v47 = vmul.f32 %v4256_v6, %v4395_v20  ;;  %v2230_v34 = vmul.f32 %v4261_v7, %v4395_v20 }
 0x103   : > { %v782_v2 = vpop.f32.mrf.mxu0  ;;  %v2472_v5 = vmul.f32 %v4275_v14, %v4395_v20  ;;  %v1476_v13 = vsel %vm1463_vm4, %v6029_v4, %v1475_v49  ;;  %v1478_v51 = vsel %vm1463_vm4, %v1475_v49, %v6030_v36  ;;  %v1615_v17 = vmul.f32 %v4175_v33, %v4395_v20 }
 0x104   : > { %v982_v57 = vmax.f32 %v928_v43, 0.0  ;;  %v905_v27 = vmul.f32 %v4087_v29, %v782_v2  ;;  %v2844_v63 = vpack.c.bf16 %v2813_v9, %v2812_v42  ;;  %v2195_v35 = vadd.f32 %v2163_v47, %v2129_v18 }
 0x105   : > { %v2328_v46 = vrot.slane %v2230_v34, 1  ;;  %v2570_v50 = vrot.slane %v2472_v5, 2  ;;  %v1580_v3 = vadd.f32 %v1476_v13, %v1337_v62  ;;  %v1581_v10 = vadd.f32 %v1478_v51, %v1338_v41 }
 0x106   : > { %v4427_v12 = vmin.f32 %v982_v57, 6.0  ;;  %v959_v40 = vmax.f32 %v905_v27, 0.0  ;;  %2932 = vmatmul.bf16.vlgmr.msra.gmra.mxu1 %v2844_v63  ;;  %v1683_v45 = vmul.f32 %v4148_v22, %v4395_v20  ;;  %v1782_v49 = vrot.slane %v1682_v58, 1 }
 0x107   : > { %v2329_v4 = vsel %vm1220_vm3, %v2327_v15, %v2328_v46  ;;  %v2571_v43 = vsel %vm1463_vm4, %v2569_v16, %v2570_v50  ;;  %v1646_v36 = vadd.f32 %v1614_v1, %v1580_v3  ;;  %v1647_v2 = vadd.f32 %v1615_v17, %v1581_v10 }
 0x108   : > { %6031 = vst [vmem:[#allocation36_spill] sm:$0xff] %v4427_v12  ;;  %v1013_v42 = vmin.f32 %v959_v40, 6.0  ;;  %v2436_v18 = vadd.f32 %v2329_v4, %v2194_v61  ;;  %v1783_v9 = vrot.slane %v1683_v45, 1  ;;  %v4435_v62 = vmul.f32 %v4159_v26, %v4395_v20 }
 0x109   : > { %v842_v41 = vpop.f32.mrf.mxu2  ;;  %v2024_v63 = vrot.slane %v4405_v59, 2  ;;  %v4440_v47 = vmul.f32 %v4113_v52, %v4309_v21  ;;  %v4444_v15 = vmul.f32 %v4101_v44, %v4287_v38  ;;  %v4448_v3 = vmul.f32 %v4118_v53, %v4287_v38 }
 0x10a   : > { %v4451_v10 = vmul.f32 %v4101_v44, %v1013_v42  ;;  %v4454_v61 = vmul.f32 %v4118_v53, %v1013_v42  ;;  %v1684_v16 = vmul.f32 %v4148_v22, %v1013_v42  ;;  %v1926_v1 = vmul.f32 %v4159_v26, %v1013_v42 }
 0x10b   : > { %v929_v58 = vmul.f32 %v4087_v29, %v842_v41  ;;  %v785_v59 = vpop.f32.mrf.mxu0  ;;  %v2231_v34 = vmul.f32 %v4261_v7, %v1013_v42  ;;  %v2473_v5 = vmul.f32 %v4275_v14, %v1013_v42  ;;  %v2678_v13 = vadd.f32 %v2571_v43, %v2436_v18 }
 0x10c   : > { %v1785_v57 = vrot.slane %v1684_v16, 1  ;;  %v906_v27 = vmul.f32 %v4087_v29, %v785_v59  ;;  %v1784_v41 = vsel %vm1220_vm3, %v1782_v49, %v1783_v9  ;;  %v2025_v42 = vrot.slane %v4435_v62, 2 }
 0x10d   : > { %v983_v40 = vmax.f32 %v929_v58, 0.0  ;;  %v2330_v45 = vrot.slane %v2231_v34, 1  ;;  %v2572_v4 = vrot.slane %v2473_v5, 2  ;;  %v2714_v38 = vmul.f32 %v4326_v39, %v2678_v13 }
 0x10e   : > { %v960_v31 = vmax.f32 %v906_v27, 0.0  ;;  %v1786_v25 = vsel %vm1220_vm3, %v1783_v9, %v1785_v57  ;;  %v1888_v5 = vadd.f32 %v1784_v41, %v1646_v36  ;;  %v2026_v36 = vsel %vm1463_vm4, %v2024_v63, %v2025_v42 }
 0x10f   : > { %v4468_v43 = vmin.f32 %v983_v40, 6.0  ;;  %v2331_v18 = vsel %vm1220_vm3, %v2328_v46, %v2330_v45  ;;  %v2573_v16 = vsel %vm1463_vm4, %v2570_v50, %v2572_v4  ;;  %v2750_v59 = vadd.f32 %v4343_v23, %v2714_v38 }
 0x110   : > { %v4473_v58 = vmin.f32 %v960_v31, 6.0  ;;  %v2437_v34 = vadd.f32 %v2331_v18, %v2195_v35  ;;  %v1889_v13 = vadd.f32 %v1786_v25, %v1647_v2 }
 0x111   : > { %6032 = vst [vmem:[#allocation37_spill] sm:$0xff] %v4468_v43  ;;  %v4477_v49 = vmul.f32 %v4101_v44, %v4468_v43  ;;  %v4481_v9 = vmul.f32 %v4118_v53, %v4468_v43  ;;  %v4485_v46 = vmul.f32 %v4148_v22, %v4468_v43  ;;  %v4489_v38 = vmul.f32 %v4159_v26, %v4468_v43  ;;  %v845_v31 = vpop.f32.mrf.mxu2 }
 0x112   : > { %v930_v50 = vmul.f32 %v4087_v29, %v845_v31  ;;  %v2679_v25 = vadd.f32 %v2573_v16, %v2437_v34  ;;  %v2782_v35 = vmax.f32 %v2750_v59, 0.0  ;;  %v2027_v31 = vrot.slane %v1926_v1, 2 }
 0x113   : > { %v787_v40 = vpop.f32.mrf.mxu0  ;;  %v2130_v16 = vadd.f32 %v2026_v36, %v1888_v5  ;;  %v2164_v63 = vmul.f32 %v4256_v6, %v4473_v58  ;;  %v2232_v59 = vmul.f32 %v4261_v7, %v4473_v58  ;;  %v1271_v1 = vrot.slane %v4444_v15, 1 }
 0x114   : > { %v984_v45 = vmax.f32 %v930_v50, 0.0  ;;  %v907_v4 = vmul.f32 %v4087_v29, %v787_v40  ;;  %v2715_v41 = vmul.f32 %v4326_v39, %v2679_v25  ;;  %v2814_v18 = vmin.f32 %v2782_v35, 6.0 }
 0x115   : > { %v2474_v50 = vmul.f32 %v4275_v14, %v4473_v58  ;;  %v2028_v40 = vsel %vm1463_vm4, %v2025_v42, %v2027_v31  ;;  %v2196_v25 = vadd.f32 %v2164_v63, %v2130_v16  ;;  %v2332_v35 = vrot.slane %v2232_v59, 1 }
 0x116   : > { %v4503_v34 = vmin.f32 %v984_v45, 6.0  ;;  %v961_v62 = vmax.f32 %v907_v4, 0.0  ;;  %v2751_v2 = vadd.f32 %v4343_v23, %v2715_v41  ;;  %v2131_v17 = vadd.f32 %v2028_v40, %v1889_v13 }
 0x117   : > { %v2574_v51 = vrot.slane %v2474_v50, 2  ;;  %v6033_v45 = vrot.slane %v4320_v8, 1  ;;  %v1354_v41 = vadd.f32 %v4381_v0, %v4440_v47  ;;  %v1398_v42 = vmul.f32 %v4118_v53, %v4309_v21 }
 0x118   : > { %v4510_v5 = vmin.f32 %v961_v62, 6.0  ;;  %v2783_v36 = vmax.f32 %v2751_v2, 0.0  ;;  %v1514_v31 = vrot.slane %v4448_v3, 2  ;;  %v1630_v63 = vmul.f32 %v4175_v33, %v4387_v28 }
 0x119   : > { %v847_v27 = vpop.f32.mrf.mxu2  ;;  %v1273_v4 = vsel %vm1220_vm3, %v1271_v1, %v6033_v45  ;;  %v1515_v47 = vrot.slane %v1398_v42, 2  ;;  %v6034_v45 = vrot.slane %v4361_v19, 2 }
 0x11a   : > { %v931_v15 = vmul.f32 %v4087_v29, %v847_v27  ;;  %v2815_v62 = vmin.f32 %v2783_v36, 6.0  ;;  %v2165_v13 = vmul.f32 %v4256_v6, %v4510_v5  ;;  %v2233_v2 = vmul.f32 %v4261_v7, %v4510_v5 }
 0x11b   : > { %v790_v8 = vpop.f32.mrf.mxu0  ;;  %v2475_v16 = vmul.f32 %v4275_v14, %v4510_v5  ;;  %v1353_v0 = vadd.f32 %v1273_v4, %v4409_v54  ;;  %v1516_v36 = vsel %vm1463_vm4, %v1514_v31, %v1515_v47  ;;  %v1518_v57 = vsel %vm1463_vm4, %v1515_v47, %v6034_v45 }
 0x11c   : > { %v985_v3 = vmax.f32 %v931_v15, 0.0  ;;  %v908_v27 = vmul.f32 %v4087_v29, %v790_v8  ;;  %v2845_v59 = vpack.c.bf16 %v2815_v62, %v2814_v18  ;;  %v2197_v50 = vadd.f32 %v2165_v13, %v2131_v17 }
 0x11d   : > { %v2333_v40 = vrot.slane %v2233_v2, 1  ;;  %v2575_v1 = vrot.slane %v2475_v16, 2  ;;  %v1596_v4 = vadd.f32 %v1516_v36, %v1353_v0  ;;  %v1597_v42 = vadd.f32 %v1518_v57, %v1354_v41 }
 0x11e   : > { %v4535_v43 = vmin.f32 %v985_v3, 6.0  ;;  %v962_v54 = vmax.f32 %v908_v27, 0.0  ;;  %2937 = vmatmul.bf16.gmra.mxu1 %v2845_v59  ;;  %v1631_v17 = vmul.f32 %v4175_v33, %v4427_v12  ;;  %v1706_v18 = vmul.f32 %v4148_v22, %v4387_v28 }
 0x11f   : > { %v2334_v15 = vsel %vm1220_vm3, %v2332_v35, %v2333_v40  ;;  %v2576_v8 = vsel %vm1463_vm4, %v2574_v51, %v2575_v1  ;;  %v1662_v62 = vadd.f32 %v1630_v63, %v1596_v4  ;;  %v1707_v13 = vmul.f32 %v4148_v22, %v4427_v12 }
 0x120   : > { %v1016_v31 = vmin.f32 %v962_v54, 6.0  ;;  %v2438_v19 = vadd.f32 %v2334_v15, %v2196_v25  ;;  %v1663_v16 = vadd.f32 %v1631_v17, %v1597_v42  ;;  %v1822_v0 = vrot.slane %v1706_v18, 1 }
 0x121   : > { %v850_v2 = vpop.f32.mrf.mxu2  ;;  %v1948_v57 = vmul.f32 %v4159_v26, %v4387_v28  ;;  %v1949_v51 = vmul.f32 %v4159_v26, %v4427_v12  ;;  %v1823_v56 = vrot.slane %v1707_v13, 1 }
 0x122   : > { %v4550_v35 = vmul.f32 %v4101_v44, %v1016_v31  ;;  %v4553_v41 = vmul.f32 %v4118_v53, %v1016_v31  ;;  %v4556_v25 = vmul.f32 %v4148_v22, %v1016_v31  ;;  %v4559_v47 = vmul.f32 %v4159_v26, %v1016_v31 }
 0x123   : > { %v932_v63 = vmul.f32 %v4087_v29, %v850_v2  ;;  %v792_v3 = vpop.f32.mrf.mxu0  ;;  %v2234_v27 = vmul.f32 %v4261_v7, %v1016_v31  ;;  %v2476_v59 = vmul.f32 %v4275_v14, %v1016_v31  ;;  %v2680_v36 = vadd.f32 %v2576_v8, %v2438_v19 }
 0x124   : > { %v909_v42 = vmul.f32 %v4087_v29, %v792_v3  ;;  %v2064_v55 = vrot.slane %v1948_v57, 2  ;;  %v2065_v60 = vrot.slane %v1949_v51, 2  ;;  %v6036_v3 = vrot.slane %v4485_v46, 1 }
 0x125   : > { %v986_v15 = vmax.f32 %v932_v63, 0.0  ;;  %v2335_v17 = vrot.slane %v2234_v27, 1  ;;  %v2577_v18 = vrot.slane %v2476_v59, 2  ;;  %v2716_v21 = vmul.f32 %v4326_v39, %v2680_v36 }
 0x126   : > { %v963_v2 = vmax.f32 %v909_v42, 0.0  ;;  %v1824_v63 = vsel %vm1220_vm3, %v1822_v0, %v1823_v56  ;;  %v1826_v27 = vsel %vm1220_vm3, %v1823_v56, %v6036_v3 }
 0x127   : > { %v1040_v37 = vmin.f32 %v986_v15, 6.0  ;;  %v2336_v8 = vsel %vm1220_vm3, %v2333_v40, %v2335_v17  ;;  %v2578_v31 = vsel %vm1463_vm4, %v2575_v1, %v2577_v18  ;;  %v2752_v19 = vadd.f32 %v4343_v23, %v2716_v21 }
 0x128   : > { %v4572_v54 = vmin.f32 %v963_v2, 6.0  ;;  %v2439_v45 = vadd.f32 %v2336_v8, %v2197_v50  ;;  %v1904_v46 = vadd.f32 %v1824_v63, %v1662_v62  ;;  %v1905_v36 = vadd.f32 %v1826_v27, %v1663_v16 }
 0x129   : > { %v4579_v13 = vmul.f32 %v4101_v44, %v1040_v37  ;;  %v4582_v57 = vmul.f32 %v4118_v53, %v1040_v37  ;;  %v4585_v40 = vmul.f32 %v4148_v22, %v1040_v37  ;;  %v4588_v21 = vmul.f32 %v4159_v26, %v1040_v37  ;;  %v852_v1 = vpop.f32.mrf.mxu2 }
 0x12a   : > { %6035 = vst [vmem:[#allocation38_spill] sm:$0xff] %v4572_v54  ;;  %v933_v50 = vmul.f32 %v4087_v29, %v852_v1  ;;  %v2681_v0 = vadd.f32 %v2578_v31, %v2439_v45  ;;  %v2784_v51 = vmax.f32 %v2752_v19, 0.0  ;;  %v2066_v2 = vsel %vm1463_vm4, %v2064_v55, %v2065_v60 }
 0x12b   : > { %v795_v53 = vpop.f32.mrf.mxu0  ;;  %v6037_v45 = vrot.slane %v4489_v38, 2  ;;  %v2180_v8 = vmul.f32 %v4256_v6, %v4503_v34  ;;  %v2181_v31 = vmul.f32 %v4256_v6, %v4535_v43  ;;  %v2146_v63 = vadd.f32 %v2066_v2, %v1904_v46 }
 0x12c   : > { %v987_v42 = vmax.f32 %v933_v50, 0.0  ;;  %v910_v15 = vmul.f32 %v4087_v29, %v795_v53  ;;  %v2717_v17 = vmul.f32 %v4326_v39, %v2681_v0  ;;  %v2816_v18 = vmin.f32 %v2784_v51, 6.0 }
 0x12d   : > { %v2068_v62 = vsel %vm1463_vm4, %v2065_v60, %v6037_v45  ;;  %v2256_v55 = vmul.f32 %v4261_v7, %v4503_v34  ;;  %v2257_v38 = vmul.f32 %v4261_v7, %v4535_v43  ;;  %v2258_v60 = vmul.f32 %v4261_v7, %v1040_v37 }
 0x12e   : > { %v4604_v19 = vmin.f32 %v987_v42, 6.0  ;;  %v964_v16 = vmax.f32 %v910_v15, 0.0  ;;  %v2753_v29 = vadd.f32 %v4343_v23, %v2717_v17  ;;  %v2147_v3 = vadd.f32 %v2068_v62, %v1905_v36  ;;  %v4619_v15 = vld [vmem:[%s5922_s2] ss:$0 sm:$0xff] }
 0x12f   : > { %v2212_v50 = vadd.f32 %v2180_v8, %v2146_v63  ;;  %v2498_v0 = vmul.f32 %v4275_v14, %v4503_v34  ;;  %v2372_v42 = vrot.slane %v2256_v55, 1  ;;  %v2373_v46 = vrot.slane %v2257_v38, 1 }
 0x130   : > { %v4612_v27 = vmin.f32 %v964_v16, 6.0  ;;  %v2785_v1 = vmax.f32 %v2753_v29, 0.0  ;;  %v2213_v53 = vadd.f32 %v2181_v31, %v2147_v3  ;;  %v2375_v36 = vrot.slane %v2258_v60, 1 }
 0x131   : > { %v855_v51 = vpop.f32.mrf.mxu2  ;;  %v2499_v45 = vmul.f32 %v4275_v14, %v4535_v43  ;;  %v2500_v62 = vmul.f32 %v4275_v14, %v1040_v37  ;;  %v2374_v16 = vsel %vm1220_vm3, %v2372_v42, %v2373_v46  ;;  %v2614_v29 = vrot.slane %v2498_v0, 2  ;;  %v4636_v0 = vld [vmem:[%s5923_s3] ss:$0 sm:$0xff] }
 0x132   : > { %6038 = vst [vmem:[#allocation39_spill] sm:$0xff] %v4612_v27  ;;  %v934_v17 = vmul.f32 %v4619_v15, %v855_v51  ;;  %v2817_v2 = vmin.f32 %v2785_v1, 6.0  ;;  %v2376_v31 = vsel %vm1220_vm3, %v2373_v46, %v2375_v36  ;;  %v1064_v63 = vmul.f32 %v4113_v52, %v4354_v48  ;;  %v875_v1 = vpop.f32.mrf.mxu3 }
 0x133   : > { %v797_v8 = vpop.f32.mrf.mxu0  ;;  %v2454_v60 = vadd.f32 %v2374_v16, %v2212_v50  ;;  %v2455_v51 = vadd.f32 %v2376_v31, %v2213_v53  ;;  %v2615_v44 = vrot.slane %v2499_v45, 2  ;;  %v2617_v56 = vrot.slane %v2500_v62, 2 }
 0x134   : > { %v988_v3 = vmax.f32 %v934_v17, 0.0  ;;  %v911_v55 = vmul.f32 %v4619_v15, %v797_v8  ;;  %v2846_v38 = vpack.c.bf16 %v2817_v2, %v2816_v18  ;;  %v942_v37 = vmul.f32 %v4619_v15, %v875_v1  ;;  %v4643_v18 = vld [vmem:[%s5923_s3 + $0x1] ss:$0 sm:$0xff] }
 0x135   : > { %v1065_v52 = vmul.f32 %v4636_v0, %v4395_v20  ;;  %v1133_v50 = vmul.f32 %v4643_v18, %v4354_v48  ;;  %v2616_v53 = vsel %vm1463_vm4, %v2614_v29, %v2615_v44  ;;  %v2618_v46 = vsel %vm1463_vm4, %v2615_v44, %v2617_v56 }
 0x136   : > { %v4631_v59 = vmin.f32 %v988_v3, 6.0  ;;  %v965_v42 = vmax.f32 %v911_v55, 0.0  ;;  %2942 = vmatmul.bf16.gmra.mxu1 %v2846_v38  ;;  %v996_v36 = vmax.f32 %v942_v37, 0.0  ;;  %v1134_v17 = vmul.f32 %v4643_v18, %v4395_v20  ;;  %v4658_v55 = vld [vmem:[%s5923_s3 + $0x2] ss:$0 sm:$0xff] }
 0x137   : > { %v2696_v45 = vadd.f32 %v2616_v53, %v2454_v60  ;;  %v2697_v62 = vadd.f32 %v2618_v46, %v2455_v51  ;;  %v1236_v8 = vrot.slane %v1133_v50, 1  ;;  %v1376_v56 = vmul.f32 %v4658_v55, %v4354_v48 }
 0x138   : > { %v4651_v2 = vmin.f32 %v965_v42, 6.0  ;;  %v4653_v31 = vmin.f32 %v996_v36, 6.0  ;;  %v1237_v3 = vrot.slane %v1134_v17, 1  ;;  %v1377_v44 = vmul.f32 %v4658_v55, %v4395_v20 }
 0x139   : > { %v857_v16 = vpop.f32.mrf.mxu2  ;;  %v2732_v20 = vmul.f32 %v4326_v39, %v2696_v45  ;;  %v2733_v37 = vmul.f32 %v4326_v39, %v2697_v62  ;;  %v1479_v32 = vrot.slane %v1376_v56, 2 }
 0x13a   : > { %6039 = vst [vmem:[#allocation40_spill] sm:$0xff] %v4653_v31  ;;  %v4666_v29 = vmul.f32 %v4643_v18, %v4651_v2  ;;  %v4670_v38 = vmul.f32 %v4658_v55, %v4651_v2  ;;  %v4674_v60 = vmul.f32 %v4148_v22, %v4651_v2  ;;  %v4678_v1 = vmul.f32 %v4159_v26, %v4651_v2 }
 0x13b   : > { %v935_v48 = vmul.f32 %v4619_v15, %v857_v16  ;;  %v800_v51 = vpop.f32.mrf.mxu0  ;;  %v1238_v42 = vsel %vm1220_vm3, %v1236_v8, %v1237_v3  ;;  %v2768_v26 = vadd.f32 %v4343_v23, %v2732_v20  ;;  %v2769_v17 = vadd.f32 %v4343_v23, %v2733_v37 }
 0x13c   : > { %6040 = vst [vmem:[#allocation41_spill] sm:$0xff] %v4666_v29  ;;  %v912_v46 = vmul.f32 %v4619_v15, %v800_v51  ;;  %v6042_v16 = vrot.slane %v4451_v10, 1  ;;  %v1339_v4 = vadd.f32 %v1238_v42, %v1064_v63  ;;  %v1480_v22 = vrot.slane %v1377_v44, 2  ;;  %v4704_v10 = vld [vmem:[%s5923_s3 + $0x4] ss:$0 sm:$0xff] }
 0x13d   : > { %6041 = vst [vmem:[#allocation42_spill] sm:$0xff] %v4670_v38  ;;  %v989_v36 = vmax.f32 %v935_v48, 0.0  ;;  %v2800_v53 = vmax.f32 %v2768_v26, 0.0  ;;  %v2801_v11 = vmax.f32 %v2769_v17, 0.0  ;;  %v1616_v48 = vmul.f32 %v4175_v33, %v4473_v58 }
 0x13e   : > { %v1240_v45 = vsel %vm1220_vm3, %v1237_v3, %v6042_v16  ;;  %v966_v62 = vmax.f32 %v912_v46, 0.0  ;;  %v1617_v51 = vmul.f32 %v4175_v33, %v4510_v5  ;;  %v1685_v63 = vmul.f32 %v4704_v10, %v4473_v58  ;;  %v4723_v33 = vld [vmem:[%s5923_s3 + $0x5] ss:$0 sm:$0xff] }
 0x13f   : > { %v1340_v8 = vadd.f32 %v1240_v45, %v1065_v52  ;;  %v4693_v50 = vmin.f32 %v989_v36, 6.0  ;;  %v2832_v37 = vmin.f32 %v2800_v53, 6.0  ;;  %v2833_v42 = vmin.f32 %v2801_v11, 6.0 }
 0x140   : > { %v4695_v30 = vmin.f32 %v966_v62, 6.0  ;;  %v1481_v36 = vsel %vm1463_vm4, %v1479_v32, %v1480_v22  ;;  %v6046_v62 = vrot.slane %v4454_v61, 2  ;;  %v1686_v32 = vmul.f32 %v4704_v10, %v4510_v5 }
 0x141   : > { %v4710_v52 = vmul.f32 %v4643_v18, %v4693_v50  ;;  %v4714_v3 = vmul.f32 %v4658_v55, %v4693_v50  ;;  %v4718_v56 = vmul.f32 %v4704_v10, %v4693_v50  ;;  %v4727_v44 = vmul.f32 %v4723_v33, %v4693_v50  ;;  %v860_v20 = vpop.f32.mrf.mxu2 }
 0x142   : > { %v936_v46 = vmul.f32 %v4619_v15, %v860_v20  ;;  %v1483_v24 = vsel %vm1463_vm4, %v1480_v22, %v6046_v62  ;;  %v2854_v38 = vpack.c.bf16 %v2833_v42, %v2832_v37  ;;  %v1582_v11 = vadd.f32 %v1481_v36, %v1339_v4 }
 0x143   : > { %6043 = vst [vmem:[#allocation43_spill] sm:$0xff] %v4710_v52  ;;  %v802_v45 = vpop.f32.mrf.mxu0  ;;  %v1787_v20 = vrot.slane %v1685_v63, 1  ;;  %v1927_v17 = vmul.f32 %v4723_v33, %v4473_v58  ;;  %v1928_v22 = vmul.f32 %v4723_v33, %v4510_v5  ;;  %v1788_v42 = vrot.slane %v1686_v32, 1 }
 0x144   : > { %6044 = vst [vmem:[#allocation44_spill] sm:$0xff] %v4714_v3  ;;  %v990_v29 = vmax.f32 %v936_v46, 0.0  ;;  %v913_v53 = vmul.f32 %v4619_v15, %v802_v45  ;;  %2982 = vmatmul.bf16.vlgmr.msrb.gmra.mxu3 %v2854_v38  ;;  %v1648_v61 = vadd.f32 %v1616_v48, %v1582_v11  ;;  %v2166_v63 = vmul.f32 %v4256_v6, %v4572_v54 }
 0x145   : > { %6045 = vst [vmem:[#allocation45_spill] sm:$0xff] %v4727_v44  ;;  %v1583_v44 = vadd.f32 %v1483_v24, %v1340_v8  ;;  %v2029_v46 = vrot.slane %v1927_v17, 2  ;;  %v2032_v24 = vrot.slane %v4559_v47, 2  ;;  %v2030_v8 = vrot.slane %v1928_v22, 2 }
 0x146   : > { %v4742_v26 = vmin.f32 %v990_v29, 6.0  ;;  %v967_v16 = vmax.f32 %v913_v53, 0.0  ;;  %v2167_v29 = vmul.f32 %v4256_v6, %v4612_v27  ;;  %v1789_v48 = vsel %vm1220_vm3, %v1787_v20, %v1788_v42 }
 0x147   : > { %v1649_v37 = vadd.f32 %v1617_v51, %v1583_v44  ;;  %v6047_v36 = vrot.slane %v4556_v25, 1  ;;  %v2235_v44 = vmul.f32 %v4261_v7, %v4572_v54  ;;  %v2236_v47 = vmul.f32 %v4261_v7, %v4612_v27 }
 0x148   : > { %v4747_v4 = vmin.f32 %v967_v16, 6.0  ;;  %v1890_v16 = vadd.f32 %v1789_v48, %v1648_v61  ;;  %v2031_v62 = vsel %vm1463_vm4, %v2029_v46, %v2030_v8  ;;  %v2033_v53 = vsel %vm1463_vm4, %v2030_v8, %v2032_v24 }
 0x149   : > { %v862_v38 = vpop.f32.mrf.mxu2  ;;  %v1791_v51 = vsel %vm1220_vm3, %v1788_v42, %v6047_v36  ;;  %v2237_v25 = vmul.f32 %v4261_v7, %v4651_v2  ;;  %v2337_v11 = vrot.slane %v2235_v44, 1  ;;  %v2338_v32 = vrot.slane %v2236_v47, 1 }
 0x14a   : > { %v937_v17 = vmul.f32 %v4619_v15, %v862_v38  ;;  %v1891_v45 = vadd.f32 %v1791_v51, %v1649_v37  ;;  %v2132_v42 = vadd.f32 %v2031_v62, %v1890_v16  ;;  %v2477_v61 = vmul.f32 %v4275_v14, %v4572_v54 }
 0x14b   : > { %v805_v6 = vpop.f32.mrf.mxu0  ;;  %v2339_v3 = vsel %vm1220_vm3, %v2337_v11, %v2338_v32  ;;  %v2340_v38 = vrot.slane %v2237_v25, 1  ;;  %v2478_v37 = vmul.f32 %v4275_v14, %v4612_v27  ;;  %v2479_v51 = vmul.f32 %v4275_v14, %v4651_v2 }
 0x14c   : > { %v991_v20 = vmax.f32 %v937_v17, 0.0  ;;  %v914_v22 = vmul.f32 %v4619_v15, %v805_v6  ;;  %v2133_v36 = vadd.f32 %v2033_v53, %v1891_v45  ;;  %v2198_v7 = vadd.f32 %v2166_v63, %v2132_v42 }
 0x14d   : > { %v2341_v48 = vsel %vm1220_vm3, %v2338_v32, %v2340_v38  ;;  %v2579_v44 = vrot.slane %v2477_v61, 2  ;;  %v2580_v47 = vrot.slane %v2478_v37, 2  ;;  %v1080_v62 = vmul.f32 %v4636_v0, %v4387_v28 }
 0x14e   : > { %v4772_v46 = vmin.f32 %v991_v20, 6.0  ;;  %v968_v24 = vmax.f32 %v914_v22, 0.0  ;;  %v2199_v8 = vadd.f32 %v2167_v29, %v2133_v36  ;;  %v2440_v16 = vadd.f32 %v2339_v3, %v2198_v7 }
 0x14f   : > { %v2581_v6 = vsel %vm1463_vm4, %v2579_v44, %v2580_v47  ;;  %v2582_v53 = vrot.slane %v2479_v51, 2  ;;  %v1081_v63 = vmul.f32 %v4636_v0, %v4427_v12  ;;  %v1157_v29 = vmul.f32 %v4643_v18, %v4387_v28 }
 0x150   : > { %v4777_v17 = vmin.f32 %v968_v24, 6.0  ;;  %v2441_v45 = vadd.f32 %v2341_v48, %v2199_v8  ;;  %v2682_v20 = vadd.f32 %v2581_v6, %v2440_v16  ;;  %v1158_v36 = vmul.f32 %v4643_v18, %v4427_v12 }
 0x151   : > { %v865_v25 = vpop.f32.mrf.mxu2  ;;  %v2583_v32 = vsel %vm1463_vm4, %v2580_v47, %v2582_v53  ;;  %v1276_v51 = vrot.slane %v1157_v29, 1  ;;  %v1400_v16 = vmul.f32 %v4658_v55, %v4387_v28  ;;  %v1401_v6 = vmul.f32 %v4658_v55, %v4427_v12  ;;  %v4826_v29 = vpop.f32.mrf.mxu3 }
 0x152   : > { %v4788_v14 = vmul.f32 %v4643_v18, %v4777_v17  ;;  %v4792_v2 = vmul.f32 %v4658_v55, %v4777_v17  ;;  %v4796_v3 = vmul.f32 %v4704_v10, %v4777_v17  ;;  %v4800_v11 = vmul.f32 %v4723_v33, %v4777_v17 }
 0x153   : > { %v938_v22 = vmul.f32 %v4619_v15, %v865_v25  ;;  %v807_v42 = vpop.f32.mrf.mxu0  ;;  %v2683_v24 = vadd.f32 %v2583_v32, %v2441_v45  ;;  %v2718_v7 = vmul.f32 %v4326_v39, %v2682_v20  ;;  %v1277_v47 = vrot.slane %v1158_v36, 1  ;;  %v4822_v32 = vld [vmem:[%s5923_s3 + $0x3] ss:$0 sm:$0xff] }
 0x154   : > { %6048 = vst [vmem:[#allocation46_spill] sm:$0xff] %v4788_v14  ;;  %v915_v48 = vmul.f32 %v4619_v15, %v807_v42  ;;  %v6052_v42 = vrot.slane %v4477_v49, 1  ;;  %v1520_v12 = vrot.slane %v1401_v6, 2  ;;  %v1709_v28 = vmul.f32 %v4704_v10, %v4503_v34 }
 0x155   : > { %6049 = vst [vmem:[#allocation47_spill] sm:$0xff] %v4792_v2  ;;  %v992_v8 = vmax.f32 %v938_v22, 0.0  ;;  %v2719_v44 = vmul.f32 %v4326_v39, %v2683_v24  ;;  %v2754_v53 = vadd.f32 %v4343_v23, %v2718_v7  ;;  %v1632_v39 = vmul.f32 %v4822_v32, %v4503_v34 }
 0x156   : > { %6050 = vst [vmem:[#allocation48_spill] sm:$0xff] %v4796_v3  ;;  %v969_v45 = vmax.f32 %v915_v48, 0.0  ;;  %v1278_v22 = vsel %vm1220_vm3, %v1276_v51, %v1277_v47  ;;  %v1280_v36 = vsel %vm1220_vm3, %v1277_v47, %v6052_v42  ;;  %v1519_v24 = vrot.slane %v1400_v16, 2 }
 0x157   : > { %6051 = vst [vmem:[#allocation49_spill] sm:$0xff] %v4800_v11  ;;  %v4817_v25 = vmin.f32 %v992_v8, 6.0  ;;  %v2755_v20 = vadd.f32 %v4343_v23, %v2719_v44  ;;  %v2786_v7 = vmax.f32 %v2754_v53, 0.0  ;;  %v1355_v44 = vadd.f32 %v1278_v22, %v1080_v62 }
 0x158   : > { %v4849_v51 = vmin.f32 %v969_v45, 6.0  ;;  %v1356_v37 = vadd.f32 %v1280_v36, %v1081_v63  ;;  %v1710_v45 = vmul.f32 %v4704_v10, %v4535_v43  ;;  %v1951_v62 = vmul.f32 %v4723_v33, %v4503_v34 }
 0x159   : > { %v4835_v8 = vmul.f32 %v4643_v18, %v4817_v25  ;;  %v4839_v48 = vmul.f32 %v4658_v55, %v4817_v25  ;;  %v4843_v61 = vmul.f32 %v4704_v10, %v4817_v25  ;;  %v2787_v23 = vmax.f32 %v2755_v20, 0.0 }
 0x15a   : > { %v4847_v49 = vmul.f32 %v4723_v33, %v4817_v25  ;;  %6057 = vst [vmem:[#allocation54_spill] sm:$0xff] %v4849_v51  ;;  %v2818_v47 = vmin.f32 %v2786_v7, 6.0  ;;  %v1633_v20 = vmul.f32 %v4822_v32, %v4535_v43  ;;  %v1952_v22 = vmul.f32 %v4723_v33, %v4535_v43  ;;  %v867_v7 = vpop.f32.mrf.mxu2 }
 0x15b   : > { %6053 = vst [vmem:[#allocation50_spill] sm:$0xff] %v4835_v8  ;;  %v2819_v38 = vmin.f32 %v2787_v23, 6.0  ;;  %v810_v53 = vpop.f32.mrf.mxu0  ;;  %v1521_v63 = vsel %vm1463_vm4, %v1519_v24, %v1520_v12  ;;  %v6058_v6 = vrot.slane %v4481_v9, 2  ;;  %v2072_v16 = vrot.slane %v4588_v21, 2 }
 0x15c   : > { %6054 = vst [vmem:[#allocation51_spill] sm:$0xff] %v4839_v48  ;;  %v1598_v42 = vadd.f32 %v1521_v63, %v1355_v44  ;;  %v1827_v8 = vrot.slane %v1709_v28, 1  ;;  %v1828_v2 = vrot.slane %v1710_v45, 1  ;;  %v2069_v14 = vrot.slane %v1951_v62, 2  ;;  %v880_v44 = vpop.f32.mrf.mxu3  ;;  %v4887_v62 = vld [vmem:[%s5923_s3 + $0x7] ss:$0 sm:$0xff] }
 0x15d   : > { %6055 = vst [vmem:[#allocation52_spill] sm:$0xff] %v4843_v61  ;;  %v2847_v23 = vpack.c.bf16 %v2819_v38, %v2818_v47  ;;  %v1523_v36 = vsel %vm1463_vm4, %v1520_v12, %v6058_v6  ;;  %v4872_v61 = vld [vmem:[%s5923_s3 + $0x6] ss:$0 sm:$0xff]  ;;  %v6059_v28 = vrot.slane %v4585_v40, 1  ;;  %v939_v52 = vmul.f32 %v4619_v15, %v867_v7 }
 0x15e   : > { %6056 = vst [vmem:[#allocation53_spill] sm:$0xff] %v4847_v49  ;;  %v1599_v48 = vadd.f32 %v1523_v36, %v1356_v37  ;;  %v2070_v49 = vrot.slane %v1952_v22, 2  ;;  %v2182_v38 = vmul.f32 %v4872_v61, %v4604_v19  ;;  %v2183_v12 = vmul.f32 %v4872_v61, %v4631_v59 }
 0x15f   : > { %2947 = vmatmul.bf16.gmra.mxu1 %v2847_v23  ;;  %v1664_v9 = vadd.f32 %v1632_v39, %v1598_v42  ;;  %v1829_v37 = vsel %vm1220_vm3, %v1827_v8, %v1828_v2  ;;  %v1831_v24 = vsel %vm1220_vm3, %v1828_v2, %v6059_v28  ;;  %v2259_v39 = vmul.f32 %v4887_v62, %v4604_v19 }
 0x160   : > { %v1665_v21 = vadd.f32 %v1633_v20, %v1599_v48  ;;  %v2071_v47 = vsel %vm1463_vm4, %v2069_v14, %v2070_v49  ;;  %v2073_v45 = vsel %vm1463_vm4, %v2070_v49, %v2072_v16  ;;  %v2260_v8 = vmul.f32 %v4887_v62, %v4631_v59  ;;  %v4898_v14 = vld [vmem:[%s5923_s3 + $0x8] ss:$0 sm:$0xff] }
 0x161   : > { %v1906_v48 = vadd.f32 %v1829_v37, %v1664_v9  ;;  %v2261_v2 = vmul.f32 %v4887_v62, %v4693_v50  ;;  %v2501_v49 = vmul.f32 %v4898_v14, %v4604_v19  ;;  %v2377_v16 = vrot.slane %v2259_v39, 1 }
 0x162   : > { %v1907_v40 = vadd.f32 %v1831_v24, %v1665_v21  ;;  %v2378_v42 = vrot.slane %v2260_v8, 1  ;;  %v2502_v20 = vmul.f32 %v4898_v14, %v4631_v59  ;;  %v2503_v22 = vmul.f32 %v4898_v14, %v4693_v50  ;;  %v870_v3 = vpop.f32.mrf.mxu2 }
 0x163   : > { %v2148_v23 = vadd.f32 %v2071_v47, %v1906_v48  ;;  %v2380_v6 = vrot.slane %v2261_v2, 1  ;;  %v2619_v36 = vrot.slane %v2501_v49, 2  ;;  %v943_v28 = vmul.f32 %v4619_v15, %v4826_v29  ;;  %v812_v51 = vpop.f32.mrf.mxu0 }
 0x164   : > { %v2149_v63 = vadd.f32 %v2073_v45, %v1907_v40  ;;  %v2379_v9 = vsel %vm1220_vm3, %v2377_v16, %v2378_v42  ;;  %v2620_v21 = vrot.slane %v2502_v20, 2  ;;  %v2622_v37 = vrot.slane %v2503_v22, 2 }
 0x165   : > { %v2214_v24 = vadd.f32 %v2182_v38, %v2148_v23  ;;  %v2381_v8 = vsel %vm1220_vm3, %v2378_v42, %v2380_v6  ;;  %v997_v45 = vmax.f32 %v943_v28, 0.0  ;;  %v916_v48 = vmul.f32 %v4619_v15, %v810_v53 }
 0x166   : > { %v2215_v39 = vadd.f32 %v2183_v12, %v2149_v63  ;;  %v2621_v50 = vsel %vm1463_vm4, %v2619_v36, %v2620_v21  ;;  %v2623_v47 = vsel %vm1463_vm4, %v2620_v21, %v2622_v37  ;;  %v993_v49 = vmax.f32 %v939_v52, 0.0  ;;  %v882_v63 = vpop.f32.mrf.mxu3 }
 0x167   : > { %v2456_v40 = vadd.f32 %v2379_v9, %v2214_v24  ;;  %v944_v29 = vmul.f32 %v4619_v15, %v880_v44  ;;  %v4915_v38 = vmin.f32 %v997_v45, 6.0  ;;  %v970_v12 = vmax.f32 %v916_v48, 0.0  ;;  %v4927_v44 = vld [vmem:[%s5924_s4] ss:$0 sm:$0xff] }
 0x168   : > { %v2457_v2 = vadd.f32 %v2381_v8, %v2215_v39  ;;  %v940_v16 = vmul.f32 %v4619_v15, %v870_v3  ;;  %v917_v7 = vmul.f32 %v4619_v15, %v812_v51  ;;  %v4919_v22 = vmin.f32 %v993_v49, 6.0  ;;  %v4939_v8 = vld [vmem:[#allocation2] ss:$0 sm:$0xff] }
 0x169   : > { %v2698_v42 = vadd.f32 %v2621_v50, %v2456_v40  ;;  %v998_v23 = vmax.f32 %v944_v29, 0.0  ;;  %v4921_v6 = vmin.f32 %v970_v12, 6.0  ;;  %v945_v52 = vmul.f32 %v4619_v15, %v882_v63 }
 0x16a   : > { %v2699_v20 = vadd.f32 %v2623_v47, %v2457_v2  ;;  %6060 = vst [vmem:[#allocation55_spill] sm:$0xff] %v4919_v22  ;;  %v994_v53 = vmax.f32 %v940_v16, 0.0  ;;  %v971_v36 = vmax.f32 %v917_v7, 0.0  ;;  %v1088_v21 = vmul.f32 %v4636_v0, %v4919_v22 }
 0x16b   : > { %6061 = vst [vmem:[#allocation56_spill] sm:$0xff] %v4921_v6  ;;  %v2734_v3 = vmul.f32 %v4927_v44, %v2698_v42  ;;  %v1052_v9 = vmin.f32 %v998_v23, 6.0  ;;  %v999_v24 = vmax.f32 %v945_v52, 0.0  ;;  %v1169_v39 = vmul.f32 %v4643_v18, %v4919_v22 }
 0x16c   : > { %v2735_v51 = vmul.f32 %v4927_v44, %v2699_v20  ;;  %v4933_v37 = vmin.f32 %v994_v53, 6.0  ;;  %v4935_v28 = vmin.f32 %v971_v36, 6.0  ;;  %v1412_v63 = vmul.f32 %v4658_v55, %v4919_v22 }
 0x16d   : > { %v2770_v50 = vadd.f32 %v4939_v8, %v2734_v3  ;;  %v4944_v45 = vmul.f32 %v4704_v10, %v1052_v9  ;;  %v4947_v48 = vmul.f32 %v4723_v33, %v1052_v9  ;;  %v4950_v40 = vmul.f32 %v4887_v62, %v1052_v9 }
 0x16e   : > { %6062 = vst [vmem:[#allocation57_spill] sm:$0xff] %v4935_v28  ;;  %v2771_v47 = vadd.f32 %v4939_v8, %v2735_v51  ;;  %v4953_v2 = vmul.f32 %v4898_v14, %v1052_v9  ;;  %v4957_v49 = vmul.f32 %v4643_v18, %v4935_v28  ;;  %v4961_v29 = vmul.f32 %v4658_v55, %v4935_v28 }
 0x16f   : > { %6063 = vst [vmem:[#allocation58_spill] sm:$0xff] %v4947_v48  ;;  %v2802_v12 = vmax.f32 %v2770_v50, 0.0  ;;  %v4971_v3 = vmul.f32 %v4704_v10, %v4935_v28  ;;  %v4975_v51 = vmul.f32 %v4723_v33, %v4935_v28  ;;  %v1053_v9 = vmin.f32 %v999_v24, 6.0 }
 0x170   : > { %6064 = vst [vmem:[#allocation59_spill] sm:$0xff] %v4950_v40  ;;  %v2803_v16 = vmax.f32 %v2771_v47, 0.0  ;;  %v4979_v50 = vmul.f32 %v4643_v18, %v4933_v37  ;;  %v1296_v47 = vrot.slane %v1169_v39, 1  ;;  %v1640_v23 = vmul.f32 %v4822_v32, %v4653_v31 }
 0x171   : > { %6065 = vst [vmem:[#allocation60_spill] sm:$0xff] %v4953_v2  ;;  %v2834_v36 = vmin.f32 %v2802_v12, 6.0  ;;  %v1539_v20 = vrot.slane %v1412_v63, 2  ;;  %v1721_v42 = vmul.f32 %v4704_v10, %v4653_v31  ;;  %v4995_v39 = vmul.f32 %v4704_v10, %v4915_v38 }
 0x172   : > { %6066 = vst [vmem:[#allocation61_spill] sm:$0xff] %v4957_v49  ;;  %v2835_v52 = vmin.f32 %v2803_v16, 6.0  ;;  %v4986_v16 = vmul.f32 %v4658_v55, %v4933_v37  ;;  %v5979_v24 = vrot.slane %v4979_v50, 1  ;;  %v5002_v12 = vmul.f32 %v4723_v33, %v4915_v38 }
 0x173   : > { %6067 = vst [vmem:[#allocation62_spill] sm:$0xff] %v4961_v29  ;;  %v2190_v7 = vmul.f32 %v4872_v61, %v1053_v9  ;;  %v1847_v29 = vrot.slane %v1721_v42, 1  ;;  %v5981_v49 = vrot.slane %v4995_v39, 1  ;;  %v5021_v42 = vmul.f32 %v4898_v14, %v1053_v9 }
 0x174   : > { %6068 = vst [vmem:[#allocation63_spill] sm:$0xff] %v4971_v3  ;;  %v2855_v53 = vpack.c.bf16 %v2835_v52, %v2834_v36  ;;  %v1963_v52 = vmul.f32 %v4723_v33, %v4653_v31  ;;  %v1298_v63 = vsel %vm1220_vm3, %v1296_v47, %v5979_v24  ;;  %v6073_v2 = vrot.slane %v4986_v16, 2 }
 0x175   : > { %6069 = vst [vmem:[#allocation64_spill] sm:$0xff] %v4975_v51  ;;  %v1363_v36 = vadd.f32 %v1298_v63, %v1088_v21  ;;  %v5980_v51 = vrot.slane %v5002_v12, 2  ;;  %v1849_v3 = vsel %vm1220_vm3, %v1847_v29, %v5981_v49  ;;  %v1066_v24 = vmul.f32 %v4636_v0, %v4473_v58 }
 0x176   : > { %6070 = vst [vmem:[#allocation65_spill] sm:$0xff] %v4995_v39  ;;  %2987 = vmatmul.bf16.gmra.mxu3 %v2855_v53  ;;  %v5010_v53 = vmul.f32 %v4887_v62, %v1053_v9  ;;  %v1541_v40 = vsel %vm1463_vm4, %v1539_v20, %v6073_v2  ;;  %v2089_v31 = vrot.slane %v1963_v52, 2  ;;  %v1067_v20 = vmul.f32 %v4636_v0, %v4510_v5 }
 0x177   : > { %6071 = vst [vmem:[#allocation66_spill] sm:$0xff] %v5002_v12  ;;  %v1606_v21 = vadd.f32 %v1541_v40, %v1363_v36  ;;  %v1136_v52 = vmul.f32 %v4643_v18, %v4473_v58  ;;  %v1137_v9 = vmul.f32 %v4643_v18, %v4510_v5  ;;  %v1379_v63 = vmul.f32 %v4658_v55, %v4473_v58 }
 0x178   : > { %6072 = vst [vmem:[#allocation67_spill] sm:$0xff] %v5010_v53  ;;  %v2091_v2 = vsel %vm1463_vm4, %v2089_v31, %v5980_v51  ;;  %v1380_v40 = vmul.f32 %v4658_v55, %v4510_v5  ;;  %v1618_v31 = vmul.f32 %v4822_v32, %v4572_v54  ;;  %v1619_v51 = vmul.f32 %v4822_v32, %v4612_v27 }
 0x179   : > { %6074 = vst [vmem:[#allocation68_spill] sm:$0xff] %v5021_v42  ;;  %v1672_v36 = vadd.f32 %v1640_v23, %v1606_v21  ;;  %v1241_v47 = vrot.slane %v1136_v52, 1  ;;  %v1242_v49 = vrot.slane %v1137_v9, 1  ;;  %v1484_v22 = vrot.slane %v1379_v63, 2 }
 0x17a   : > { %v1485_v29 = vrot.slane %v1380_v40, 2  ;;  %v1688_v42 = vmul.f32 %v4704_v10, %v4572_v54  ;;  %v1689_v58 = vmul.f32 %v4704_v10, %v4612_v27  ;;  %v1930_v5 = vmul.f32 %v4723_v33, %v4572_v54 }
 0x17b   : > { %v1914_v28 = vadd.f32 %v1849_v3, %v1672_v36  ;;  %v1931_v23 = vmul.f32 %v4723_v33, %v4612_v27  ;;  %v1243_v21 = vsel %vm1220_vm3, %v1241_v47, %v1242_v49  ;;  %v6075_v52 = vrot.slane %v4550_v35, 1 }
 0x17c   : > { %v1486_v63 = vsel %vm1463_vm4, %v1484_v22, %v1485_v29  ;;  %v6076_v40 = vrot.slane %v4553_v41, 2  ;;  %v1341_v6 = vadd.f32 %v1243_v21, %v1066_v24  ;;  %v1792_v53 = vrot.slane %v1688_v42, 1 }
 0x17d   : > { %v1245_v9 = vsel %vm1220_vm3, %v1242_v49, %v6075_v52  ;;  %v2156_v36 = vadd.f32 %v2091_v2, %v1914_v28  ;;  %v1793_v54 = vrot.slane %v1689_v58, 1  ;;  %v2034_v12 = vrot.slane %v1930_v5, 2 }
 0x17e   : > { %v1488_v3 = vsel %vm1463_vm4, %v1485_v29, %v6076_v40  ;;  %v1342_v11 = vadd.f32 %v1245_v9, %v1067_v20  ;;  %v2035_v48 = vrot.slane %v1931_v23, 2  ;;  %v2037_v27 = vrot.slane %v4678_v1, 2 }
 0x17f   : > { %v5060_v47 = vadd.f32 %v2190_v7, %v2156_v36  ;;  %v1584_v35 = vadd.f32 %v1486_v63, %v1341_v6  ;;  %v2168_v22 = vmul.f32 %v4872_v61, %v4695_v30  ;;  %v1794_v41 = vsel %vm1220_vm3, %v1792_v53, %v1793_v54 }
 0x180   : > { %v1585_v39 = vadd.f32 %v1488_v3, %v1342_v11  ;;  %v6077_v49 = vrot.slane %v4674_v60, 1  ;;  %v2036_v24 = vsel %vm1463_vm4, %v2034_v12, %v2035_v48  ;;  %v2038_v42 = vsel %vm1463_vm4, %v2035_v48, %v2037_v27  ;;  %v872_v48 = vpop.f32.mrf.mxu2 }
 0x181   : > { %v1650_v2 = vadd.f32 %v1618_v31, %v1584_v35  ;;  %v2169_v1 = vmul.f32 %v4872_v61, %v4747_v4  ;;  %v2238_v11 = vmul.f32 %v4887_v62, %v4695_v30  ;;  %v2239_v6 = vmul.f32 %v4887_v62, %v4747_v4 }
 0x182   : > { %v1796_v28 = vsel %vm1220_vm3, %v1793_v54, %v6077_v49  ;;  %v1651_v20 = vadd.f32 %v1619_v51, %v1585_v39  ;;  %v2240_v60 = vmul.f32 %v4887_v62, %v4777_v17  ;;  %v2480_v54 = vmul.f32 %v4898_v14, %v4695_v30 }
 0x183   : > { %v2481_v27 = vmul.f32 %v4898_v14, %v4747_v4  ;;  %v1892_v7 = vadd.f32 %v1794_v41, %v1650_v2  ;;  %v2342_v12 = vrot.slane %v2238_v11, 1  ;;  %v2482_v39 = vmul.f32 %v4898_v14, %v4777_v17 }
 0x184   : > { %v1893_v51 = vadd.f32 %v1796_v28, %v1651_v20  ;;  %v2343_v53 = vrot.slane %v2239_v6, 1  ;;  %v2345_v29 = vrot.slane %v2240_v60, 1  ;;  %v2584_v31 = vrot.slane %v2480_v54, 2 }
 0x185   : > { %v2585_v58 = vrot.slane %v2481_v27, 2  ;;  %v2134_v5 = vadd.f32 %v2036_v24, %v1892_v7  ;;  %v2587_v21 = vrot.slane %v2482_v39, 2  ;;  %v941_v52 = vmul.f32 %v4619_v15, %v872_v48 }
 0x186   : > { %v2135_v23 = vadd.f32 %v2038_v42, %v1893_v51  ;;  %v2344_v9 = vsel %vm1220_vm3, %v2342_v12, %v2343_v53  ;;  %v2346_v63 = vsel %vm1220_vm3, %v2343_v53, %v2345_v29  ;;  %v1082_v3 = vmul.f32 %v4636_v0, %v4503_v34 }
 0x187   : > { %v2586_v40 = vsel %vm1463_vm4, %v2584_v31, %v2585_v58  ;;  %v2200_v36 = vadd.f32 %v2168_v22, %v2134_v5  ;;  %v2588_v35 = vsel %vm1463_vm4, %v2585_v58, %v2587_v21  ;;  %v995_v41 = vmax.f32 %v941_v52, 0.0 }
 0x188   : > { %v2201_v17 = vadd.f32 %v2169_v1, %v2135_v23  ;;  %v1083_v49 = vmul.f32 %v4636_v0, %v4535_v43  ;;  %v1160_v28 = vmul.f32 %v4643_v18, %v4503_v34  ;;  %v1161_v24 = vmul.f32 %v4643_v18, %v4535_v43 }
 0x189   : > { %v1403_v42 = vmul.f32 %v4658_v55, %v4503_v34  ;;  %v2442_v2 = vadd.f32 %v2344_v9, %v2200_v36  ;;  %v5099_v11 = vmin.f32 %v995_v41, 6.0  ;;  %v1404_v22 = vmul.f32 %v4658_v55, %v4535_v43 }
 0x18a   : > { %v2443_v20 = vadd.f32 %v2346_v63, %v2201_v17  ;;  %v1281_v1 = vrot.slane %v1160_v28, 1  ;;  %v1282_v6 = vrot.slane %v1161_v24, 1  ;;  %v1634_v54 = vmul.f32 %v4822_v32, %v4604_v19 }
 0x18b   : > { %v1524_v60 = vrot.slane %v1403_v42, 2  ;;  %v2684_v27 = vadd.f32 %v2586_v40, %v2442_v2  ;;  %v5107_v7 = vmul.f32 %v4643_v18, %v5099_v11  ;;  %v5111_v34 = vmul.f32 %v4658_v55, %v5099_v11 }
 0x18c   : > { %v2685_v48 = vadd.f32 %v2588_v35, %v2443_v20  ;;  %v5115_v51 = vmul.f32 %v4704_v10, %v5099_v11  ;;  %v5119_v43 = vmul.f32 %v4723_v33, %v5099_v11  ;;  %v1283_v12 = vsel %vm1220_vm3, %v1281_v1, %v1282_v6 }
 0x18d   : > { %v6078_v39 = vrot.slane %v4579_v13, 1  ;;  %v2720_v29 = vmul.f32 %v4927_v44, %v2684_v27  ;;  %v1299_v58 = vrot.slane %v5107_v7, 1  ;;  %v1542_v5 = vrot.slane %v5111_v34, 2 }
 0x18e   : > { %v2721_v31 = vmul.f32 %v4927_v44, %v2685_v48  ;;  %v1845_v23 = vrot.slane %v5115_v51, 1  ;;  %v1357_v21 = vadd.f32 %v1283_v12, %v1082_v3  ;;  %v1525_v9 = vrot.slane %v1404_v22, 2 }
 0x18f   : > { %v1285_v53 = vsel %vm1220_vm3, %v1282_v6, %v6078_v39  ;;  %v2756_v63 = vadd.f32 %v4939_v8, %v2720_v29  ;;  %v1635_v13 = vmul.f32 %v4822_v32, %v4631_v59  ;;  %v1712_v36 = vmul.f32 %v4704_v10, %v4604_v19 }
 0x190   : > { %v1358_v52 = vadd.f32 %v1285_v53, %v1083_v49  ;;  %v2757_v40 = vadd.f32 %v4939_v8, %v2721_v31  ;;  %v1526_v17 = vsel %vm1463_vm4, %v1524_v60, %v1525_v9  ;;  %v6079_v35 = vrot.slane %v4582_v57, 2  ;;  %v885_v60 = vpop.f32.mrf.mxu3  ;;  %v6081_v31 = vld [vmem:[#allocation45_spill] sm:$0xff] }
 0x191   : > { %v1713_v3 = vmul.f32 %v4704_v10, %v4631_v59  ;;  %v1954_v49 = vmul.f32 %v4723_v33, %v4604_v19  ;;  %v2788_v28 = vmax.f32 %v2756_v63, 0.0  ;;  %v1600_v42 = vadd.f32 %v1526_v17, %v1357_v21 }
 0x192   : > { %v1528_v41 = vsel %vm1463_vm4, %v1525_v9, %v6079_v35  ;;  %v2789_v24 = vmax.f32 %v2757_v40, 0.0  ;;  %v1832_v20 = vrot.slane %v1712_v36, 1  ;;  %v1955_v1 = vmul.f32 %v4723_v33, %v4631_v59 }
 0x193   : > { %v1601_v2 = vadd.f32 %v1528_v41, %v1358_v52  ;;  %v1833_v22 = vrot.slane %v1713_v3, 1  ;;  %v2074_v6 = vrot.slane %v1954_v49, 2  ;;  %v2820_v57 = vmin.f32 %v2788_v28, 6.0 }
 0x194   : > { %v2821_v27 = vmin.f32 %v2789_v24, 6.0  ;;  %v1666_v48 = vadd.f32 %v1634_v54, %v1600_v42  ;;  %v6080_v39 = vrot.slane %v4718_v56, 1  ;;  %v2075_v29 = vrot.slane %v1955_v1, 2 }
 0x195   : > { %v1667_v7 = vadd.f32 %v1635_v13, %v1601_v2  ;;  %v1834_v12 = vsel %vm1220_vm3, %v1832_v20, %v1833_v22  ;;  %v2077_v21 = vrot.slane %v6081_v31, 2  ;;  %v2184_v40 = vmul.f32 %v4872_v61, %v4742_v26 }
 0x196   : > { %v1836_v53 = vsel %vm1220_vm3, %v1833_v22, %v6080_v39  ;;  %v2848_v52 = vpack.c.bf16 %v2821_v27, %v2820_v57  ;;  %v1908_v9 = vadd.f32 %v1834_v12, %v1666_v48  ;;  %v2076_v36 = vsel %vm1463_vm4, %v2074_v6, %v2075_v29 }
 0x197   : > { %v1909_v63 = vadd.f32 %v1836_v53, %v1667_v7  ;;  %v2078_v54 = vsel %vm1463_vm4, %v2075_v29, %v2077_v21  ;;  %v2185_v13 = vmul.f32 %v4872_v61, %v4772_v46  ;;  %v2262_v56 = vmul.f32 %v4887_v62, %v4742_v26 }
 0x198   : > { %2952 = vmatmul.bf16.gmra.mxu1 %v2848_v52  ;;  %v2150_v17 = vadd.f32 %v2076_v36, %v1908_v9  ;;  %v2263_v41 = vmul.f32 %v4887_v62, %v4772_v46  ;;  %v2264_v3 = vmul.f32 %v4887_v62, %v4817_v25  ;;  %v2504_v28 = vmul.f32 %v4898_v14, %v4742_v26  ;;  %v887_v9 = vpop.f32.mrf.mxu3 }
 0x199   : > { %v2151_v35 = vadd.f32 %v2078_v54, %v1909_v63  ;;  %v2382_v49 = vrot.slane %v2262_v56, 1  ;;  %v2505_v24 = vmul.f32 %v4898_v14, %v4772_v46  ;;  %v2506_v42 = vmul.f32 %v4898_v14, %v4817_v25  ;;  %v6085_v56 = vld [vmem:[#allocation65_spill] sm:$0xff] }
 0x19a   : > { %v2216_v2 = vadd.f32 %v2184_v40, %v2150_v17  ;;  %v2383_v22 = vrot.slane %v2263_v41, 1  ;;  %v2385_v1 = vrot.slane %v2264_v3, 1  ;;  %v2624_v6 = vrot.slane %v2504_v28, 2  ;;  %v6087_v41 = vld [vmem:[#allocation58_spill] sm:$0xff] }
 0x19b   : > { %v2217_v20 = vadd.f32 %v2185_v13, %v2151_v35  ;;  %v2625_v57 = vrot.slane %v2505_v24, 2  ;;  %v2627_v27 = vrot.slane %v2506_v42, 2  ;;  %v946_v48 = vmul.f32 %v4619_v15, %v885_v60  ;;  %v6091_v42 = vld [vmem:[#allocation38_spill] sm:$0xff] }
 0x19c   : > { %v2384_v7 = vsel %vm1220_vm3, %v2382_v49, %v2383_v22  ;;  %v2386_v12 = vsel %vm1220_vm3, %v2383_v22, %v2385_v1  ;;  %v1089_v39 = vmul.f32 %v4636_v0, %v4933_v37  ;;  %v6082_v53 = vrot.slane %v4979_v50, 1  ;;  %v6089_v49 = vld [vmem:[#allocation66_spill] sm:$0xff]  ;;  %v6092_v22 = vld [vmem:[#allocation39_spill] sm:$0xff] }
 0x19d   : > { %v2458_v29 = vadd.f32 %v2384_v7, %v2216_v2  ;;  %v2459_v31 = vadd.f32 %v2386_v12, %v2217_v20  ;;  %v2626_v21 = vsel %vm1463_vm4, %v2624_v6, %v2625_v57  ;;  %v2628_v52 = vsel %vm1463_vm4, %v2625_v57, %v2627_v27 }
 0x19e   : > { %v1300_v25 = vsel %vm1220_vm3, %v6082_v53, %v1299_v58  ;;  %v1000_v63 = vmax.f32 %v946_v48, 0.0  ;;  %v6083_v40 = vrot.slane %v4986_v16, 2  ;;  %v1641_v50 = vmul.f32 %v4822_v32, %v4915_v38 }
 0x19f   : > { %v1364_v60 = vadd.f32 %v1300_v25, %v1089_v39  ;;  %v2700_v54 = vadd.f32 %v2626_v21, %v2458_v29  ;;  %v2701_v58 = vadd.f32 %v2628_v52, %v2459_v31  ;;  %v6084_v13 = vrot.slane %v4944_v45, 1 }
 0x1a0   : > { %v1543_v36 = vsel %vm1463_vm4, %v6083_v40, %v1542_v5  ;;  %v6086_v17 = vrot.slane %v6085_v56, 1  ;;  %v6088_v3 = vrot.slane %v6087_v41, 2  ;;  %v6090_v28 = vrot.slane %v6089_v49, 2  ;;  %v6093_v40 = vld [vmem:[#allocation67_spill] sm:$0xff] }
 0x1a1   : > { %v1054_v16 = vmin.f32 %v1000_v63, 6.0  ;;  %v1607_v24 = vadd.f32 %v1543_v36, %v1364_v60  ;;  %v947_v5 = vmul.f32 %v4619_v15, %v887_v9  ;;  %v1068_v2 = vmul.f32 %v4636_v0, %v6091_v42 }
 0x1a2   : > { %v1851_v35 = vsel %vm1220_vm3, %v6086_v17, %v6084_v13  ;;  %v2093_v34 = vsel %vm1463_vm4, %v6090_v28, %v6088_v3  ;;  %v2736_v20 = vmul.f32 %v4927_v44, %v2700_v54  ;;  %v2737_v45 = vmul.f32 %v4927_v44, %v2701_v58  ;;  %v6095_v3 = vld [vmem:[#allocation41_spill] sm:$0xff] }
 0x1a3   : > { %v1069_v1 = vmul.f32 %v4636_v0, %v6092_v22  ;;  %v1139_v6 = vmul.f32 %v4643_v18, %v6091_v42  ;;  %v1673_v57 = vadd.f32 %v1641_v50, %v1607_v24  ;;  %v2191_v27 = vmul.f32 %v4872_v61, %v1054_v16 }
 0x1a4   : > { %v2272_v48 = vmul.f32 %v4887_v62, %v1054_v16  ;;  %v5208_v15 = vmul.f32 %v4898_v14, %v1054_v16  ;;  %v2772_v7 = vadd.f32 %v4939_v8, %v2736_v20  ;;  %v2773_v12 = vadd.f32 %v4939_v8, %v2737_v45 }
 0x1a5   : > { %v1001_v39 = vmax.f32 %v947_v5, 0.0  ;;  %v1140_v53 = vmul.f32 %v4643_v18, %v6092_v22  ;;  %v1915_v0 = vadd.f32 %v1851_v35, %v1673_v57  ;;  %v1246_v31 = vrot.slane %v1139_v6, 1 }
 0x1a6   : > { %v2398_v25 = vrot.slane %v2272_v48, 1  ;;  %v2640_v29 = vrot.slane %v5208_v15, 2  ;;  %v2804_v21 = vmax.f32 %v2772_v7, 0.0  ;;  %v2805_v52 = vmax.f32 %v2773_v12, 0.0  ;;  %v6097_v7 = vld [vmem:[#allocation42_spill] sm:$0xff] }
 0x1a7   : > { %v1055_v9 = vmin.f32 %v1001_v39, 6.0  ;;  %v1247_v63 = vrot.slane %v1140_v53, 1  ;;  %v2157_v60 = vadd.f32 %v2093_v34, %v1915_v0  ;;  %v6094_v36 = vrot.slane %v6093_v40, 1 }
 0x1a8   : > { %v1382_v54 = vmul.f32 %v4658_v55, %v6091_v42  ;;  %v1383_v18 = vmul.f32 %v4658_v55, %v6092_v22  ;;  %v2836_v58 = vmin.f32 %v2804_v21, 6.0  ;;  %v2837_v13 = vmin.f32 %v2805_v52, 6.0 }
 0x1a9   : > { %v5218_v50 = vsel %vm1220_vm3, %v6094_v36, %v2398_v25  ;;  %v2273_v56 = vmul.f32 %v4887_v62, %v1055_v9  ;;  %v2515_v17 = vmul.f32 %v4898_v14, %v1055_v9  ;;  %v2223_v35 = vadd.f32 %v2191_v27, %v2157_v60  ;;  %v6099_v9 = vld [vmem:[#allocation49_spill] sm:$0xff]  ;;  %v6100_v60 = vld [vmem:[#allocation54_spill] sm:$0xff] }
 0x1aa   : > { %v1248_v41 = vsel %vm1220_vm3, %v1246_v31, %v1247_v63  ;;  %v6096_v49 = vrot.slane %v6095_v3, 1  ;;  %v1489_v34 = vrot.slane %v1382_v54, 2  ;;  %v2856_v16 = vpack.c.bf16 %v2837_v13, %v2836_v58  ;;  %v6101_v58 = vld [vmem:[#allocation48_spill] sm:$0xff] }
 0x1ab   : > { %v2400_v24 = vrot.slane %v2273_v56, 1  ;;  %v2642_v5 = vrot.slane %v2515_v17, 2  ;;  %v1343_v42 = vadd.f32 %v1248_v41, %v1068_v2  ;;  %v1490_v55 = vrot.slane %v1383_v18, 2 }
 0x1ac   : > { %v1250_v28 = vsel %vm1220_vm3, %v1247_v63, %v6096_v49  ;;  %v1620_v45 = vmul.f32 %v4822_v32, %v4695_v30  ;;  %v1621_v22 = vmul.f32 %v4822_v32, %v4747_v4  ;;  %2992 = vmatmul.bf16.gmra.mxu3 %v2856_v16  ;;  %v1691_v27 = vmul.f32 %v4704_v10, %v4695_v30  ;;  %v5268_v49 = vld [vmem:[#allocation5] ss:$0 sm:$0xff]  ;;  %v6104_v16 = vld [vmem:[#allocation57_spill] sm:$0xff] }
 0x1ad   : > { %v1344_v20 = vadd.f32 %v1250_v28, %v1069_v1  ;;  %v2401_v6 = vsel %vm1220_vm3, %v2398_v25, %v2400_v24  ;;  %v5238_v57 = vsel %vm1463_vm4, %v2640_v29, %v2642_v5  ;;  %v1692_v2 = vmul.f32 %v4704_v10, %v4747_v4 }
 0x1ae   : > { %v5244_v1 = vadd.f32 %v2401_v6, %v2223_v35  ;;  %v1491_v48 = vsel %vm1463_vm4, %v1489_v34, %v1490_v55  ;;  %v6098_v12 = vrot.slane %v6097_v7, 2  ;;  %v1933_v53 = vmul.f32 %v4723_v33, %v4695_v30  ;;  %v6103_v35 = vld [vmem:[#allocation56_spill] sm:$0xff]  ;;  %v5282_v6 = vld [vmem:[#allocation7] ss:$0 sm:$0xff] }
 0x1af   : > { %v1586_v0 = vadd.f32 %v1491_v48, %v1343_v42  ;;  %v1797_v31 = vrot.slane %v1691_v27, 1  ;;  %v1798_v21 = vrot.slane %v1692_v2, 1  ;;  %v1934_v52 = vmul.f32 %v4723_v33, %v4747_v4  ;;  %v2933_v42 = vpop.f32.mrf.mxu1 }
 0x1b0   : > { %v1493_v39 = vsel %vm1463_vm4, %v1490_v55, %v6098_v12  ;;  %v2039_v10 = vrot.slane %v1933_v53, 2  ;;  %v2042_v63 = vrot.slane %v6099_v9, 2  ;;  %v2170_v40 = vmul.f32 %v4872_v61, %v6100_v60 }
 0x1b1   : > { %v1587_v25 = vadd.f32 %v1493_v39, %v1344_v20  ;;  %v1652_v36 = vadd.f32 %v1620_v45, %v1586_v0  ;;  %v1799_v18 = vsel %vm1220_vm3, %v1797_v31, %v1798_v21  ;;  %v6102_v13 = vrot.slane %v6101_v58, 1 }
 0x1b2   : > { %v2040_v17 = vrot.slane %v1934_v52, 2  ;;  %v2171_v33 = vmul.f32 %v4872_v61, %v6103_v35  ;;  %v2241_v41 = vmul.f32 %v4887_v62, %v6100_v60  ;;  %v2242_v3 = vmul.f32 %v4887_v62, %v6103_v35 }
 0x1b3   : > { %v1653_v54 = vadd.f32 %v1621_v22, %v1587_v25  ;;  %v1801_v56 = vsel %vm1220_vm3, %v1798_v21, %v6102_v13  ;;  %v1894_v28 = vadd.f32 %v1799_v18, %v1652_v36  ;;  %v2243_v24 = vmul.f32 %v4887_v62, %v6104_v16  ;;  %v5298_v36 = vld [vmem:[%s5923_s3] ss:$0 sm:$0xff] }
 0x1b4   : > { %v2483_v5 = vmul.f32 %v4898_v14, %v6100_v60  ;;  %v2041_v20 = vsel %vm1463_vm4, %v2039_v10, %v2040_v17  ;;  %v2043_v55 = vsel %vm1463_vm4, %v2040_v17, %v2042_v63  ;;  %v2347_v45 = vrot.slane %v2241_v41, 1  ;;  %v3085_v10 = vld [vmem:[%s5280_s21] sm:$0xff] }
 0x1b5   : > { %v1895_v34 = vadd.f32 %v1801_v56, %v1653_v54  ;;  %v2348_v22 = vrot.slane %v2242_v3, 1  ;;  %v2136_v27 = vadd.f32 %v2041_v20, %v1894_v28  ;;  %v2350_v48 = vrot.slane %v2243_v24, 1  ;;  %v5308_v56 = vld [vmem:[%s5923_s3 + $0x1] ss:$0 sm:$0xff]  ;;  %v5318_v28 = vld [vmem:[%s5923_s3 + $0x2] ss:$0 sm:$0xff] }
 0x1b6   : > { %v2484_v7 = vmul.f32 %v4898_v14, %v6103_v35  ;;  %v2485_v39 = vmul.f32 %v4898_v14, %v6104_v16  ;;  %v2589_v53 = vrot.slane %v2483_v5, 2  ;;  %v3017_v0 = vmul.f32 %v5268_v49, %v2933_v42 }
 0x1b7   : > { %v2137_v2 = vadd.f32 %v2043_v55, %v1895_v34  ;;  %v2349_v12 = vsel %vm1220_vm3, %v2347_v45, %v2348_v22  ;;  %v2202_v25 = vadd.f32 %v2170_v40, %v2136_v27  ;;  %v2351_v21 = vsel %vm1220_vm3, %v2348_v22, %v2350_v48 }
 0x1b8   : > { %v2590_v52 = vrot.slane %v2484_v7, 2  ;;  %v2592_v9 = vrot.slane %v2485_v39, 2  ;;  %v3053_v63 = vadd.f32 %v5282_v6, %v3017_v0  ;;  %v1084_v54 = vmul.f32 %v5298_v36, %v4604_v19 }
 0x1b9   : > { %v2203_v31 = vadd.f32 %v2171_v33, %v2137_v2  ;;  %v1085_v18 = vmul.f32 %v5298_v36, %v4631_v59  ;;  %v2444_v40 = vadd.f32 %v2349_v12, %v2202_v25  ;;  %v1163_v17 = vmul.f32 %v5308_v56, %v4604_v19  ;;  %v6105_v12 = vld [vmem:[#allocation43_spill] sm:$0xff] }
 0x1ba   : > { %v2591_v13 = vsel %vm1463_vm4, %v2589_v53, %v2590_v52  ;;  %v2593_v33 = vsel %vm1463_vm4, %v2590_v52, %v2592_v9  ;;  %v3117_v41 = vadd.f32 %v3085_v10, %v3053_v63  ;;  %v1164_v3 = vmul.f32 %v5308_v56, %v4631_v59  ;;  %v5349_v25 = vld [vmem:[%s5923_s3 + $0x5] ss:$0 sm:$0xff] }
 0x1bb   : > { %v2445_v58 = vadd.f32 %v2351_v21, %v2203_v31  ;;  %v1406_v34 = vmul.f32 %v5318_v28, %v4604_v19  ;;  %v2686_v16 = vadd.f32 %v2591_v13, %v2444_v40  ;;  %v1286_v5 = vrot.slane %v1163_v17, 1  ;;  %v6107_v40 = vld [vmem:[#allocation44_spill] sm:$0xff] }
 0x1bc   : > { %v1407_v42 = vmul.f32 %v5318_v28, %v4631_v59  ;;  %3149 = vst [vmem:[%s5324_s24] sm:$0xff] %v3117_v41  ;;  %v1287_v20 = vrot.slane %v1164_v3, 1  ;;  %v1636_v45 = vmul.f32 %v4822_v32, %v4742_v26  ;;  %v1637_v22 = vmul.f32 %v4822_v32, %v4772_v46  ;;  %v5336_v59 = vld [vmem:[%s5923_s3 + $0x4] ss:$0 sm:$0xff] }
 0x1bd   : > { %v2687_v24 = vadd.f32 %v2593_v33, %v2445_v58  ;;  %v1529_v55 = vrot.slane %v1406_v34, 2  ;;  %v2722_v19 = vmul.f32 %v4927_v44, %v2686_v16  ;;  %v1715_v48 = vmul.f32 %v5336_v59, %v4742_v26 }
 0x1be   : > { %v1530_v2 = vrot.slane %v1407_v42, 2  ;;  %v1288_v7 = vsel %vm1220_vm3, %v1286_v5, %v1287_v20  ;;  %v6106_v39 = vrot.slane %v6105_v12, 1  ;;  %v1716_v0 = vmul.f32 %v5336_v59, %v4772_v46  ;;  %v6109_v5 = vld [vmem:[#allocation52_spill] sm:$0xff] }
 0x1bf   : > { %v2723_v27 = vmul.f32 %v4927_v44, %v2687_v24  ;;  %v1957_v31 = vmul.f32 %v5349_v25, %v4742_v26  ;;  %v2758_v21 = vadd.f32 %v4939_v8, %v2722_v19  ;;  %v1359_v10 = vadd.f32 %v1288_v7, %v1084_v54  ;;  %v6111_v7 = vld [vmem:[#allocation53_spill] sm:$0xff] }
 0x1c0   : > { %v1290_v53 = vsel %vm1220_vm3, %v1287_v20, %v6106_v39  ;;  %v1531_v63 = vsel %vm1463_vm4, %v1529_v55, %v1530_v2  ;;  %v6108_v58 = vrot.slane %v6107_v40, 2  ;;  %v1837_v17 = vrot.slane %v1715_v48, 1  ;;  %v6112_v39 = vld [vmem:[#allocation55_spill] sm:$0xff]  ;;  %v2935_v40 = vpop.f32.mrf.mxu1 }
 0x1c1   : > { %v2759_v52 = vadd.f32 %v4939_v8, %v2723_v27  ;;  %v1360_v9 = vadd.f32 %v1290_v53, %v1085_v18  ;;  %v1838_v33 = vrot.slane %v1716_v0, 1  ;;  %v2790_v41 = vmax.f32 %v2758_v21, 0.0 }
 0x1c2   : > { %v1533_v13 = vsel %vm1463_vm4, %v1530_v2, %v6108_v58  ;;  %v1602_v34 = vadd.f32 %v1531_v63, %v1359_v10  ;;  %v6110_v42 = vrot.slane %v6109_v5, 1  ;;  %v1958_v54 = vmul.f32 %v5349_v25, %v4772_v46 }
 0x1c3   : > { %v2791_v3 = vmax.f32 %v2759_v52, 0.0  ;;  %v1603_v16 = vadd.f32 %v1533_v13, %v1360_v9  ;;  %v1839_v24 = vsel %vm1220_vm3, %v1837_v17, %v1838_v33  ;;  %v2079_v18 = vrot.slane %v1957_v31, 2 }
 0x1c4   : > { %v1841_v20 = vsel %vm1220_vm3, %v1838_v33, %v6110_v42  ;;  %v2822_v55 = vmin.f32 %v2790_v41, 6.0  ;;  %v1668_v27 = vadd.f32 %v1636_v45, %v1602_v34  ;;  %v2080_v48 = vrot.slane %v1958_v54, 2 }
 0x1c5   : > { %v2823_v19 = vmin.f32 %v2791_v3, 6.0  ;;  %v1669_v2 = vadd.f32 %v1637_v22, %v1603_v16  ;;  %v2082_v12 = vrot.slane %v6111_v7, 2  ;;  %v2186_v53 = vmul.f32 %v4872_v61, %v6112_v39 }
 0x1c6   : > { %v2187_v0 = vmul.f32 %v4872_v61, %v4933_v37  ;;  %v1910_v52 = vadd.f32 %v1839_v24, %v1668_v27  ;;  %v2265_v9 = vmul.f32 %v4887_v62, %v6112_v39  ;;  %v2081_v31 = vsel %vm1463_vm4, %v2079_v18, %v2080_v48  ;;  %v3086_v27 = vld [vmem:[%s5280_s21 + $0x8] sm:$0xff] }
 0x1c7   : > { %v2849_v21 = vpack.c.bf16 %v2823_v19, %v2822_v55  ;;  %v1911_v10 = vadd.f32 %v1841_v20, %v1669_v2  ;;  %v2083_v45 = vsel %vm1463_vm4, %v2080_v48, %v2082_v12  ;;  %v2266_v22 = vmul.f32 %v4887_v62, %v4933_v37 }
 0x1c8   : > { %v2267_v63 = vmul.f32 %v4887_v62, %v5099_v11  ;;  %v2152_v58 = vadd.f32 %v2081_v31, %v1910_v52  ;;  %v2387_v17 = vrot.slane %v2265_v9, 1  ;;  %v2507_v33 = vmul.f32 %v4898_v14, %v6112_v39 }
 0x1c9   : > { %2957 = vmatmul.bf16.gmra.mxu1 %v2849_v21  ;;  %v2153_v13 = vadd.f32 %v2083_v45, %v1911_v10  ;;  %v2388_v41 = vrot.slane %v2266_v22, 1  ;;  %v2508_v34 = vmul.f32 %v4898_v14, %v4933_v37  ;;  %v2509_v16 = vmul.f32 %v4898_v14, %v5099_v11 }
 0x1ca   : > { %v2390_v3 = vrot.slane %v2267_v63, 1  ;;  %v2218_v24 = vadd.f32 %v2186_v53, %v2152_v58  ;;  %v2629_v42 = vrot.slane %v2507_v33, 2  ;;  %v3018_v20 = vmul.f32 %v5268_v49, %v2935_v40  ;;  %v5411_v33 = vld [vmem:[%s5923_s3 + $0x3] ss:$0 sm:$0xff] }
 0x1cb   : > { %v2219_v5 = vadd.f32 %v2187_v0, %v2153_v13  ;;  %v2389_v54 = vsel %vm1220_vm3, %v2387_v17, %v2388_v41  ;;  %v2630_v55 = vrot.slane %v2508_v34, 2  ;;  %v2632_v19 = vrot.slane %v2509_v16, 2 }
 0x1cc   : > { %v2391_v18 = vsel %vm1220_vm3, %v2388_v41, %v2390_v3  ;;  %v2460_v2 = vadd.f32 %v2389_v54, %v2218_v24  ;;  %v3054_v7 = vadd.f32 %v5282_v6, %v3018_v20  ;;  %v1070_v11 = vmul.f32 %v5298_v36, %v4695_v30 }
 0x1cd   : > { %v2461_v48 = vadd.f32 %v2391_v18, %v2219_v5  ;;  %v2631_v12 = vsel %vm1463_vm4, %v2629_v42, %v2630_v55  ;;  %v2633_v53 = vsel %vm1463_vm4, %v2630_v55, %v2632_v19  ;;  %v1071_v0 = vmul.f32 %v5298_v36, %v4747_v4  ;;  %v6113_v5 = vld [vmem:[#allocation46_spill] sm:$0xff]  ;;  %v6115_v19 = vld [vmem:[#allocation47_spill] sm:$0xff] }
 0x1ce   : > { %v1142_v21 = vmul.f32 %v5308_v56, %v4695_v30  ;;  %v2702_v52 = vadd.f32 %v2631_v12, %v2460_v2  ;;  %v3118_v9 = vadd.f32 %v3086_v27, %v3054_v7  ;;  %v1143_v31 = vmul.f32 %v5308_v56, %v4747_v4 }
 0x1cf   : > { %v2703_v10 = vadd.f32 %v2633_v53, %v2461_v48  ;;  %v1385_v22 = vmul.f32 %v5318_v28, %v4695_v30  ;;  %v1386_v63 = vmul.f32 %v5318_v28, %v4747_v4  ;;  %v1622_v40 = vmul.f32 %v4822_v32, %v6100_v60 }
 0x1d0   : > { %v1251_v45 = vrot.slane %v1142_v21, 1  ;;  %v2738_v58 = vmul.f32 %v4927_v44, %v2702_v52  ;;  %3150 = vst [vmem:[%s5324_s24 + $0x8] sm:$0xff] %v3118_v9  ;;  %v1252_v17 = vrot.slane %v1143_v31, 1  ;;  %v1623_v30 = vmul.f32 %v5411_v33, %v6103_v35 }
 0x1d1   : > { %v2739_v13 = vmul.f32 %v4927_v44, %v2703_v10  ;;  %v1494_v41 = vrot.slane %v1385_v22, 2  ;;  %v1495_v3 = vrot.slane %v1386_v63, 2  ;;  %v1694_v4 = vmul.f32 %v5336_v59, %v6100_v60 }
 0x1d2   : > { %v1695_v32 = vmul.f32 %v5336_v59, %v6103_v35  ;;  %v2774_v34 = vadd.f32 %v4939_v8, %v2738_v58  ;;  %v1253_v24 = vsel %vm1220_vm3, %v1251_v45, %v1252_v17  ;;  %v6114_v42 = vrot.slane %v6113_v5, 1  ;;  %v6117_v45 = vld [vmem:[#allocation63_spill] sm:$0xff] }
 0x1d3   : > { %v2775_v16 = vadd.f32 %v4939_v8, %v2739_v13  ;;  %v1345_v54 = vadd.f32 %v1253_v24, %v1070_v11  ;;  %v1496_v55 = vsel %vm1463_vm4, %v1494_v41, %v1495_v3  ;;  %v6116_v27 = vrot.slane %v6115_v19, 2  ;;  %v6121_v24 = vld [vmem:[#allocation19_spill] sm:$0xff] }
 0x1d4   : > { %v1255_v20 = vsel %vm1220_vm3, %v1252_v17, %v6114_v42  ;;  %v2806_v48 = vmax.f32 %v2774_v34, 0.0  ;;  %v1802_v12 = vrot.slane %v1694_v4, 1  ;;  %v1803_v53 = vrot.slane %v1695_v32, 1  ;;  %v6119_v4 = vld [vmem:[#allocation64_spill] sm:$0xff]  ;;  %v6120_v34 = vld [vmem:[#allocation17_spill] sm:$0xff] }
 0x1d5   : > { %v1346_v18 = vadd.f32 %v1255_v20, %v1071_v0  ;;  %v1498_v2 = vsel %vm1463_vm4, %v1495_v3, %v6116_v27  ;;  %v2807_v7 = vmax.f32 %v2775_v16, 0.0  ;;  %v1588_v21 = vadd.f32 %v1496_v55, %v1345_v54  ;;  %v6122_v55 = vld [vmem:[#allocation16_spill] sm:$0xff] }
 0x1d6   : > { %v1936_v10 = vmul.f32 %v5349_v25, %v6100_v60  ;;  %v1937_v9 = vmul.f32 %v5349_v25, %v6103_v35  ;;  %v2838_v11 = vmin.f32 %v2806_v48, 6.0  ;;  %v1804_v31 = vsel %vm1220_vm3, %v1802_v12, %v1803_v53 }
 0x1d7   : > { %v1589_v52 = vadd.f32 %v1498_v2, %v1346_v18  ;;  %v2839_v0 = vmin.f32 %v2807_v7, 6.0  ;;  %v6118_v22 = vrot.slane %v6117_v45, 1  ;;  %v1654_v58 = vadd.f32 %v1622_v40, %v1588_v21 }
 0x1d8   : > { %v2044_v17 = vrot.slane %v1936_v10, 2  ;;  %v2045_v41 = vrot.slane %v1937_v9, 2  ;;  %v2047_v32 = vrot.slane %v6119_v4, 2  ;;  %v2172_v16 = vmul.f32 %v4872_v61, %v6120_v34 }
 0x1d9   : > { %v1806_v63 = vsel %vm1220_vm3, %v1803_v53, %v6118_v22  ;;  %v1655_v13 = vadd.f32 %v1623_v30, %v1589_v52  ;;  %v2857_v3 = vpack.c.bf16 %v2839_v0, %v2838_v11  ;;  %v2173_v5 = vmul.f32 %v4872_v61, %v6121_v24 }
 0x1da   : > { %v1896_v42 = vadd.f32 %v1804_v31, %v1654_v58  ;;  %v2046_v54 = vsel %vm1463_vm4, %v2044_v17, %v2045_v41  ;;  %v2244_v18 = vmul.f32 %v4887_v62, %v6120_v34  ;;  %v2048_v40 = vsel %vm1463_vm4, %v2045_v41, %v2047_v32 }
 0x1db   : > { %v1897_v20 = vadd.f32 %v1806_v63, %v1655_v13  ;;  %2997 = vmatmul.bf16.gmra.mxu3 %v2857_v3  ;;  %v2245_v30 = vmul.f32 %v4887_v62, %v6121_v24  ;;  %v2246_v19 = vmul.f32 %v4887_v62, %v6122_v55  ;;  %v2486_v27 = vmul.f32 %v4898_v14, %v6120_v34 }
 0x1dc   : > { %v2138_v61 = vadd.f32 %v2046_v54, %v1896_v42  ;;  %v2352_v48 = vrot.slane %v2244_v18, 1  ;;  %v2487_v7 = vmul.f32 %v4898_v14, %v6121_v24  ;;  %v2488_v21 = vmul.f32 %v4898_v14, %v6122_v55 }
 0x1dd   : > { %v2139_v2 = vadd.f32 %v2048_v40, %v1897_v20  ;;  %v2353_v12 = vrot.slane %v2245_v30, 1  ;;  %v2355_v53 = vrot.slane %v2246_v19, 1  ;;  %v2594_v52 = vrot.slane %v2486_v27, 2  ;;  %v6123_v27 = vld [vmem:[#allocation50_spill] sm:$0xff] }
 0x1de   : > { %v2204_v10 = vadd.f32 %v2172_v16, %v2138_v61  ;;  %v2595_v11 = vrot.slane %v2487_v7, 2  ;;  %v1086_v62 = vmul.f32 %v5298_v36, %v4742_v26  ;;  %v2597_v45 = vrot.slane %v2488_v21, 2  ;;  %v6125_v7 = vld [vmem:[#allocation51_spill] sm:$0xff] }
 0x1df   : > { %v2205_v9 = vadd.f32 %v2173_v5, %v2139_v2  ;;  %v2354_v0 = vsel %vm1220_vm3, %v2352_v48, %v2353_v12  ;;  %v2356_v31 = vsel %vm1220_vm3, %v2353_v12, %v2355_v53  ;;  %v1087_v22 = vmul.f32 %v5298_v36, %v4772_v46 }
 0x1e0   : > { %v2446_v63 = vadd.f32 %v2354_v0, %v2204_v10  ;;  %v2596_v13 = vsel %vm1463_vm4, %v2594_v52, %v2595_v11  ;;  %v1166_v14 = vmul.f32 %v5308_v56, %v4742_v26  ;;  %v2598_v17 = vsel %vm1463_vm4, %v2595_v11, %v2597_v45 }
 0x1e1   : > { %v2447_v58 = vadd.f32 %v2356_v31, %v2205_v9  ;;  %v1167_v41 = vmul.f32 %v5308_v56, %v4772_v46  ;;  %v1409_v3 = vmul.f32 %v5318_v28, %v4742_v26  ;;  %v1410_v4 = vmul.f32 %v5318_v28, %v4772_v46 }
 0x1e2   : > { %v2688_v32 = vadd.f32 %v2596_v13, %v2446_v63  ;;  %v1291_v5 = vrot.slane %v1166_v14, 1  ;;  %v1638_v42 = vmul.f32 %v5411_v33, %v6112_v39  ;;  %v1639_v40 = vmul.f32 %v5411_v33, %v4933_v37 }
 0x1e3   : > { %v2689_v16 = vadd.f32 %v2598_v17, %v2447_v58  ;;  %v1292_v20 = vrot.slane %v1167_v41, 1  ;;  %v1534_v54 = vrot.slane %v1409_v3, 2  ;;  %v1535_v18 = vrot.slane %v1410_v4, 2 }
 0x1e4   : > { %v2724_v30 = vmul.f32 %v4927_v44, %v2688_v32  ;;  %v1718_v26 = vmul.f32 %v5336_v59, %v6112_v39  ;;  %v1719_v46 = vmul.f32 %v5336_v59, %v4933_v37  ;;  %v6124_v61 = vrot.slane %v6123_v27, 1  ;;  %v5505_v32 = vld [vmem:[%s5923_s3 + $0x6] ss:$0 sm:$0xff] }
 0x1e5   : > { %v2725_v55 = vmul.f32 %v4927_v44, %v2689_v16  ;;  %v1293_v19 = vsel %vm1220_vm3, %v1291_v5, %v1292_v20  ;;  %v1536_v48 = vsel %vm1463_vm4, %v1534_v54, %v1535_v18  ;;  %v6126_v12 = vrot.slane %v6125_v7, 2  ;;  %v6127_v16 = vld [vmem:[#allocation40_spill] sm:$0xff]  ;;  %v2938_v5 = vpop.f32.mrf.mxu1 }
 0x1e6   : > { %v1295_v2 = vsel %vm1220_vm3, %v1292_v20, %v6124_v61  ;;  %v2760_v44 = vadd.f32 %v4939_v8, %v2724_v30  ;;  %v1361_v52 = vadd.f32 %v1293_v19, %v1086_v62  ;;  %v1842_v9 = vrot.slane %v1718_v26, 1 }
 0x1e7   : > { %v1538_v53 = vsel %vm1463_vm4, %v1535_v18, %v6126_v12  ;;  %v2761_v21 = vadd.f32 %v4939_v8, %v2725_v55  ;;  %v1362_v10 = vadd.f32 %v1295_v2, %v1087_v22  ;;  %v1843_v11 = vrot.slane %v1719_v46, 1  ;;  %v5524_v55 = vld [vmem:[%s5923_s3 + $0x8] ss:$0 sm:$0xff] }
 0x1e8   : > { %v1960_v0 = vmul.f32 %v5349_v25, %v6112_v39  ;;  %v1961_v31 = vmul.f32 %v5349_v25, %v4933_v37  ;;  %v2792_v45 = vmax.f32 %v2760_v44, 0.0  ;;  %v1604_v58 = vadd.f32 %v1536_v48, %v1361_v52 }
 0x1e9   : > { %v2793_v63 = vmax.f32 %v2761_v21, 0.0  ;;  %v1605_v13 = vadd.f32 %v1538_v53, %v1362_v10  ;;  %v1844_v14 = vsel %vm1220_vm3, %v1842_v9, %v1843_v11  ;;  %v1846_v8 = vsel %vm1220_vm3, %v1843_v11, %v1845_v23  ;;  %v3087_v53 = vld [vmem:[%s5280_s21 + $0x10] sm:$0xff]  ;;  %v6128_v11 = vld [vmem:[#allocation59_spill] sm:$0xff] }
 0x1ea   : > { %v2084_v62 = vrot.slane %v1960_v0, 2  ;;  %v2085_v22 = vrot.slane %v1961_v31, 2  ;;  %v2824_v17 = vmin.f32 %v2792_v45, 6.0  ;;  %v1670_v3 = vadd.f32 %v1638_v42, %v1604_v58 }
 0x1eb   : > { %v2825_v41 = vmin.f32 %v2793_v63, 6.0  ;;  %v1671_v4 = vadd.f32 %v1639_v40, %v1605_v13  ;;  %v2087_v37 = vrot.slane %v5119_v43, 2  ;;  %v2188_v51 = vmul.f32 %v5505_v32, %v6127_v16  ;;  %v5514_v43 = vld [vmem:[%s5923_s3 + $0x7] ss:$0 sm:$0xff] }
 0x1ec   : > { %v2086_v39 = vsel %vm1463_vm4, %v2084_v62, %v2085_v22  ;;  %v2189_v23 = vmul.f32 %v5505_v32, %v4915_v38  ;;  %v1912_v54 = vadd.f32 %v1844_v14, %v1670_v3  ;;  %v2268_v18 = vmul.f32 %v5514_v43, %v6127_v16  ;;  %v6130_v63 = vld [vmem:[#allocation60_spill] sm:$0xff] }
 0x1ed   : > { %v2850_v20 = vpack.c.bf16 %v2825_v41, %v2824_v17  ;;  %v1913_v42 = vadd.f32 %v1846_v8, %v1671_v4  ;;  %v2088_v40 = vsel %vm1463_vm4, %v2085_v22, %v2087_v37  ;;  %v2269_v30 = vmul.f32 %v5514_v43, %v4915_v38 }
 0x1ee   : > { %v2510_v26 = vmul.f32 %v5524_v55, %v6127_v16  ;;  %v2511_v46 = vmul.f32 %v5524_v55, %v4915_v38  ;;  %v2154_v19 = vadd.f32 %v2086_v39, %v1912_v54  ;;  %v2392_v61 = vrot.slane %v2268_v18, 1 }
 0x1ef   : > { %2962 = vmatmul.bf16.gmra.mxu1 %v2850_v20  ;;  %v2155_v27 = vadd.f32 %v2088_v40, %v1913_v42  ;;  %v3019_v2 = vmul.f32 %v5268_v49, %v2938_v5  ;;  %v2393_v48 = vrot.slane %v2269_v30, 1  ;;  %v1072_v44 = vmul.f32 %v5298_v36, %v6100_v60 }
 0x1f0   : > { %v2634_v7 = vrot.slane %v2510_v26, 2  ;;  %v2635_v12 = vrot.slane %v2511_v46, 2  ;;  %v2220_v21 = vadd.f32 %v2188_v51, %v2154_v19  ;;  %v1073_v38 = vmul.f32 %v5298_v36, %v6103_v35  ;;  %v6132_v26 = vld [vmem:[#allocation61_spill] sm:$0xff] }
 0x1f1   : > { %v2221_v52 = vadd.f32 %v2189_v23, %v2155_v27  ;;  %v3055_v10 = vadd.f32 %v5282_v6, %v3019_v2  ;;  %v2394_v9 = vsel %vm1220_vm3, %v2392_v61, %v2393_v48  ;;  %v6129_v0 = vrot.slane %v6128_v11, 1  ;;  %v6134_v61 = vld [vmem:[#allocation62_spill] sm:$0xff] }
 0x1f2   : > { %v2636_v45 = vsel %vm1463_vm4, %v2634_v7, %v2635_v12  ;;  %v6131_v58 = vrot.slane %v6130_v63, 2  ;;  %v2462_v14 = vadd.f32 %v2394_v9, %v2220_v21  ;;  %v1145_v22 = vmul.f32 %v5308_v56, %v6100_v60  ;;  %v5579_v7 = vld [vmem:[#allocation2] ss:$0 sm:$0xff] }
 0x1f3   : > { %v2396_v31 = vsel %vm1220_vm3, %v2393_v48, %v6129_v0  ;;  %v3119_v62 = vadd.f32 %v3087_v53, %v3055_v10  ;;  %v1146_v17 = vmul.f32 %v5308_v56, %v6103_v35  ;;  %v1388_v41 = vmul.f32 %v5318_v28, %v6100_v60  ;;  %v5563_v60 = vld [vmem:[%s5924_s4] ss:$0 sm:$0xff] }
 0x1f4   : > { %v2638_v13 = vsel %vm1463_vm4, %v2635_v12, %v6131_v58  ;;  %v2463_v8 = vadd.f32 %v2396_v31, %v2221_v52  ;;  %v1389_v3 = vmul.f32 %v5318_v28, %v6103_v35  ;;  %v1624_v4 = vmul.f32 %v5411_v33, %v6120_v34 }
 0x1f5   : > { %v2704_v39 = vadd.f32 %v2636_v45, %v2462_v14  ;;  %3151 = vst [vmem:[%s5324_s24 + $0x10] sm:$0xff] %v3119_v62  ;;  %v1256_v16 = vrot.slane %v1145_v22, 1  ;;  %v1625_v51 = vmul.f32 %v5411_v33, %v6121_v24  ;;  %v1257_v23 = vrot.slane %v1146_v17, 1  ;;  %v6136_v14 = vld [vmem:[#allocation21_spill] sm:$0xff]  ;;  %v6138_v17 = vld [vmem:[#allocation22_spill] sm:$0xff] }
 0x1f6   : > { %v2705_v37 = vadd.f32 %v2638_v13, %v2463_v8  ;;  %v1499_v5 = vrot.slane %v1388_v41, 2  ;;  %v1500_v20 = vrot.slane %v1389_v3, 2  ;;  %v1697_v54 = vmul.f32 %v5336_v59, %v6120_v34 }
 0x1f7   : > { %v2740_v35 = vmul.f32 %v5563_v60, %v2704_v39  ;;  %v1698_v18 = vmul.f32 %v5336_v59, %v6121_v24  ;;  %v1939_v40 = vmul.f32 %v5349_v25, %v6120_v34  ;;  %v1258_v30 = vsel %vm1220_vm3, %v1256_v16, %v1257_v23 }
 0x1f8   : > { %v2741_v42 = vmul.f32 %v5563_v60, %v2705_v37  ;;  %v6133_v46 = vrot.slane %v6132_v26, 1  ;;  %v1501_v27 = vsel %vm1463_vm4, %v1499_v5, %v1500_v20  ;;  %v6135_v2 = vrot.slane %v6134_v61, 2 }
 0x1f9   : > { %v2776_v12 = vadd.f32 %v5579_v7, %v2740_v35  ;;  %v1347_v21 = vadd.f32 %v1258_v30, %v1072_v44  ;;  %v1807_v10 = vrot.slane %v1697_v54, 1  ;;  %v1808_v9 = vrot.slane %v1698_v18, 1 }
 0x1fa   : > { %v1260_v19 = vsel %vm1220_vm3, %v1257_v23, %v6133_v46  ;;  %v1503_v48 = vsel %vm1463_vm4, %v1500_v20, %v6135_v2  ;;  %v2777_v53 = vadd.f32 %v5579_v7, %v2741_v42  ;;  %v1940_v11 = vmul.f32 %v5349_v25, %v6121_v24  ;;  %v6139_v23 = vld [vmem:[#allocation24_spill] sm:$0xff]  ;;  %v6140_v20 = vld [vmem:[#allocation25_spill] sm:$0xff] }
 0x1fb   : > { %v1348_v52 = vadd.f32 %v1260_v19, %v1073_v38  ;;  %v2049_v0 = vrot.slane %v1939_v40, 2  ;;  %v2808_v31 = vmax.f32 %v2776_v12, 0.0  ;;  %v1590_v63 = vadd.f32 %v1501_v27, %v1347_v21  ;;  %v2940_v19 = vpop.f32.mrf.mxu1 }
 0x1fc   : > { %v2809_v45 = vmax.f32 %v2777_v53, 0.0  ;;  %v1809_v13 = vsel %vm1220_vm3, %v1807_v10, %v1808_v9  ;;  %v6137_v8 = vrot.slane %v6136_v14, 1  ;;  %v2050_v22 = vrot.slane %v1940_v11, 2 }
 0x1fd   : > { %v1591_v58 = vadd.f32 %v1503_v48, %v1348_v52  ;;  %v2052_v44 = vrot.slane %v6138_v17, 2  ;;  %v2840_v38 = vmin.f32 %v2808_v31, 6.0  ;;  %v1656_v3 = vadd.f32 %v1624_v4, %v1590_v63  ;;  %v6142_v17 = vld [vmem:[#allocation68_spill] sm:$0xff] }
 0x1fe   : > { %v1811_v62 = vsel %vm1220_vm3, %v1808_v9, %v6137_v8  ;;  %v2841_v41 = vmin.f32 %v2809_v45, 6.0  ;;  %v2051_v37 = vsel %vm1463_vm4, %v2049_v0, %v2050_v22  ;;  %v2174_v5 = vmul.f32 %v5505_v32, %v6139_v23 }
 0x1ff   : > { %v1657_v39 = vadd.f32 %v1625_v51, %v1591_v58  ;;  %v2053_v16 = vsel %vm1463_vm4, %v2050_v22, %v2052_v44  ;;  %v2175_v54 = vmul.f32 %v5505_v32, %v6140_v20  ;;  %v1898_v42 = vadd.f32 %v1809_v13, %v1656_v3  ;;  %v6141_v51 = vld [vmem:[#allocation23_spill] sm:$0xff] }
 0x200   : > { %v2858_v35 = vpack.c.bf16 %v2841_v41, %v2840_v38  ;;  %v2247_v40 = vmul.f32 %v5514_v43, %v6139_v23  ;;  %v2248_v4 = vmul.f32 %v5514_v43, %v6140_v20  ;;  %v2249_v30 = vmul.f32 %v5514_v43, %v6141_v51  ;;  %v3088_v58 = vld [vmem:[%s5280_s21 + $0x18] sm:$0xff] }
 0x201   : > { %v1899_v18 = vadd.f32 %v1811_v62, %v1657_v39  ;;  %v2489_v26 = vmul.f32 %v5524_v55, %v6139_v23  ;;  %v2490_v46 = vmul.f32 %v5524_v55, %v6140_v20  ;;  %v2140_v27 = vadd.f32 %v2051_v37, %v1898_v42 }
 0x202   : > { %3002 = vmatmul.bf16.gmra.mxu3 %v2858_v35  ;;  %v2357_v2 = vrot.slane %v2247_v40, 1  ;;  %v2491_v48 = vmul.f32 %v5524_v55, %v6141_v51  ;;  %v2358_v12 = vrot.slane %v2248_v4, 1  ;;  %v2360_v53 = vrot.slane %v2249_v30, 1 }
 0x203   : > { %v2141_v61 = vadd.f32 %v2053_v16, %v1899_v18  ;;  %v2599_v21 = vrot.slane %v2489_v26, 2  ;;  %v2600_v52 = vrot.slane %v2490_v46, 2  ;;  %v2206_v10 = vadd.f32 %v2174_v5, %v2140_v27  ;;  %v2943_v30 = vpop.f32.mrf.mxu1 }
 0x204   : > { %v2602_v11 = vrot.slane %v2491_v48, 2  ;;  %v3020_v0 = vmul.f32 %v5268_v49, %v2940_v19  ;;  %v2359_v31 = vsel %vm1220_vm3, %v2357_v2, %v2358_v12  ;;  %v2361_v45 = vsel %vm1220_vm3, %v2358_v12, %v2360_v53  ;;  %v6144_v2 = vld [vmem:[#allocation18_spill] sm:$0xff] }
 0x205   : > { %v2207_v9 = vadd.f32 %v2175_v54, %v2141_v61  ;;  %v2601_v63 = vsel %vm1463_vm4, %v2599_v21, %v2600_v52  ;;  %v2464_v13 = vadd.f32 %v5218_v50, %v5060_v47  ;;  %v2448_v14 = vadd.f32 %v2359_v31, %v2206_v10  ;;  %v6146_v31 = vld [vmem:[#allocation20_spill] sm:$0xff] }
 0x206   : > { %v2603_v62 = vsel %vm1463_vm4, %v2600_v52, %v2602_v11  ;;  %v3056_v22 = vadd.f32 %v5282_v6, %v3020_v0  ;;  %v6143_v44 = vrot.slane %v6142_v17, 2  ;;  %v2707_v41 = vadd.f32 %v5238_v57, %v5244_v1 }
 0x207   : > { %v2449_v8 = vadd.f32 %v2361_v45, %v2207_v9  ;;  %v1074_v3 = vmul.f32 %v5298_v36, %v6120_v34  ;;  %v1075_v47 = vmul.f32 %v5298_v36, %v6121_v24  ;;  %v2690_v50 = vadd.f32 %v2601_v63, %v2448_v14 }
 0x208   : > { %v2641_v38 = vsel %vm1463_vm4, %v6143_v44, %v2640_v29  ;;  %v3120_v37 = vadd.f32 %v3088_v58, %v3056_v22  ;;  %v2743_v5 = vmul.f32 %v5563_v60, %v2707_v41  ;;  %v1148_v15 = vmul.f32 %v5308_v56, %v6120_v34 }
 0x209   : > { %v2691_v39 = vadd.f32 %v2603_v62, %v2449_v8  ;;  %v2706_v16 = vadd.f32 %v2641_v38, %v2464_v13  ;;  %v1149_v29 = vmul.f32 %v5308_v56, %v6121_v24  ;;  %v1391_v57 = vmul.f32 %v5318_v28, %v6120_v34 }
 0x20a   : > { %v2726_v1 = vmul.f32 %v5563_v60, %v2690_v50  ;;  %3152 = vst [vmem:[%s5324_s24 + $0x18] sm:$0xff] %v3120_v37  ;;  %v1392_v42 = vmul.f32 %v5318_v28, %v6121_v24  ;;  %v2779_v18 = vadd.f32 %v5579_v7, %v2743_v5  ;;  %v1261_v40 = vrot.slane %v1148_v15, 1  ;;  %v6148_v15 = vld [vmem:[#allocation29_spill] sm:$0xff] }
 0x20b   : > { %v2727_v54 = vmul.f32 %v5563_v60, %v2691_v39  ;;  %v2742_v35 = vmul.f32 %v5563_v60, %v2706_v16  ;;  %v1262_v4 = vrot.slane %v1149_v29, 1  ;;  %v1504_v51 = vrot.slane %v1391_v57, 2  ;;  %v6149_v57 = vld [vmem:[#allocation30_spill] sm:$0xff] }
 0x20c   : > { %v2762_v26 = vadd.f32 %v5579_v7, %v2726_v1  ;;  %v1505_v19 = vrot.slane %v1392_v42, 2  ;;  %v2811_v27 = vmax.f32 %v2779_v18, 0.0  ;;  %v6145_v48 = vrot.slane %v6144_v2, 1  ;;  %v6151_v18 = vld [vmem:[#allocation28_spill] sm:$0xff] }
 0x20d   : > { %v2763_v34 = vadd.f32 %v5579_v7, %v2727_v54  ;;  %v2778_v46 = vadd.f32 %v5579_v7, %v2742_v35  ;;  %v1263_v61 = vsel %vm1220_vm3, %v1261_v40, %v1262_v4  ;;  %v1626_v12 = vmul.f32 %v5411_v33, %v6139_v23  ;;  %v6150_v54 = vld [vmem:[#allocation31_spill] sm:$0xff] }
 0x20e   : > { %v1265_v24 = vsel %vm1220_vm3, %v1262_v4, %v6145_v48  ;;  %v2794_v53 = vmax.f32 %v2762_v26, 0.0  ;;  %v1349_v10 = vadd.f32 %v1263_v61, %v1074_v3  ;;  %v2843_v9 = vmin.f32 %v2811_v27, 6.0  ;;  %v6153_v61 = vld [vmem:[#allocation32_spill] sm:$0xff] }
 0x20f   : > { %v2795_v21 = vmax.f32 %v2763_v34, 0.0  ;;  %v2810_v52 = vmax.f32 %v2778_v46, 0.0  ;;  %v1350_v11 = vadd.f32 %v1265_v24, %v1075_v47  ;;  %v1506_v0 = vsel %vm1463_vm4, %v1504_v51, %v1505_v19  ;;  %v2945_v34 = vpop.f32.mrf.mxu1 }
 0x210   : > { %v6147_v45 = vrot.slane %v6146_v31, 2  ;;  %v2826_v58 = vmin.f32 %v2794_v53, 6.0  ;;  %v1592_v8 = vadd.f32 %v1506_v0, %v1349_v10  ;;  %v1627_v22 = vmul.f32 %v5411_v33, %v6140_v20 }
 0x211   : > { %v2827_v13 = vmin.f32 %v2795_v21, 6.0  ;;  %v2842_v14 = vmin.f32 %v2810_v52, 6.0  ;;  %v1700_v17 = vmul.f32 %v5336_v59, %v6139_v23  ;;  %v1701_v44 = vmul.f32 %v5336_v59, %v6140_v20 }
 0x212   : > { %v1508_v63 = vsel %vm1463_vm4, %v1505_v19, %v6147_v45  ;;  %v1658_v3 = vadd.f32 %v1626_v12, %v1592_v8  ;;  %v1942_v47 = vmul.f32 %v5349_v25, %v6139_v23  ;;  %v1943_v16 = vmul.f32 %v5349_v25, %v6140_v20  ;;  %v3089_v8 = vld [vmem:[%s5280_s21 + $0x20] sm:$0xff] }
 0x213   : > { %v1593_v62 = vadd.f32 %v1508_v63, %v1350_v11  ;;  %v2851_v38 = vpack.c.bf16 %v2827_v13, %v2826_v58  ;;  %v2859_v41 = vpack.c.bf16 %v2843_v9, %v2842_v14  ;;  %v1812_v39 = vrot.slane %v1700_v17, 1 }
 0x214   : > { %v1813_v37 = vrot.slane %v1701_v44, 1  ;;  %v2054_v5 = vrot.slane %v1942_v47, 2  ;;  %v2057_v29 = vrot.slane %v6148_v15, 2  ;;  %v2176_v1 = vmul.f32 %v5505_v32, %v6149_v57 }
 0x215   : > { %v1659_v50 = vadd.f32 %v1627_v22, %v1593_v62  ;;  %2967 = vmatmul.bf16.gmra.mxu1 %v2851_v38  ;;  %3007 = vmatmul.bf16.gmra.mxu3 %v2859_v41  ;;  %v2177_v35 = vmul.f32 %v5505_v32, %v6150_v54  ;;  %v6152_v40 = vrot.slane %v6151_v18, 1  ;;  %v2055_v51 = vrot.slane %v1943_v16, 2 }
 0x216   : > { %v1814_v42 = vsel %vm1220_vm3, %v1812_v39, %v1813_v37  ;;  %v2250_v26 = vmul.f32 %v5514_v43, %v6149_v57  ;;  %v2251_v27 = vmul.f32 %v5514_v43, %v6150_v54  ;;  %v2252_v2 = vmul.f32 %v5514_v43, %v6153_v61 }
 0x217   : > { %v1816_v4 = vsel %vm1220_vm3, %v1813_v37, %v6152_v40  ;;  %v1900_v46 = vadd.f32 %v1814_v42, %v1658_v3  ;;  %v2056_v48 = vsel %vm1463_vm4, %v2054_v5, %v2055_v51  ;;  %v2058_v24 = vsel %vm1463_vm4, %v2055_v51, %v2057_v29  ;;  %v3090_v3 = vld [vmem:[%s5280_s21 + $0x28] sm:$0xff]  ;;  %v5702_v5 = vpop.f32.mrf.mxu3 }
 0x218   : > { %v1901_v19 = vadd.f32 %v1816_v4, %v1659_v50  ;;  %v2362_v12 = vrot.slane %v2250_v26, 1  ;;  %v2492_v53 = vmul.f32 %v5524_v55, %v6149_v57  ;;  %v2363_v10 = vrot.slane %v2251_v27, 1 }
 0x219   : > { %v2142_v21 = vadd.f32 %v2056_v48, %v1900_v46  ;;  %v2365_v9 = vrot.slane %v2252_v2, 1  ;;  %v2493_v11 = vmul.f32 %v5524_v55, %v6150_v54  ;;  %v2494_v0 = vmul.f32 %v5524_v55, %v6153_v61  ;;  %v6154_v61 = vld [vmem:[#allocation26_spill] sm:$0xff] }
 0x21a   : > { %v2143_v52 = vadd.f32 %v2058_v24, %v1901_v19  ;;  %v2604_v31 = vrot.slane %v2492_v53, 2  ;;  %v3021_v45 = vmul.f32 %v5268_v49, %v2943_v30  ;;  %v2364_v13 = vsel %vm1220_vm3, %v2362_v12, %v2363_v10 }
 0x21b   : > { %v2208_v63 = vadd.f32 %v2176_v1, %v2142_v21  ;;  %v2366_v14 = vsel %vm1220_vm3, %v2363_v10, %v2365_v9  ;;  %v2605_v62 = vrot.slane %v2493_v11, 2  ;;  %v2607_v22 = vrot.slane %v2494_v0, 2  ;;  %v6156_v21 = vld [vmem:[#allocation27_spill] sm:$0xff] }
 0x21c   : > { %v2209_v58 = vadd.f32 %v2177_v35, %v2143_v52  ;;  %v3057_v17 = vadd.f32 %v5282_v6, %v3021_v45  ;;  %v3022_v44 = vmul.f32 %v5268_v49, %v2945_v34  ;;  %v1076_v30 = vmul.f32 %v5298_v36, %v6139_v23  ;;  %v5704_v49 = vpop.f32.mrf.mxu1 }
 0x21d   : > { %v2450_v38 = vadd.f32 %v2364_v13, %v2208_v63  ;;  %v1077_v47 = vmul.f32 %v5298_v36, %v6140_v20  ;;  %v2606_v50 = vsel %vm1463_vm4, %v2604_v31, %v2605_v62  ;;  %v2608_v39 = vsel %vm1463_vm4, %v2605_v62, %v2607_v22 }
 0x21e   : > { %v2451_v41 = vadd.f32 %v2366_v14, %v2209_v58  ;;  %v3121_v37 = vadd.f32 %v3089_v8, %v3057_v17  ;;  %v3058_v16 = vadd.f32 %v5282_v6, %v3022_v44  ;;  %v1151_v1 = vmul.f32 %v5308_v56, %v6139_v23  ;;  %v6158_v17 = vld [vmem:[#allocation34_spill] sm:$0xff] }
 0x21f   : > { %v2692_v15 = vadd.f32 %v2606_v50, %v2450_v38  ;;  %v1152_v36 = vmul.f32 %v5308_v56, %v6140_v20  ;;  %v1394_v42 = vmul.f32 %v5318_v28, %v6139_v23  ;;  %v1395_v18 = vmul.f32 %v5318_v28, %v6140_v20  ;;  %v2985_v13 = vpop.f32.mrf.mxu3  ;;  %v6159_v50 = vld [vmem:[#allocation33_spill] sm:$0xff] }
 0x220   : > { %v2693_v29 = vadd.f32 %v2608_v39, %v2451_v41  ;;  %3153 = vst [vmem:[%s5324_s24 + $0x20] sm:$0xff] %v3121_v37  ;;  %v3122_v35 = vadd.f32 %v3090_v3, %v3058_v16  ;;  %v1628_v40 = vmul.f32 %v5411_v33, %v6149_v57  ;;  %v1266_v26 = vrot.slane %v1151_v1, 1  ;;  %v6161_v37 = vld [vmem:[#allocation35_spill] sm:$0xff]  ;;  %v6162_v1 = vld [vmem:[#allocation36_spill] sm:$0xff] }
 0x221   : > { %v2728_v4 = vmul.f32 %v5563_v60, %v2692_v15  ;;  %v1267_v34 = vrot.slane %v1152_v36, 1  ;;  %v1509_v46 = vrot.slane %v1394_v42, 2  ;;  %v1510_v56 = vrot.slane %v1395_v18, 2  ;;  %v6163_v18 = vld [vmem:[#allocation37_spill] sm:$0xff] }
 0x222   : > { %v2729_v51 = vmul.f32 %v5563_v60, %v2693_v29  ;;  %3154 = vst [vmem:[%s5324_s24 + $0x28] sm:$0xff] %v3122_v35  ;;  %v1629_v19 = vmul.f32 %v5411_v33, %v6150_v54  ;;  %v1703_v23 = vmul.f32 %v5336_v59, %v6149_v57  ;;  %v6155_v2 = vrot.slane %v6154_v61, 1 }
 0x223   : > { %v2764_v28 = vadd.f32 %v5579_v7, %v2728_v4  ;;  %v1268_v27 = vsel %vm1220_vm3, %v1266_v26, %v1267_v34  ;;  %v1511_v53 = vsel %vm1463_vm4, %v1509_v46, %v1510_v56  ;;  %v6157_v52 = vrot.slane %v6156_v21, 2 }
 0x224   : > { %v2765_v20 = vadd.f32 %v5579_v7, %v2729_v51  ;;  %v1270_v48 = vsel %vm1220_vm3, %v1267_v34, %v6155_v2  ;;  %v1351_v24 = vadd.f32 %v1268_v27, %v1076_v30  ;;  %v1704_v11 = vmul.f32 %v5336_v59, %v6150_v54  ;;  %v2950_v14 = vpop.f32.mrf.mxu1 }
 0x225   : > { %v1352_v12 = vadd.f32 %v1270_v48, %v1077_v47  ;;  %v1513_v33 = vsel %vm1463_vm4, %v1510_v56, %v6157_v52  ;;  %v2796_v10 = vmax.f32 %v2764_v28, 0.0  ;;  %v1817_v0 = vrot.slane %v1703_v23, 1 }
 0x226   : > { %v2797_v9 = vmax.f32 %v2765_v20, 0.0  ;;  %v1594_v31 = vadd.f32 %v1511_v53, %v1351_v24  ;;  %v1945_v63 = vmul.f32 %v5349_v25, %v6149_v57  ;;  %v1946_v58 = vmul.f32 %v5349_v25, %v6150_v54 }
 0x227   : > { %v1595_v45 = vadd.f32 %v1513_v33, %v1352_v12  ;;  %v2828_v8 = vmin.f32 %v2796_v10, 6.0  ;;  %v1818_v22 = vrot.slane %v1704_v11, 1  ;;  %v2062_v44 = vrot.slane %v6158_v17, 2  ;;  %v2988_v27 = vpop.f32.mrf.mxu3  ;;  %v5765_v12 = vld [vmem:[#allocation5] ss:$0 sm:$0xff] }
 0x228   : > { %v2829_v62 = vmin.f32 %v2797_v9, 6.0  ;;  %v1660_v38 = vadd.f32 %v1628_v40, %v1594_v31  ;;  %v2059_v3 = vrot.slane %v1945_v63, 2  ;;  %v2060_v59 = vrot.slane %v1946_v58, 2  ;;  %v3105_v33 = vld [vmem:[%s5280_s21 + $0xa0] sm:$0xff] }
 0x229   : > { %v1661_v41 = vadd.f32 %v1629_v19, %v1595_v45  ;;  %v1819_v47 = vsel %vm1220_vm3, %v1817_v0, %v1818_v22  ;;  %v6160_v39 = vrot.slane %v6159_v50, 1  ;;  %v2178_v25 = vmul.f32 %v5505_v32, %v6161_v37  ;;  %v3106_v0 = vld [vmem:[%s5280_s21 + $0xa8] sm:$0xff]  ;;  %v5778_v58 = vld [vmem:[#allocation7] ss:$0 sm:$0xff] }
 0x22a   : > { %v2852_v30 = vpack.c.bf16 %v2829_v62, %v2828_v8  ;;  %v1902_v54 = vadd.f32 %v1819_v47, %v1660_v38  ;;  %v2061_v15 = vsel %vm1463_vm4, %v2059_v3, %v2060_v59  ;;  %v2063_v29 = vsel %vm1463_vm4, %v2060_v59, %v2062_v44  ;;  %v3092_v62 = vld [vmem:[%s5280_s21 + $0x38] sm:$0xff]  ;;  %v3107_v44 = vld [vmem:[%s5280_s21 + $0xb0] sm:$0xff] }
 0x22b   : > { %v1821_v57 = vsel %vm1220_vm3, %v1818_v22, %v6160_v39  ;;  %v2179_v36 = vmul.f32 %v5505_v32, %v6162_v1  ;;  %v2253_v35 = vmul.f32 %v5514_v43, %v6161_v37  ;;  %v2254_v42 = vmul.f32 %v5514_v43, %v6162_v1 }
 0x22c   : > { %v1903_v16 = vadd.f32 %v1821_v57, %v1661_v41  ;;  %2972 = vmatmul.bf16.gmra.mxu1 %v2852_v30  ;;  %v2255_v40 = vmul.f32 %v5514_v43, %v6163_v18  ;;  %v2144_v4 = vadd.f32 %v2061_v15, %v1902_v54  ;;  %v2495_v26 = vmul.f32 %v5524_v55, %v6161_v37  ;;  %v2953_v61 = vpop.f32.mrf.mxu1  ;;  %v3093_v30 = vld [vmem:[%s5280_s21 + $0x40] sm:$0xff] }
 0x22d   : > { %v2496_v34 = vmul.f32 %v5524_v55, %v6162_v1  ;;  %v2367_v46 = vrot.slane %v2253_v35, 1  ;;  %v2368_v56 = vrot.slane %v2254_v42, 1  ;;  %v2497_v19 = vmul.f32 %v5524_v55, %v6163_v18  ;;  %v3108_v35 = vld [vmem:[%s5280_s21 + $0xb8] sm:$0xff]  ;;  %v3094_v42 = vld [vmem:[%s5280_s21 + $0x48] sm:$0xff] }
 0x22e   : > { %v2145_v51 = vadd.f32 %v2063_v29, %v1903_v16  ;;  %v2370_v32 = vrot.slane %v2255_v40, 1  ;;  %v2210_v23 = vadd.f32 %v2178_v25, %v2144_v4  ;;  %v2609_v20 = vrot.slane %v2495_v26, 2 }
 0x22f   : > { %v2610_v43 = vrot.slane %v2496_v34, 2  ;;  %v2369_v2 = vsel %vm1220_vm3, %v2367_v46, %v2368_v56  ;;  %v2612_v24 = vrot.slane %v2497_v19, 2  ;;  %v3037_v53 = vmul.f32 %v5765_v12, %v5702_v5 }
 0x230   : > { %v2211_v28 = vadd.f32 %v2179_v36, %v2145_v51  ;;  %v2371_v48 = vsel %vm1220_vm3, %v2368_v56, %v2370_v32  ;;  %v2452_v55 = vadd.f32 %v2369_v2, %v2210_v23  ;;  %v3038_v10 = vmul.f32 %v5765_v12, %v2985_v13  ;;  %v3091_v13 = vld [vmem:[%s5280_s21 + $0x30] sm:$0xff]  ;;  %v3109_v32 = vld [vmem:[%s5280_s21 + $0xc0] sm:$0xff] }
 0x231   : > { %v2611_v52 = vsel %vm1463_vm4, %v2609_v20, %v2610_v43  ;;  %v2613_v9 = vsel %vm1463_vm4, %v2610_v43, %v2612_v24  ;;  %v3073_v11 = vadd.f32 %v5282_v6, %v3037_v53  ;;  %v3023_v31 = vmul.f32 %v5765_v12, %v5704_v49  ;;  %v3110_v43 = vld [vmem:[%s5280_s21 + $0xc8] sm:$0xff]  ;;  %v3095_v24 = vld [vmem:[%s5280_s21 + $0x50] sm:$0xff] }
 0x232   : > { %v2453_v21 = vadd.f32 %v2371_v48, %v2211_v28  ;;  %v3024_v45 = vmul.f32 %v5765_v12, %v2950_v14  ;;  %v2694_v5 = vadd.f32 %v2611_v52, %v2452_v55  ;;  %v3074_v8 = vadd.f32 %v5778_v58, %v3038_v10 }
 0x233   : > { %v3039_v22 = vmul.f32 %v5765_v12, %v2988_v27  ;;  %v3137_v17 = vadd.f32 %v3105_v33, %v3073_v11  ;;  %v3059_v6 = vadd.f32 %v5778_v58, %v3023_v31  ;;  %v3025_v14 = vmul.f32 %v5765_v12, %v2953_v61  ;;  %v3096_v33 = vld [vmem:[%s5280_s21 + $0x58] sm:$0xff]  ;;  %v3111_v31 = vld [vmem:[%s5280_s21 + $0xd0] sm:$0xff] }
 0x234   : > { %v2695_v63 = vadd.f32 %v2613_v9, %v2453_v21  ;;  %v3060_v49 = vadd.f32 %v5778_v58, %v3024_v45  ;;  %v2730_v38 = vmul.f32 %v5563_v60, %v2694_v5  ;;  %v3138_v3 = vadd.f32 %v3106_v0, %v3074_v8  ;;  %v2955_v54 = vpop.f32.mrf.mxu1 }
 0x235   : > { %v3075_v59 = vadd.f32 %v5778_v58, %v3039_v22  ;;  %3169 = vst [vmem:[%s5324_s24 + $0xa0] sm:$0xff] %v3137_v17  ;;  %v3123_v47 = vadd.f32 %v3091_v13, %v3059_v6  ;;  %v3061_v39 = vadd.f32 %v5778_v58, %v3025_v14  ;;  %v3026_v29 = vmul.f32 %v5765_v12, %v2955_v54  ;;  %v3112_v13 = vld [vmem:[%s5280_s21 + $0xd8] sm:$0xff]  ;;  %v3114_v54 = vld [vmem:[%s5280_s21 + $0xe8] sm:$0xff] }
 0x236   : > { %v2731_v41 = vmul.f32 %v5563_v60, %v2695_v63  ;;  %v3124_v50 = vadd.f32 %v3092_v62, %v3060_v49  ;;  %v2766_v57 = vadd.f32 %v5579_v7, %v2730_v38  ;;  %3170 = vst [vmem:[%s5324_s24 + $0xa8] sm:$0xff] %v3138_v3  ;;  %v2990_v60 = vpop.f32.mrf.mxu3  ;;  %v3097_v49 = vld [vmem:[%s5280_s21 + $0x60] sm:$0xff]  ;;  %v3098_v3 = vld [vmem:[%s5280_s21 + $0x68] sm:$0xff] }
 0x237   : > { %v3139_v25 = vadd.f32 %v3107_v44, %v3075_v59  ;;  %3155 = vst [vmem:[%s5324_s24 + $0x30] sm:$0xff] %v3123_v47  ;;  %v3040_v16 = vmul.f32 %v5765_v12, %v2990_v60  ;;  %v3125_v15 = vadd.f32 %v3093_v30, %v3061_v39  ;;  %v3062_v18 = vadd.f32 %v5778_v58, %v3026_v29  ;;  %v3113_v39 = vld [vmem:[%s5280_s21 + $0xe0] sm:$0xff] }
 0x238   : > { %v2767_v37 = vadd.f32 %v5579_v7, %v2731_v41  ;;  %v2798_v1 = vmax.f32 %v2766_v57, 0.0  ;;  %3156 = vst [vmem:[%s5324_s24 + $0x38] sm:$0xff] %v3124_v50 }
 0x239   : > { %3171 = vst [vmem:[%s5324_s24 + $0xb0] sm:$0xff] %v3139_v25  ;;  %v3076_v7 = vadd.f32 %v5778_v58, %v3040_v16  ;;  %v3126_v26 = vadd.f32 %v3094_v42, %v3062_v18 }
 0x23a   : > { %v2799_v36 = vmax.f32 %v2767_v37, 0.0  ;;  %v2830_v40 = vmin.f32 %v2798_v1, 6.0  ;;  %3157 = vst [vmem:[%s5324_s24 + $0x40] sm:$0xff] %v3125_v15 }
 0x23b   : > { %v3140_v51 = vadd.f32 %v3108_v35, %v3076_v7  ;;  %3158 = vst [vmem:[%s5324_s24 + $0x48] sm:$0xff] %v3126_v26 }
 0x23c   : > { %v2831_v4 = vmin.f32 %v2799_v36, 6.0  ;;  %v3099_v36 = vld [vmem:[%s5280_s21 + $0x70] sm:$0xff] }
 0x23d   : > { %3172 = vst [vmem:[%s5324_s24 + $0xb8] sm:$0xff] %v3140_v51 }
 0x23e   : > { %v2853_v34 = vpack.c.bf16 %v2831_v4, %v2830_v40  ;;  %v2993_v46 = vpop.f32.mrf.mxu3  ;;  %v3115_v4 = vld [vmem:[%s5280_s21 + $0xf0] sm:$0xff] }
 0x23f   : > { %v3041_v56 = vmul.f32 %v5765_v12, %v2993_v46 }
 0x240   : > { %2977 = vmatmul.bf16.gmra.mxu1 %v2853_v34  ;;  %v3100_v34 = vld [vmem:[%s5280_s21 + $0x78] sm:$0xff] }
 0x241   : > { %v3077_v19 = vadd.f32 %v5778_v58, %v3041_v56 }
 0x243   : > { %v3141_v23 = vadd.f32 %v3109_v32, %v3077_v19 }
 0x245   : > { %3173 = vst [vmem:[%s5324_s24 + $0xc0] sm:$0xff] %v3141_v23 }
 0x246   : > { %v2995_v28 = vpop.f32.mrf.mxu3  ;;  %v2958_v61 = vpop.f32.mrf.mxu1 }
 0x247   : > { %v3042_v20 = vmul.f32 %v5765_v12, %v2995_v28  ;;  %v3027_v2 = vmul.f32 %v5765_v12, %v2958_v61  ;;  %v3116_v28 = vld [vmem:[%s5280_s21 + $0xf8] sm:$0xff] }
 0x249   : > { %v3078_v27 = vadd.f32 %v5778_v58, %v3042_v20  ;;  %v3063_v53 = vadd.f32 %v5778_v58, %v3027_v2  ;;  %v3101_v2 = vld [vmem:[%s5280_s21 + $0x80] sm:$0xff] }
 0x24b   : > { %v3142_v48 = vadd.f32 %v3110_v43, %v3078_v27  ;;  %v3127_v55 = vadd.f32 %v3095_v24, %v3063_v53 }
 0x24d   : > { %3174 = vst [vmem:[%s5324_s24 + $0xc8] sm:$0xff] %v3142_v48 }
 0x24e   : > { %3159 = vst [vmem:[%s5324_s24 + $0x50] sm:$0xff] %v3127_v55  ;;  %v2960_v21 = vpop.f32.mrf.mxu1 }
 0x24f   : > { %v3028_v52 = vmul.f32 %v5765_v12, %v2960_v21  ;;  %v3102_v21 = vld [vmem:[%s5280_s21 + $0x88] sm:$0xff] }
 0x251   : > { %v3064_v10 = vadd.f32 %v5778_v58, %v3028_v52 }
 0x253   : > { %v3128_v9 = vadd.f32 %v3096_v33, %v3064_v10 }
 0x255   : > { %3160 = vst [vmem:[%s5324_s24 + $0x58] sm:$0xff] %v3128_v9 }
 0x25e   : > { %v2998_v11 = vpop.f32.mrf.mxu3 }
 0x25f   : > { %v3043_v0 = vmul.f32 %v5765_v12, %v2998_v11  ;;  %v3103_v11 = vld [vmem:[%s5280_s21 + $0x90] sm:$0xff] }
 0x261   : > { %v3079_v45 = vadd.f32 %v5778_v58, %v3043_v0 }
 0x263   : > { %v3143_v5 = vadd.f32 %v3111_v31, %v3079_v45 }
 0x265   : > { %3175 = vst [vmem:[%s5324_s24 + $0xd0] sm:$0xff] %v3143_v5 }
 0x266   : > { %v3000_v63 = vpop.f32.mrf.mxu3 }
 0x267   : > { %v3044_v8 = vmul.f32 %v5765_v12, %v3000_v63  ;;  %v3104_v63 = vld [vmem:[%s5280_s21 + $0x98] sm:$0xff] }
 0x269   : > { %v3080_v62 = vadd.f32 %v5778_v58, %v3044_v8 }
 0x26b   : > { %v3144_v17 = vadd.f32 %v3112_v13, %v3080_v62 }
 0x26c   : > { %v2963_v22 = vpop.f32.mrf.mxu1 }
 0x26d   : > { %v3029_v6 = vmul.f32 %v5765_v12, %v2963_v22  ;;  %3176 = vst [vmem:[%s5324_s24 + $0xd8] sm:$0xff] %v3144_v17 }
 0x26f   : > { %v3065_v44 = vadd.f32 %v5778_v58, %v3029_v6 }
 0x271   : > { %v3129_v14 = vadd.f32 %v3097_v49, %v3065_v44 }
 0x273   : > { %3161 = vst [vmem:[%s5324_s24 + $0x60] sm:$0xff] %v3129_v14 }
 0x274   : > { %v2965_v38 = vpop.f32.mrf.mxu1 }
 0x275   : > { %v3030_v41 = vmul.f32 %v5765_v12, %v2965_v38 }
 0x277   : > { %v3066_v59 = vadd.f32 %v5778_v58, %v3030_v41 }
 0x279   : > { %v3130_v30 = vadd.f32 %v3098_v3, %v3066_v59 }
 0x27b   : > { %3162 = vst [vmem:[%s5324_s24 + $0x68] sm:$0xff] %v3130_v30 }
 0x285   : > { %v3003_v47 = vpop.f32.mrf.mxu3 }
 0x286   : > { %v3045_v50 = vmul.f32 %v5765_v12, %v3003_v47 }
 0x288   : > { %v3081_v57 = vadd.f32 %v5778_v58, %v3045_v50 }
 0x28a   : > { %v3145_v37 = vadd.f32 %v3113_v39, %v3081_v57 }
 0x28c   : > { %3177 = vst [vmem:[%s5324_s24 + $0xe0] sm:$0xff] %v3145_v37 }
 0x28d   : > { %v3005_v25 = vpop.f32.mrf.mxu3 }
 0x28e   : > { %v3046_v60 = vmul.f32 %v5765_v12, %v3005_v25 }
 0x290   : > { %v3082_v16 = vadd.f32 %v5778_v58, %v3046_v60 }
 0x292   : > { %v2968_v15 = vpop.f32.mrf.mxu1  ;;  %v3146_v1 = vadd.f32 %v3114_v54, %v3082_v16 }
 0x293   : > { %v3031_v29 = vmul.f32 %v5765_v12, %v2968_v15 }
 0x294   : > { %3178 = vst [vmem:[%s5324_s24 + $0xe8] sm:$0xff] %v3146_v1 }
 0x295   : > { %v3067_v35 = vadd.f32 %v5778_v58, %v3031_v29 }
 0x297   : > { %v3131_v42 = vadd.f32 %v3099_v36, %v3067_v35 }
 0x298   : > { %v3008_v7 = vpop.f32.mrf.mxu3 }
 0x299   : > { %3163 = vst [vmem:[%s5324_s24 + $0x70] sm:$0xff] %v3131_v42  ;;  %v3047_v18 = vmul.f32 %v5765_v12, %v3008_v7 }
 0x29a   : > { %v2970_v40 = vpop.f32.mrf.mxu1 }
 0x29b   : > { %v3032_v51 = vmul.f32 %v5765_v12, %v2970_v40  ;;  %v3083_v26 = vadd.f32 %v5778_v58, %v3047_v18 }
 0x29d   : > { %v3068_v46 = vadd.f32 %v5778_v58, %v3032_v51  ;;  %v3147_v56 = vadd.f32 %v3115_v4, %v3083_v26 }
 0x29f   : > { %v3132_v32 = vadd.f32 %v3100_v34, %v3068_v46  ;;  %3179 = vst [vmem:[%s5324_s24 + $0xf0] sm:$0xff] %v3147_v56 }
 0x2a0   : > { %v3010_v19 = vpop.f32.mrf.mxu3 }
 0x2a1   : > { %3164 = vst [vmem:[%s5324_s24 + $0x78] sm:$0xff] %v3132_v32  ;;  %v3048_v23 = vmul.f32 %v5765_v12, %v3010_v19 }
 0x2a3   : > { %v3084_v20 = vadd.f32 %v5778_v58, %v3048_v23 }
 0x2a5   : > { %v3148_v43 = vadd.f32 %v3116_v28, %v3084_v20 }
 0x2a7   : > { %3180 = vst [vmem:[%s5324_s24 + $0xf8] sm:$0xff] %v3148_v43 }
 0x2a9   : > { %v2973_v27 = vpop.f32.mrf.mxu1 }
 0x2aa   : > { %v3033_v61 = vmul.f32 %v5765_v12, %v2973_v27 }
 0x2ac   : > { %v3069_v48 = vadd.f32 %v5778_v58, %v3033_v61 }
 0x2ae   : > { %v3133_v24 = vadd.f32 %v3101_v2, %v3069_v48 }
 0x2b0   : > { %3165 = vst [vmem:[%s5324_s24 + $0x80] sm:$0xff] %v3133_v24 }
 0x2b1   : > { %v2975_v53 = vpop.f32.mrf.mxu1 }
 0x2b2   : > { %v3034_v55 = vmul.f32 %v5765_v12, %v2975_v53 }
 0x2b4   : > { %v3070_v52 = vadd.f32 %v5778_v58, %v3034_v55 }
 0x2b6   : > { %v3134_v33 = vadd.f32 %v3102_v21, %v3070_v52 }
 0x2b8   : > { %3166 = vst [vmem:[%s5324_s24 + $0x88] sm:$0xff] %v3134_v33 }
 0x2bd   : > { %v2978_v10 = vpop.f32.mrf.mxu1 }
 0x2be   : > { %v3035_v9 = vmul.f32 %v5765_v12, %v2978_v10 }
 0x2c0   : > { %v3071_v0 = vadd.f32 %v5778_v58, %v3035_v9 }
 0x2c2   : > { %v3135_v31 = vadd.f32 %v3103_v11, %v3071_v0 }
 0x2c4   : > { %3167 = vst [vmem:[%s5324_s24 + $0x90] sm:$0xff] %v3135_v31 }
 0x2c5   : > { %v2980_v45 = vpop.f32.mrf.mxu1 }
 0x2c6   : > { %v3036_v5 = vmul.f32 %v5765_v12, %v2980_v45 }
 0x2c8   : > { %v3072_v8 = vadd.f32 %v5778_v58, %v3036_v5 }
 0x2ca   : > { %v3136_v13 = vadd.f32 %v3104_v63, %v3072_v8 }
 0x2cc   : > { %3168 = vst [vmem:[%s5324_s24 + $0x98] sm:$0xff] %v3136_v13 }
 0x2cd   : > { %3812 = shalt.err (!%p3809_p9)
}
 0x2ce   : > { %s3877_s7 = smov 128   ;;  %s3878_s24 = smov 8  }
 0x2cf   : > { %3579 = dma.vmem_to_hbm [thread:$0]  (%p3974_p4), %s3198_s11, 4096, %s3200_s28, %s3182_s16, %s3877_s7, %s3877_s7, %s3878_s24  }
 0x2d0 PF: > { %p3601_p10 = scmp.ge.s32.totalorder %s3871_s18, 2  ;;  %s3214_s12 = sand.u32 1, %s3851_s13  }
 0x2d1   : > { %s3215_s15 = scalar_lea.sflag [#allocation4], %s3214_s12 }
 0x2d2   : > { %p3592_p11 = pnand %p3601_p10, %p3981_p8 }
 0x2d4   : > { %p3593_p12 = pneg %p3592_p11 }
 0x2d6   : > { %3846 = dma.done.wait (%p3593_p12), %s3215_s15, 4096  }
 0x2d7   : > { %3848 = vsyncadd (%p3593_p12), %s3215_s15, 4294963200  ;;  %s25_s18 = sadd.s32 1, %s3871_s18   ;;  %s6164_s17 = sld [smem:[#allocation12_spill]] }
 0x2d8   : > { %p22_p13 = scmp.ge.s32.totalorder %s25_s18, 4   ;;  %s6165_s15 = sld [smem:[#allocation15_spill]] }
 0x2d9   : > { %s6166_s16 = sld [smem:[#allocation13_spill]]  ;;  %s6168_s13 = smov %s3855_s14 }
 0x2da   : > { %s6167_s23 = sld [smem:[#allocation14_spill]] }
 0x2dc   :  { %24 = sbr.rel (!%p22_p13) target bundleno = 8 (0x8), region = 112 }
 0x2dd   : > { %s6169_s14 = smov %s6164_s17 }
 0x2e0   : > { %s6170_s17 = smov %s6167_s23 }
 0x2e1   :  { %3221 = vsyncpa [#allocation3], 1 }
 0x2e2   :  { %3223 = vsyncpa [#allocation3 + $0x1], 1 }
 0x2e3   :  { %3224 = vsyncpa [#allocation6], 1 }
 0x2e4   :  { %3225 = vsyncpa [#allocation4], 1 }
 0x2e5   :  { %3227 = vsyncpa [#allocation4 + $0x1], 1 }

</bundles_post_ra>
